<compile_context>
chip_gen: v7x
topology: tpu7x:2x2x1
jax: 0.10.0
libtpu: 0.0.40
codegen_flags: <defaults>
</compile_context>

<pallas_src>
import functools

import jax
import jax.numpy as jnp
from jax import lax
from jax.experimental import pallas as pl
from jax.experimental.pallas import tpu as pltpu


def _round_up(x, m):
    return (x + m - 1) // m * m


# ----------------------------------------------------------------------------
# Kernel 1: 1x1 conv (BN folded into weights) + bias + ReLU, tiled over rows.
#   x: (tm, Cin) @ w: (Cin, Pp) -> o: (tm, Pp)
# ----------------------------------------------------------------------------
def _conv1x1_bias_relu_kernel(x_ref, w_ref, b_ref, o_ref):
    y = jnp.dot(x_ref[...], w_ref[...], preferred_element_type=jnp.float32)
    y = y + b_ref[...]
    o_ref[...] = jnp.maximum(y, 0.0).astype(o_ref.dtype)


def conv1x1_bias_relu(x, w, b, *, tm=256):
    M, cin = x.shape
    cout = w.shape[1]
    tm = min(tm, M)
    return pl.pallas_call(
        _conv1x1_bias_relu_kernel,
        out_shape=jax.ShapeDtypeStruct((M, cout), x.dtype),
        grid=(pl.cdiv(M, tm),),
        in_specs=[
            pl.BlockSpec((tm, cin), lambda i: (i, 0)),
            pl.BlockSpec((cin, cout), lambda i: (0, 0)),
            pl.BlockSpec((1, cout), lambda i: (0, 0)),
        ],
        out_specs=pl.BlockSpec((tm, cout), lambda i: (i, 0)),
        compiler_params=pltpu.CompilerParams(
            dimension_semantics=("parallel",),
            vmem_limit_bytes=32 * 1024 * 1024),
    )(x, w, b)


# ----------------------------------------------------------------------------
# Kernel 2: fused conv2(3x3, pad=1) + bias + ReLU + conv3(1x1) + bias +
#           residual + ReLU.  One grid step per image; intermediate stays in
#           VMEM; 3x3 taps via XLU roll + row slices into a f32 scratch acc.
# ----------------------------------------------------------------------------
def _make_conv23_kernel(H, W):
    HW = H * W

    def kernel(y1_ref, res_ref, w2_ref, b2_ref, w3_ref, b3_ref, o_ref,
               acc_ref):
        x1 = y1_ref[...]                                       # (HW, Pp)

        # Width-neighbour shifted copies via sublane rotate + border mask.
        # (rolls done in f32 for robust lowering; lossless for bf16 inputs)
        wpos = lax.broadcasted_iota(jnp.int32, x1.shape, 0) % W
        x1f = x1.astype(jnp.float32)
        x_m1 = jnp.where(wpos == 0, 0.0,
                         pltpu.roll(x1f, shift=1, axis=0)).astype(x1.dtype)
        x_p1 = jnp.where(wpos == W - 1, 0.0,
                         pltpu.roll(x1f, shift=HW - 1, axis=0)).astype(x1.dtype)
        shifted = (x_m1, x1, x_p1)                             # dw = -1, 0, +1

        # conv2: 9 MXU taps accumulated into the VMEM f32 scratch.
        acc_ref[...] = jnp.zeros_like(acc_ref)
        for kh in range(3):
            dh = kh - 1
            h_lo, h_hi = max(0, -dh), min(H, H - dh)           # valid out rows
            o_a, o_b = h_lo * W, h_hi * W
            i_a, i_b = (h_lo + dh) * W, (h_hi + dh) * W
            for kw in range(3):
                contrib = jnp.dot(shifted[kw][i_a:i_b, :], w2_ref[kh, kw],
                                  preferred_element_type=jnp.float32)
                acc_ref[o_a:o_b, :] = acc_ref[o_a:o_b, :] + contrib

        y2 = jnp.maximum(acc_ref[...] + b2_ref[...], 0.0)      # (HW, Pp) f32

        # conv3 (1x1) + bias + residual + ReLU, all in VMEM.
        y3 = jnp.dot(y2.astype(w3_ref.dtype), w3_ref[...],
                     preferred_element_type=jnp.float32)
        y3 = y3 + b3_ref[...] + res_ref[...].astype(jnp.float32)
        o_ref[...] = jnp.maximum(y3, 0.0).astype(o_ref.dtype)

    return kernel


def conv3x3_conv1x1_residual(y1, x_res, w2, b2, w3, b3, *, n, h, w):
    HW = h * w
    pp = y1.shape[1]
    cout = w3.shape[1]
    return pl.pallas_call(
        _make_conv23_kernel(h, w),
        out_shape=jax.ShapeDtypeStruct((n * HW, cout), x_res.dtype),
        grid=(n,),
        in_specs=[
            pl.BlockSpec((HW, pp), lambda i: (i, 0)),          # conv1 output
            pl.BlockSpec((HW, cout), lambda i: (i, 0)),        # residual
            pl.BlockSpec((3, 3, pp, pp), lambda i: (0, 0, 0, 0)),
            pl.BlockSpec((1, pp), lambda i: (0, 0)),
            pl.BlockSpec((pp, cout), lambda i: (0, 0)),
            pl.BlockSpec((1, cout), lambda i: (0, 0)),
        ],
        out_specs=pl.BlockSpec((HW, cout), lambda i: (i, 0)),
        scratch_shapes=[pltpu.VMEM((HW, pp), jnp.float32)],
        input_output_aliases={1: 0},                           # out <- residual buf
        compiler_params=pltpu.CompilerParams(
            dimension_semantics=("parallel",),
            vmem_limit_bytes=32 * 1024 * 1024),
    )(y1, x_res, w2, b2, w3, b3)


# ----------------------------------------------------------------------------
# Forward pass
# ----------------------------------------------------------------------------
def bottleneck_forward(x_nchw, kp, *, compute_dtype=jnp.float32):
    N, C, H, W = x_nchw.shape
    assert (H * W) % 8 == 0, "H*W must be a multiple of 8 for TPU tiling"
    x = jnp.transpose(x_nchw, (0, 2, 3, 1)).reshape(N * H * W, C)
    x = x.astype(compute_dtype)

    y1 = conv1x1_bias_relu(x, kp["w1"], kp["b1"])
    out = conv3x3_conv1x1_residual(y1, x, kp["w2"], kp["b2"],
                                   kp["w3"], kp["b3"], n=N, h=H, w=W)

    out = out.reshape(N, H, W, C)
    return jnp.transpose(out, (0, 3, 1, 2))


# ----------------------------------------------------------------------------
# Host-side parameter preparation (BN fold + layout + channel padding)
# ----------------------------------------------------------------------------
def _fold_bn(w_oihw, bn, eps=1e-5):
    gamma, beta, mean, var = bn
    scale = gamma / jnp.sqrt(var + eps)
    return w_oihw * scale[:, None, None, None], beta - mean * scale


def prepare_kernel_params(raw, compute_dtype):
    w1f, b1f = _fold_bn(raw["w1"], raw["bn1"])   # (P, Cin, 1, 1)
    w2f, b2f = _fold_bn(raw["w2"], raw["bn2"])   # (P, P, 3, 3)
    w3f, b3f = _fold_bn(raw["w3"], raw["bn3"])   # (Cexp, P, 1, 1)

    P, cin = w1f.shape[0], w1f.shape[1]
    cexp = w3f.shape[0]
    Pp = _round_up(P, 128)                       # lane-dense intermediate

    w1_mm = jnp.zeros((cin, Pp), jnp.float32).at[:, :P].set(
        jnp.transpose(w1f[:, :, 0, 0], (1, 0)))
    b1 = jnp.zeros((1, Pp), jnp.float32).at[0, :P].set(b1f)
    w2_k = jnp.zeros((3, 3, Pp, Pp), jnp.float32).at[:, :, :P, :P].set(
        jnp.transpose(w2f, (2, 3, 1, 0)))        # (kh, kw, cin, cout)
    b2 = jnp.zeros((1, Pp), jnp.float32).at[0, :P].set(b2f)
    w3_mm = jnp.zeros((Pp, cexp), jnp.float32).at[:P, :].set(
        jnp.transpose(w3f[:, :, 0, 0], (1, 0)))
    b3 = b3f[None, :]

    return {
        "w1": w1_mm.astype(compute_dtype), "b1": b1,
        "w2": w2_k.astype(compute_dtype), "b2": b2,
        "w3": w3_mm.astype(compute_dtype), "b3": b3.astype(jnp.float32),
    }


# ----------------------------------------------------------------------------
# Plain-XLA reference (PyTorch NCHW semantics) for verification
# ----------------------------------------------------------------------------
def reference_bottleneck(x, raw, eps=1e-5):
    def conv(x, w, padding):
        return lax.conv_general_dilated(
            x, w, (1, 1), padding,
            dimension_numbers=("NCHW", "OIHW", "NCHW"),
            precision=lax.Precision.HIGHEST)

    def bn(x, p):
        gamma, beta, mean, var = p
        s = gamma / jnp.sqrt(var + eps)
        b = beta - mean * s
        return x * s[None, :, None, None] + b[None, :, None, None]

    out = jnp.maximum(bn(conv(x, raw["w1"], "VALID"), raw["bn1"]), 0.0)
    out = jnp.maximum(bn(conv(out, raw["w2"], [(1, 1), (1, 1)]), raw["bn2"]), 0.0)
    out = bn(conv(out, raw["w3"], "VALID"), raw["bn3"])
    return jnp.maximum(out + x, 0.0)


# ----------------------------------------------------------------------------
# Deterministic parameter construction (PyTorch layouts)
# ----------------------------------------------------------------------------
def make_raw_params(key, inplanes, planes):
    expansion = 4
    ks = jax.random.split(key, 6)

    def bn(k, c):
        k1, k2, k3, k4 = jax.random.split(k, 4)
        gamma = 1.0 + 0.1 * jax.random.normal(k1, (c,), jnp.float32)
        beta = 0.1 * jax.random.normal(k2, (c,), jnp.float32)
        mean = 0.1 * jax.random.normal(k3, (c,), jnp.float32)
        var = jnp.abs(jax.random.normal(k4, (c,), jnp.float32)) + 0.5
        return (gamma, beta, mean, var)

    return {
        "w1": 0.1 * jax.random.normal(ks[0], (planes, inplanes, 1, 1), jnp.float32),
        "w2": 0.1 * jax.random.normal(ks[1], (planes, planes, 3, 3), jnp.float32),
        "w3": 0.1 * jax.random.normal(ks[2], (planes * expansion, planes, 1, 1),
                                      jnp.float32),
        "bn1": bn(ks[3], planes),
        "bn2": bn(ks[4], planes),
        "bn3": bn(ks[5], planes * expansion),
    }


if __name__ == "__main__":
    # stride=1, downsample=None requires inplanes == planes * 4.
    N, inplanes, planes, H, W = 2, 128, 32, 16, 16

    key = jax.random.PRNGKey(0)
    kx, kp = jax.random.split(key)
    x = jax.random.normal(kx, (N, inplanes, H, W), jnp.float32)
    raw = make_raw_params(kp, inplanes, planes)

    ref = jax.block_until_ready(reference_bottleneck(x, raw))

    # float32 path (tight check)
    kp32 = prepare_kernel_params(raw, jnp.float32)
    fwd32 = jax.jit(functools.partial(bottleneck_forward,
                                      compute_dtype=jnp.float32))
    out32 = jax.block_until_ready(fwd32(x, kp32))
    assert out32.shape == (N, inplanes, H, W)
    err32 = float(jnp.max(jnp.abs(out32.astype(jnp.float32) - ref)))
    assert err32 < 5e-3, f"f32 mismatch vs XLA reference: {err32}"

    # bfloat16 path (MXU-friendly; looser tolerance by design)
    kpbf = prepare_kernel_params(raw, jnp.bfloat16)
    fwdbf = jax.jit(functools.partial(bottleneck_forward,
                                      compute_dtype=jnp.bfloat16))
    outbf = jax.block_until_ready(fwdbf(x, kpbf))
    errbf = float(jnp.max(jnp.abs(outbf.astype(jnp.float32) - ref)))
    assert errbf < 2e-1, f"bf16 mismatch vs XLA reference: {errbf}"

    print("KERNEL_OK")
</pallas_src>

<mosaic_0001>
module attributes {stable_mosaic.version = 11 : i64} {
  func.func @kernel(%arg0: i32, %arg1: memref<256x128xf32, #tpu.memory_space<vmem>>, %arg2: memref<256x128xf32, #tpu.memory_space<vmem>>, %arg3: memref<3x3x128x128xf32, #tpu.memory_space<vmem>>, %arg4: memref<1x128xf32, #tpu.memory_space<vmem>>, %arg5: memref<128x128xf32, #tpu.memory_space<vmem>>, %arg6: memref<1x128xf32, #tpu.memory_space<vmem>>, %arg7: memref<256x128xf32, #tpu.memory_space<vmem>>, %arg8: memref<256x128xf32, #tpu.memory_space<vmem>>) attributes {dimension_semantics = [#tpu.dimension_semantics<parallel>], iteration_bounds = array<i64: 2>, scalar_prefetch = 0 : i64, scratch_operands = 1 : i64, tpu.core_type = #tpu.core_type<tc>, window_params = [{transform_indices = @transform_0, window_bounds = array<i64: 256, 128>}, {transform_indices = @transform_1, window_bounds = array<i64: 256, 128>}, {pipeline_mode = #tpu.pipeline_mode<synchronous>, transform_indices = @transform_2, window_bounds = array<i64: 3, 3, 128, 128>}, {pipeline_mode = #tpu.pipeline_mode<synchronous>, transform_indices = @transform_3, window_bounds = array<i64: 1, 128>}, {pipeline_mode = #tpu.pipeline_mode<synchronous>, transform_indices = @transform_4, window_bounds = array<i64: 128, 128>}, {pipeline_mode = #tpu.pipeline_mode<synchronous>, transform_indices = @transform_5, window_bounds = array<i64: 1, 128>}, {transform_indices = @transform_6, window_bounds = array<i64: 256, 128>}]} {
    %c0 = arith.constant 0 : index
    %c0_0 = arith.constant 0 : index
    %0 = vector.load %arg1[%c0, %c0_0] : memref<256x128xf32, #tpu.memory_space<vmem>>, vector<256x128xf32>
    %1 = tpu.iota {dimensions = array<i32: 0>} : vector<256x128xi32>
    %c16_i32 = arith.constant 16 : i32
    %c0_i32 = arith.constant 0 : i32
    %2 = arith.cmpi eq, %c16_i32, %c0_i32 : i32
    %c1_i32 = arith.constant 1 : i32
    %3 = arith.select %2, %c1_i32, %c16_i32 : i32
    %4 = vector.broadcast %3 : i32 to vector<256x128xi32>
    %5 = arith.remsi %1, %4 : vector<256x128xi32>
    %c0_i32_1 = arith.constant 0 : i32
    %6 = vector.broadcast %c0_i32_1 : i32 to vector<256x128xi32>
    %7 = arith.cmpi ne, %5, %6 : vector<256x128xi32>
    %c0_i32_2 = arith.constant 0 : i32
    %8 = vector.broadcast %c0_i32_2 : i32 to vector<256x128xi32>
    %9 = arith.cmpi slt, %5, %8 : vector<256x128xi32>
    %c0_i32_3 = arith.constant 0 : i32
    %10 = arith.cmpi slt, %3, %c0_i32_3 : i32
    %11 = vector.broadcast %10 : i1 to vector<256x128xi1>
    %12 = vector.broadcast %11 : vector<256x128xi1> to vector<256x128xi1>
    %13 = arith.xori %9, %12 : vector<256x128xi1>
    %14 = arith.andi %13, %7 : vector<256x128xi1>
    %15 = vector.broadcast %3 : i32 to vector<256x128xi32>
    %16 = arith.addi %5, %15 : vector<256x128xi32>
    %17 = arith.select %14, %16, %5 : vector<256x128xi1>, vector<256x128xi32>
    %c0_i32_4 = arith.constant 0 : i32
    %18 = vector.broadcast %c0_i32_4 : i32 to vector<256x128xi32>
    %19 = arith.cmpi eq, %17, %18 : vector<256x128xi32>
    %c1_i32_5 = arith.constant 1 : i32
    %20 = tpu.dynamic_rotate %0 by %c1_i32_5 dim 0 : vector<256x128xf32>, i32 -> vector<256x128xf32>
    %cst = arith.constant 0.000000e+00 : f32
    %21 = vector.broadcast %cst : f32 to vector<256x128xf32>
    %22 = arith.select %19, %21, %20 : vector<256x128xi1>, vector<256x128xf32>
    %c15_i32 = arith.constant 15 : i32
    %23 = vector.broadcast %c15_i32 : i32 to vector<256x128xi32>
    %24 = arith.cmpi eq, %17, %23 : vector<256x128xi32>
    %c255_i32 = arith.constant 255 : i32
    %25 = tpu.dynamic_rotate %0 by %c255_i32 dim 0 : vector<256x128xf32>, i32 -> vector<256x128xf32>
    %cst_6 = arith.constant 0.000000e+00 : f32
    %26 = vector.broadcast %cst_6 : f32 to vector<256x128xf32>
    %27 = arith.select %24, %26, %25 : vector<256x128xi1>, vector<256x128xf32>
    %cst_7 = arith.constant 0.000000e+00 : f32
    %28 = vector.broadcast %cst_7 : f32 to vector<256x128xf32>
    %c0_8 = arith.constant 0 : index
    %c0_9 = arith.constant 0 : index
    %29 = vector.load %arg8[%c0_8, %c0_9] : memref<256x128xf32, #tpu.memory_space<vmem>>, vector<256x128xf32>
    tpu.vector_store %arg8[%c0_8, %c0_9], %28 {strides = array<i32>} : memref<256x128xf32, #tpu.memory_space<vmem>>, vector<256x128xf32>,
    %30 = vector.extract_strided_slice %22 {offsets = [0, 0], sizes = [240, 128], strides = [1, 1]} : vector<256x128xf32> to vector<240x128xf32>
    %c0_10 = arith.constant 0 : index
    %c0_11 = arith.constant 0 : index
    %c0_12 = arith.constant 0 : index
    %c0_13 = arith.constant 0 : index
    %31 = vector.load %arg3[%c0_10, %c0_11, %c0_12, %c0_13] : memref<3x3x128x128xf32, #tpu.memory_space<vmem>>, vector<1x1x128x128xf32>
    %32 = vector.shape_cast %31 : vector<1x1x128x128xf32> to vector<128x128xf32>
    %cst_14 = arith.constant dense<0.000000e+00> : vector<240x128xf32>
    %33 = tpu.matmul %30, %32, %cst_14 {dimension_numbers = #tpu.dot_dimension_numbers<[1], [0], [0], [1], [0, 0, 1, 1], [], []>} : vector<240x128xf32>, vector<128x128xf32>, vector<240x128xf32> -> vector<240x128xf32>
    %c16 = arith.constant 16 : index
    %c0_15 = arith.constant 0 : index
    %34 = vector.load %arg8[%c16, %c0_15] : memref<256x128xf32, #tpu.memory_space<vmem>>, vector<240x128xf32>
    %35 = arith.addf %34, %33 : vector<240x128xf32>
    %c16_16 = arith.constant 16 : index
    %c0_17 = arith.constant 0 : index
    %36 = vector.load %arg8[%c16_16, %c0_17] : memref<256x128xf32, #tpu.memory_space<vmem>>, vector<240x128xf32>
    tpu.vector_store %arg8[%c16_16, %c0_17], %35 {strides = array<i32>} : memref<256x128xf32, #tpu.memory_space<vmem>>, vector<240x128xf32>,
    %37 = vector.extract_strided_slice %0 {offsets = [0, 0], sizes = [240, 128], strides = [1, 1]} : vector<256x128xf32> to vector<240x128xf32>
    %c0_18 = arith.constant 0 : index
    %c1 = arith.constant 1 : index
    %c0_19 = arith.constant 0 : index
    %c0_20 = arith.constant 0 : index
    %38 = vector.load %arg3[%c0_18, %c1, %c0_19, %c0_20] : memref<3x3x128x128xf32, #tpu.memory_space<vmem>>, vector<1x1x128x128xf32>
    %39 = vector.shape_cast %38 : vector<1x1x128x128xf32> to vector<128x128xf32>
    %cst_21 = arith.constant dense<0.000000e+00> : vector<240x128xf32>
    %40 = tpu.matmul %37, %39, %cst_21 {dimension_numbers = #tpu.dot_dimension_numbers<[1], [0], [0], [1], [0, 0, 1, 1], [], []>} : vector<240x128xf32>, vector<128x128xf32>, vector<240x128xf32> -> vector<240x128xf32>
    %c16_22 = arith.constant 16 : index
    %c0_23 = arith.constant 0 : index
    %41 = vector.load %arg8[%c16_22, %c0_23] : memref<256x128xf32, #tpu.memory_space<vmem>>, vector<240x128xf32>
    %42 = arith.addf %41, %40 : vector<240x128xf32>
    %c16_24 = arith.constant 16 : index
    %c0_25 = arith.constant 0 : index
    %43 = vector.load %arg8[%c16_24, %c0_25] : memref<256x128xf32, #tpu.memory_space<vmem>>, vector<240x128xf32>
    tpu.vector_store %arg8[%c16_24, %c0_25], %42 {strides = array<i32>} : memref<256x128xf32, #tpu.memory_space<vmem>>, vector<240x128xf32>,
    %44 = vector.extract_strided_slice %27 {offsets = [0, 0], sizes = [240, 128], strides = [1, 1]} : vector<256x128xf32> to vector<240x128xf32>
    %c0_26 = arith.constant 0 : index
    %c2 = arith.constant 2 : index
    %c0_27 = arith.constant 0 : index
    %c0_28 = arith.constant 0 : index
    %45 = vector.load %arg3[%c0_26, %c2, %c0_27, %c0_28] : memref<3x3x128x128xf32, #tpu.memory_space<vmem>>, vector<1x1x128x128xf32>
    %46 = vector.shape_cast %45 : vector<1x1x128x128xf32> to vector<128x128xf32>
    %cst_29 = arith.constant dense<0.000000e+00> : vector<240x128xf32>
    %47 = tpu.matmul %44, %46, %cst_29 {dimension_numbers = #tpu.dot_dimension_numbers<[1], [0], [0], [1], [0, 0, 1, 1], [], []>} : vector<240x128xf32>, vector<128x128xf32>, vector<240x128xf32> -> vector<240x128xf32>
    %c16_30 = arith.constant 16 : index
    %c0_31 = arith.constant 0 : index
    %48 = vector.load %arg8[%c16_30, %c0_31] : memref<256x128xf32, #tpu.memory_space<vmem>>, vector<240x128xf32>
    %49 = arith.addf %48, %47 : vector<240x128xf32>
    %c16_32 = arith.constant 16 : index
    %c0_33 = arith.constant 0 : index
    %50 = vector.load %arg8[%c16_32, %c0_33] : memref<256x128xf32, #tpu.memory_space<vmem>>, vector<240x128xf32>
    tpu.vector_store %arg8[%c16_32, %c0_33], %49 {strides = array<i32>} : memref<256x128xf32, #tpu.memory_space<vmem>>, vector<240x128xf32>,
    %c1_34 = arith.constant 1 : index
    %c0_35 = arith.constant 0 : index
    %c0_36 = arith.constant 0 : index
    %c0_37 = arith.constant 0 : index
    %51 = vector.load %arg3[%c1_34, %c0_35, %c0_36, %c0_37] : memref<3x3x128x128xf32, #tpu.memory_space<vmem>>, vector<1x1x128x128xf32>
    %52 = vector.shape_cast %51 : vector<1x1x128x128xf32> to vector<128x128xf32>
    %cst_38 = arith.constant dense<0.000000e+00> : vector<256x128xf32>
    %53 = tpu.matmul %22, %52, %cst_38 {dimension_numbers = #tpu.dot_dimension_numbers<[1], [0], [0], [1], [0, 0, 1, 1], [], []>} : vector<256x128xf32>, vector<128x128xf32>, vector<256x128xf32> -> vector<256x128xf32>
    %c0_39 = arith.constant 0 : index
    %c0_40 = arith.constant 0 : index
    %54 = vector.load %arg8[%c0_39, %c0_40] : memref<256x128xf32, #tpu.memory_space<vmem>>, vector<256x128xf32>
    %55 = arith.addf %54, %53 : vector<256x128xf32>
    %c0_41 = arith.constant 0 : index
    %c0_42 = arith.constant 0 : index
    %56 = vector.load %arg8[%c0_41, %c0_42] : memref<256x128xf32, #tpu.memory_space<vmem>>, vector<256x128xf32>
    tpu.vector_store %arg8[%c0_41, %c0_42], %55 {strides = array<i32>} : memref<256x128xf32, #tpu.memory_space<vmem>>, vector<256x128xf32>,
    %c1_43 = arith.constant 1 : index
    %c1_44 = arith.constant 1 : index
    %c0_45 = arith.constant 0 : index
    %c0_46 = arith.constant 0 : index
    %57 = vector.load %arg3[%c1_43, %c1_44, %c0_45, %c0_46] : memref<3x3x128x128xf32, #tpu.memory_space<vmem>>, vector<1x1x128x128xf32>
    %58 = vector.shape_cast %57 : vector<1x1x128x128xf32> to vector<128x128xf32>
    %cst_47 = arith.constant dense<0.000000e+00> : vector<256x128xf32>
    %59 = tpu.matmul %0, %58, %cst_47 {dimension_numbers = #tpu.dot_dimension_numbers<[1], [0], [0], [1], [0, 0, 1, 1], [], []>} : vector<256x128xf32>, vector<128x128xf32>, vector<256x128xf32> -> vector<256x128xf32>
    %c0_48 = arith.constant 0 : index
    %c0_49 = arith.constant 0 : index
    %60 = vector.load %arg8[%c0_48, %c0_49] : memref<256x128xf32, #tpu.memory_space<vmem>>, vector<256x128xf32>
    %61 = arith.addf %60, %59 : vector<256x128xf32>
    %c0_50 = arith.constant 0 : index
    %c0_51 = arith.constant 0 : index
    %62 = vector.load %arg8[%c0_50, %c0_51] : memref<256x128xf32, #tpu.memory_space<vmem>>, vector<256x128xf32>
    tpu.vector_store %arg8[%c0_50, %c0_51], %61 {strides = array<i32>} : memref<256x128xf32, #tpu.memory_space<vmem>>, vector<256x128xf32>,
    %c1_52 = arith.constant 1 : index
    %c2_53 = arith.constant 2 : index
    %c0_54 = arith.constant 0 : index
    %c0_55 = arith.constant 0 : index
    %63 = vector.load %arg3[%c1_52, %c2_53, %c0_54, %c0_55] : memref<3x3x128x128xf32, #tpu.memory_space<vmem>>, vector<1x1x128x128xf32>
    %64 = vector.shape_cast %63 : vector<1x1x128x128xf32> to vector<128x128xf32>
    %cst_56 = arith.constant dense<0.000000e+00> : vector<256x128xf32>
    %65 = tpu.matmul %27, %64, %cst_56 {dimension_numbers = #tpu.dot_dimension_numbers<[1], [0], [0], [1], [0, 0, 1, 1], [], []>} : vector<256x128xf32>, vector<128x128xf32>, vector<256x128xf32> -> vector<256x128xf32>
    %c0_57 = arith.constant 0 : index
    %c0_58 = arith.constant 0 : index
    %66 = vector.load %arg8[%c0_57, %c0_58] : memref<256x128xf32, #tpu.memory_space<vmem>>, vector<256x128xf32>
    %67 = arith.addf %66, %65 : vector<256x128xf32>
    %c0_59 = arith.constant 0 : index
    %c0_60 = arith.constant 0 : index
    %68 = vector.load %arg8[%c0_59, %c0_60] : memref<256x128xf32, #tpu.memory_space<vmem>>, vector<256x128xf32>
    tpu.vector_store %arg8[%c0_59, %c0_60], %67 {strides = array<i32>} : memref<256x128xf32, #tpu.memory_space<vmem>>, vector<256x128xf32>,
    %69 = vector.extract_strided_slice %22 {offsets = [16, 0], sizes = [240, 128], strides = [1, 1]} : vector<256x128xf32> to vector<240x128xf32>
    %c2_61 = arith.constant 2 : index
    %c0_62 = arith.constant 0 : index
    %c0_63 = arith.constant 0 : index
    %c0_64 = arith.constant 0 : index
    %70 = vector.load %arg3[%c2_61, %c0_62, %c0_63, %c0_64] : memref<3x3x128x128xf32, #tpu.memory_space<vmem>>, vector<1x1x128x128xf32>
    %71 = vector.shape_cast %70 : vector<1x1x128x128xf32> to vector<128x128xf32>
    %cst_65 = arith.constant dense<0.000000e+00> : vector<240x128xf32>
    %72 = tpu.matmul %69, %71, %cst_65 {dimension_numbers = #tpu.dot_dimension_numbers<[1], [0], [0], [1], [0, 0, 1, 1], [], []>} : vector<240x128xf32>, vector<128x128xf32>, vector<240x128xf32> -> vector<240x128xf32>
    %c0_66 = arith.constant 0 : index
    %c0_67 = arith.constant 0 : index
    %73 = vector.load %arg8[%c0_66, %c0_67] : memref<256x128xf32, #tpu.memory_space<vmem>>, vector<240x128xf32>
    %74 = arith.addf %73, %72 : vector<240x128xf32>
    %c0_68 = arith.constant 0 : index
    %c0_69 = arith.constant 0 : index
    %75 = vector.load %arg8[%c0_68, %c0_69] : memref<256x128xf32, #tpu.memory_space<vmem>>, vector<240x128xf32>
    tpu.vector_store %arg8[%c0_68, %c0_69], %74 {strides = array<i32>} : memref<256x128xf32, #tpu.memory_space<vmem>>, vector<240x128xf32>,
    %76 = vector.extract_strided_slice %0 {offsets = [16, 0], sizes = [240, 128], strides = [1, 1]} : vector<256x128xf32> to vector<240x128xf32>
    %c2_70 = arith.constant 2 : index
    %c1_71 = arith.constant 1 : index
    %c0_72 = arith.constant 0 : index
    %c0_73 = arith.constant 0 : index
    %77 = vector.load %arg3[%c2_70, %c1_71, %c0_72, %c0_73] : memref<3x3x128x128xf32, #tpu.memory_space<vmem>>, vector<1x1x128x128xf32>
    %78 = vector.shape_cast %77 : vector<1x1x128x128xf32> to vector<128x128xf32>
    %cst_74 = arith.constant dense<0.000000e+00> : vector<240x128xf32>
    %79 = tpu.matmul %76, %78, %cst_74 {dimension_numbers = #tpu.dot_dimension_numbers<[1], [0], [0], [1], [0, 0, 1, 1], [], []>} : vector<240x128xf32>, vector<128x128xf32>, vector<240x128xf32> -> vector<240x128xf32>
    %c0_75 = arith.constant 0 : index
    %c0_76 = arith.constant 0 : index
    %80 = vector.load %arg8[%c0_75, %c0_76] : memref<256x128xf32, #tpu.memory_space<vmem>>, vector<240x128xf32>
    %81 = arith.addf %80, %79 : vector<240x128xf32>
    %c0_77 = arith.constant 0 : index
    %c0_78 = arith.constant 0 : index
    %82 = vector.load %arg8[%c0_77, %c0_78] : memref<256x128xf32, #tpu.memory_space<vmem>>, vector<240x128xf32>
    tpu.vector_store %arg8[%c0_77, %c0_78], %81 {strides = array<i32>} : memref<256x128xf32, #tpu.memory_space<vmem>>, vector<240x128xf32>,
    %83 = vector.extract_strided_slice %27 {offsets = [16, 0], sizes = [240, 128], strides = [1, 1]} : vector<256x128xf32> to vector<240x128xf32>
    %c2_79 = arith.constant 2 : index
    %c2_80 = arith.constant 2 : index
    %c0_81 = arith.constant 0 : index
    %c0_82 = arith.constant 0 : index
    %84 = vector.load %arg3[%c2_79, %c2_80, %c0_81, %c0_82] : memref<3x3x128x128xf32, #tpu.memory_space<vmem>>, vector<1x1x128x128xf32>
    %85 = vector.shape_cast %84 : vector<1x1x128x128xf32> to vector<128x128xf32>
    %cst_83 = arith.constant dense<0.000000e+00> : vector<240x128xf32>
    %86 = tpu.matmul %83, %85, %cst_83 {dimension_numbers = #tpu.dot_dimension_numbers<[1], [0], [0], [1], [0, 0, 1, 1], [], []>} : vector<240x128xf32>, vector<128x128xf32>, vector<240x128xf32> -> vector<240x128xf32>
    %c0_84 = arith.constant 0 : index
    %c0_85 = arith.constant 0 : index
    %87 = vector.load %arg8[%c0_84, %c0_85] : memref<256x128xf32, #tpu.memory_space<vmem>>, vector<240x128xf32>
    %88 = arith.addf %87, %86 : vector<240x128xf32>
    %c0_86 = arith.constant 0 : index
    %c0_87 = arith.constant 0 : index
    %89 = vector.load %arg8[%c0_86, %c0_87] : memref<256x128xf32, #tpu.memory_space<vmem>>, vector<240x128xf32>
    tpu.vector_store %arg8[%c0_86, %c0_87], %88 {strides = array<i32>} : memref<256x128xf32, #tpu.memory_space<vmem>>, vector<240x128xf32>,
    %c0_88 = arith.constant 0 : index
    %c0_89 = arith.constant 0 : index
    %90 = vector.load %arg8[%c0_88, %c0_89] : memref<256x128xf32, #tpu.memory_space<vmem>>, vector<256x128xf32>
    %c0_90 = arith.constant 0 : index
    %c0_91 = arith.constant 0 : index
    %91 = vector.load %arg4[%c0_90, %c0_91] : memref<1x128xf32, #tpu.memory_space<vmem>>, vector<1x128xf32>
    %92 = vector.broadcast %91 : vector<1x128xf32> to vector<256x128xf32>
    %93 = arith.addf %90, %92 : vector<256x128xf32>
    %cst_92 = arith.constant 0.000000e+00 : f32
    %94 = vector.broadcast %cst_92 : f32 to vector<256x128xf32>
    %95 = arith.maximumf %93, %94 : vector<256x128xf32>
    %c0_93 = arith.constant 0 : index
    %c0_94 = arith.constant 0 : index
    %96 = vector.load %arg5[%c0_93, %c0_94] : memref<128x128xf32, #tpu.memory_space<vmem>>, vector<128x128xf32>
    %cst_95 = arith.constant dense<0.000000e+00> : vector<256x128xf32>
    %97 = tpu.matmul %95, %96, %cst_95 {dimension_numbers = #tpu.dot_dimension_numbers<[1], [0], [0], [1], [0, 0, 1, 1], [], []>} : vector<256x128xf32>, vector<128x128xf32>, vector<256x128xf32> -> vector<256x128xf32>
    %c0_96 = arith.constant 0 : index
    %c0_97 = arith.constant 0 : index
    %98 = vector.load %arg6[%c0_96, %c0_97] : memref<1x128xf32, #tpu.memory_space<vmem>>, vector<1x128xf32>
    %99 = vector.broadcast %98 : vector<1x128xf32> to vector<256x128xf32>
    %100 = arith.addf %97, %99 : vector<256x128xf32>
    %c0_98 = arith.constant 0 : index
    %c0_99 = arith.constant 0 : index
    %101 = vector.load %arg2[%c0_98, %c0_99] : memref<256x128xf32, #tpu.memory_space<vmem>>, vector<256x128xf32>
    %102 = arith.addf %100, %101 : vector<256x128xf32>
    %cst_100 = arith.constant 0.000000e+00 : f32
    %103 = vector.broadcast %cst_100 : f32 to vector<256x128xf32>
    %104 = arith.maximumf %102, %103 : vector<256x128xf32>
    %c0_101 = arith.constant 0 : index
    %c0_102 = arith.constant 0 : index
    %105 = vector.load %arg7[%c0_101, %c0_102] : memref<256x128xf32, #tpu.memory_space<vmem>>, vector<256x128xf32>
    tpu.vector_store %arg7[%c0_101, %c0_102], %104 {strides = array<i32>} : memref<256x128xf32, #tpu.memory_space<vmem>>, vector<256x128xf32>,
    return
  }
  func.func @transform_0(%arg0: i32) -> (i32, i32) {
    %c0_i32 = arith.constant 0 : i32
    %c0_i32_0 = arith.constant 0 : i32
    return %arg0, %c0_i32 : i32, i32
  }
  func.func @transform_1(%arg0: i32) -> (i32, i32) {
    %c0_i32 = arith.constant 0 : i32
    %c0_i32_0 = arith.constant 0 : i32
    return %arg0, %c0_i32 : i32, i32
  }
  func.func @transform_2(%arg0: i32) -> (i32, i32, i32, i32) {
    %c0_i32 = arith.constant 0 : i32
    %c0_i32_0 = arith.constant 0 : i32
    %c0_i32_1 = arith.constant 0 : i32
    %c0_i32_2 = arith.constant 0 : i32
    %c0_i32_3 = arith.constant 0 : i32
    return %c0_i32, %c0_i32_0, %c0_i32_1, %c0_i32_2 : i32, i32, i32, i32
  }
  func.func @transform_3(%arg0: i32) -> (i32, i32) {
    %c0_i32 = arith.constant 0 : i32
    %c0_i32_0 = arith.constant 0 : i32
    %c0_i32_1 = arith.constant 0 : i32
    return %c0_i32, %c0_i32_0 : i32, i32
  }
  func.func @transform_4(%arg0: i32) -> (i32, i32) {
    %c0_i32 = arith.constant 0 : i32
    %c0_i32_0 = arith.constant 0 : i32
    %c0_i32_1 = arith.constant 0 : i32
    return %c0_i32, %c0_i32_0 : i32, i32
  }
  func.func @transform_5(%arg0: i32) -> (i32, i32) {
    %c0_i32 = arith.constant 0 : i32
    %c0_i32_0 = arith.constant 0 : i32
    %c0_i32_1 = arith.constant 0 : i32
    return %c0_i32, %c0_i32_0 : i32, i32
  }
  func.func @transform_6(%arg0: i32) -> (i32, i32) {
    %c0_i32 = arith.constant 0 : i32
    %c0_i32_0 = arith.constant 0 : i32
    return %arg0, %c0_i32 : i32, i32
  }
}

module attributes {stable_mosaic.version = 11 : i64} {
  func.func @_conv1x1_bias_relu_kernel(%arg0: i32, %arg1: memref<256x128xf32, #tpu.memory_space<vmem>>, %arg2: memref<128x128xf32, #tpu.memory_space<vmem>>, %arg3: memref<1x128xf32, #tpu.memory_space<vmem>>, %arg4: memref<256x128xf32, #tpu.memory_space<vmem>>) attributes {dimension_semantics = [#tpu.dimension_semantics<parallel>], iteration_bounds = array<i64: 2>, scalar_prefetch = 0 : i64, scratch_operands = 0 : i64, tpu.core_type = #tpu.core_type<tc>, window_params = [{transform_indices = @transform_0, window_bounds = array<i64: 256, 128>}, {pipeline_mode = #tpu.pipeline_mode<synchronous>, transform_indices = @transform_1, window_bounds = array<i64: 128, 128>}, {pipeline_mode = #tpu.pipeline_mode<synchronous>, transform_indices = @transform_2, window_bounds = array<i64: 1, 128>}, {transform_indices = @transform_3, window_bounds = array<i64: 256, 128>}]} {
    %c0 = arith.constant 0 : index
    %c0_0 = arith.constant 0 : index
    %0 = vector.load %arg1[%c0, %c0_0] : memref<256x128xf32, #tpu.memory_space<vmem>>, vector<256x128xf32>
    %c0_1 = arith.constant 0 : index
    %c0_2 = arith.constant 0 : index
    %1 = vector.load %arg2[%c0_1, %c0_2] : memref<128x128xf32, #tpu.memory_space<vmem>>, vector<128x128xf32>
    %cst = arith.constant dense<0.000000e+00> : vector<256x128xf32>
    %2 = tpu.matmul %0, %1, %cst {dimension_numbers = #tpu.dot_dimension_numbers<[1], [0], [0], [1], [0, 0, 1, 1], [], []>} : vector<256x128xf32>, vector<128x128xf32>, vector<256x128xf32> -> vector<256x128xf32>
    %c0_3 = arith.constant 0 : index
    %c0_4 = arith.constant 0 : index
    %3 = vector.load %arg3[%c0_3, %c0_4] : memref<1x128xf32, #tpu.memory_space<vmem>>, vector<1x128xf32>
    %4 = vector.broadcast %3 : vector<1x128xf32> to vector<256x128xf32>
    %5 = arith.addf %2, %4 : vector<256x128xf32>
    %cst_5 = arith.constant 0.000000e+00 : f32
    %6 = vector.broadcast %cst_5 : f32 to vector<256x128xf32>
    %7 = arith.maximumf %5, %6 : vector<256x128xf32>
    %c0_6 = arith.constant 0 : index
    %c0_7 = arith.constant 0 : index
    %8 = vector.load %arg4[%c0_6, %c0_7] : memref<256x128xf32, #tpu.memory_space<vmem>>, vector<256x128xf32>
    tpu.vector_store %arg4[%c0_6, %c0_7], %7 {strides = array<i32>} : memref<256x128xf32, #tpu.memory_space<vmem>>, vector<256x128xf32>,
    return
  }
  func.func @transform_0(%arg0: i32) -> (i32, i32) {
    %c0_i32 = arith.constant 0 : i32
    %c0_i32_0 = arith.constant 0 : i32
    return %arg0, %c0_i32 : i32, i32
  }
  func.func @transform_1(%arg0: i32) -> (i32, i32) {
    %c0_i32 = arith.constant 0 : i32
    %c0_i32_0 = arith.constant 0 : i32
    %c0_i32_1 = arith.constant 0 : i32
    return %c0_i32, %c0_i32_0 : i32, i32
  }
  func.func @transform_2(%arg0: i32) -> (i32, i32) {
    %c0_i32 = arith.constant 0 : i32
    %c0_i32_0 = arith.constant 0 : i32
    %c0_i32_1 = arith.constant 0 : i32
    return %c0_i32, %c0_i32_0 : i32, i32
  }
  func.func @transform_3(%arg0: i32) -> (i32, i32) {
    %c0_i32 = arith.constant 0 : i32
    %c0_i32_0 = arith.constant 0 : i32
    return %arg0, %c0_i32 : i32, i32
  }
}

</mosaic_0001>

<bundles_post_ra>
// kernel: bottleneck_forward.2
= control target key start
LH: loop header
LB: loop body
LE: loop exit
PB: predicated region body
PF: predicated region fallthrough
CT: control target
= control target key end

     0   :  { %8 = vsyncpa [#allocation3], 0  ;;  %s1149_s0 = inlined_call_operand.vmem [shape: f32[512,128], index: 0, kind: input, shape index: {}]   ;;  %s1150_s1 = inlined_call_operand.hbm [shape: f32[128,128], index: 1, kind: input, shape index: {}]   ;;  %s1151_s2 = inlined_call_operand.hbm [shape: f32[1,128], index: 2, kind: input, shape index: {}]   ;;  %s1152_s3 = inlined_call_operand.vmem [shape: f32[512,128], index: 3, kind: output, shape index: {}]  }
   0x1   :  { %9 = vsyncpa [#allocation5], 0  ;;  %s943_s12 = smov 0  }
   0x2 LB: > { %s624_s13 = sadd.s32 4294967295, %s917_s12   ;;  %p626_p0 = scmp.ge.s32.totalorder %s917_s12, 1  ;;  %s917_s12 = sphi %s943_s12, %s15_s12  }
   0x3   : > { %p114_p1 = scmp.lt.s32.totalorder %s917_s12, 3  ;;  %s919_s14 = smov [#allocation2]  }
   0x4   : > { %s126_s15 = sshll.u32 %s919_s14, 4  ;;  %p957_p3 = scmp.eq.s32.totalorder %s624_s13, 0  ;;  %s127_s15 = int_to_ptr.vmem [resolvable:$true] %s126_s15 }
   0x5   : > { %p951_p2 = pnand %p626_p0, %p114_p1  ;;  %s920_s18 = smov [#allocation4]  }
   0x6   : > { %s1157_s17 = scalar_select %p957_p3, 1, 0 }
   0x7   : > { %s1156_s16 = scalar_select %p951_p2, 1, 0 }
   0x8   : > { %p824_p4 = pneg %p951_p2  ;;  %s140_s19 = sshll.u32 %s920_s18, 4  ;;  %s969_s19 = int_to_ptr.vmem [resolvable:$true] %s140_s19 }
   0x9   : > { %s847_s23 = scalar_lea.hbm %s1150_s1, 2048 }
   0xa   : > { %p965_p5 = pnand %p957_p3, %p824_p4  ;;  %p848_p6 = scmp.ne.s32.totalorder %s1150_s1, %s847_s23 }
   0xb   : > { %p854_p10 = scmp.lt.u32.totalorder %s847_s23, %s1150_s1 }
   0xc   : > { %p849_p7 = pneg %p965_p5 }
   0xe   : > { %p850_p8 = pnand %p849_p7, %p848_p6 }
  0x10   : > { %p851_p9 = pneg %p850_p8 }
  0x12   : > { %p856_p11 = pnand %p854_p10, %p851_p9 }
  0x14   : > { %859 = shalt.err (!%p856_p11)
}
  0x15   : > { %s860_s28 = scalar_lea.vmem %s127_s15, 2048  ;;  %p868_p1 = scmp.lt.s32.totalorder %s127_s15, %s127_s15 }
  0x16   : > { %p861_p12 = scmp.ne.s32.totalorder %s127_s15, %s860_s28  ;;  %p869_p4 = scmp.lt.s32.totalorder %s860_s28, %s860_s28 }
  0x18   : > { %p863_p13 = pnand %p861_p12, %p849_p7  ;;  %p870_p3 = por %p869_p4, %p868_p1 }
  0x1a   : > { %p864_p0 = pneg %p863_p13 }
  0x1c   : > { %p871_p2 = pnand %p870_p3, %p864_p0 }
  0x1e   : > { %874 = shalt.err (!%p871_p2)
}
  0x1f   : > { %s921_s29 = smov 128   ;;  %s922_s30 = smov 8  }
  0x20   : > { %827 = dma.hbm_to_vmem [thread:$0]  (!%p965_p5), %s1150_s1, 2048, %s127_s15, [#allocation3], %s921_s29, %s921_s29, %s922_s30  }
  0x21   : > { %s875_s8 = scalar_lea.hbm %s1151_s2, 16 }
  0x22   : > { %p876_p6 = scmp.ne.s32.totalorder %s1151_s2, %s875_s8  ;;  %p882_p8 = scmp.lt.u32.totalorder %s875_s8, %s1151_s2 }
  0x24   : > { %p878_p2 = pnand %p876_p6, %p849_p7 }
  0x26   : > { %p879_p3 = pneg %p878_p2 }
  0x28   : > { %p884_p9 = pnand %p882_p8, %p879_p3 }
  0x2a   : > { %887 = shalt.err (!%p884_p9)
}
  0x2b   : > { %s888_s15 = scalar_lea.vmem %s969_s19, 16  ;;  %s895_s18 = scalar_lea.vmem %s969_s19, 32 }
  0x2c   : > { %p889_p10 = scmp.ne.s32.totalorder %s969_s19, %s888_s15  ;;  %p896_p13 = scmp.lt.s32.totalorder %s969_s19, %s969_s19 }
  0x2d   : > { %p897_p0 = scmp.lt.s32.totalorder %s895_s18, %s888_s15 }
  0x2e   : > { %p891_p11 = pnand %p889_p10, %p849_p7 }
  0x2f   : > { %p898_p1 = por %p897_p0, %p896_p13 }
  0x30   : > { %p892_p12 = pneg %p891_p11 }
  0x32   : > { %p899_p4 = pnand %p898_p1, %p892_p12 }
  0x34   : > { %902 = shalt.err (!%p899_p4)
}
  0x35   : > { %830 = dma.hbm_to_vmem [thread:$0]  (!%p965_p5), %s1151_s2, 16, %s969_s19, [#allocation5]  }
  0x36   : > { %p1159_p6 = scmp.ne.s32.totalorder %s1156_s16, 0 }
  0x37   : > { %p1160_p7 = scmp.ne.s32.totalorder (!%p1159_p6), %s1157_s17, 0 }
  0x38   : > { %162 = sbr.rel (%p1159_p6) target bundleno = 348 (0x15c), region = 32 }
  0x3f   : > { %908 = dma.done.wait (%p1160_p7), [#allocation3], 2048  }
  0x40   : > { %910 = vsyncadd (%p1160_p7), [#allocation3], 4294965248 }
  0x41   : > { %912 = dma.done.wait (%p1160_p7), [#allocation5], 16  }
  0x42   : > { %914 = vsyncadd (%p1160_p7), [#allocation5], 4294967280  ;;  %s633_s20 = sshll.u32 %s624_s13, 5  ;;  %v234_v0 = vld [vmem:[#allocation2] sm:$0xff]  ;;  %v235_v1 = vld [vmem:[#allocation2 + $0x8] sm:$0xff] }
  0x43   : > { %p191_p2 = scmp.lt.s32.totalorder %s633_s20, 63  ;;  %v236_v2 = vld [vmem:[#allocation2 + $0x10] sm:$0xff]  ;;  %v768_v3 = vpack.c.bf16 %v235_v1, %v234_v0  ;;  %v237_v4 = vld [vmem:[#allocation2 + $0x18] sm:$0xff]  ;;  %v238_v6 = vld [vmem:[#allocation2 + $0x20] sm:$0xff] }
  0x44   : > { %v772_v5 = vpack.c.bf16 %v237_v4, %v236_v2  ;;  %v239_v7 = vld [vmem:[#allocation2 + $0x28] sm:$0xff]  ;;  %v240_v11 = vld [vmem:[#allocation2 + $0x30] sm:$0xff]  ;;  %v241_v12 = vld [vmem:[#allocation2 + $0x38] sm:$0xff] }
  0x45   : > { %s1162_s20 = smov (!%p191_p2, %s633_s20), 63  ;;  %769 = vmatprep.subr.bf16.mxu0 %v768_v3  ;;  %800 = vmatprep.subr.bf16.mxu1 %v768_v3  ;;  %v776_v8 = vpack.c.bf16 %v239_v7, %v238_v6  ;;  %v780_v13 = vpack.c.bf16 %v241_v12, %v240_v11  ;;  %v242_v14 = vld [vmem:[#allocation2 + $0x40] sm:$0xff]  ;;  %v243_v15 = vld [vmem:[#allocation2 + $0x48] sm:$0xff]  ;;  %v244_v17 = vld [vmem:[#allocation2 + $0x50] sm:$0xff] }
  0x46   : > { %s634_s16 = sshll.u32 %s1162_s20, 3  ;;  %771 = vmatpush3.bf16.msra.mxu0 %v768_v3  ;;  %808 = vmatpush3.bf16.msra.mxu1 %v768_v3  ;;  %v784_v16 = vpack.c.bf16 %v243_v15, %v242_v14  ;;  %v245_v18 = vld [vmem:[#allocation2 + $0x58] sm:$0xff]  ;;  %v246_v20 = vld [vmem:[#allocation2 + $0x60] sm:$0xff]  ;;  %v247_v21 = vld [vmem:[#allocation2 + $0x68] sm:$0xff] }
  0x47   : > { %s1039_s23 = scalar_lea.vmem %s1149_s0, %s634_s16  ;;  %773 = vmatprep.subr.bf16.mxu0 %v772_v5  ;;  %801 = vmatprep.subr.bf16.mxu1 %v772_v5  ;;  %v788_v19 = vpack.c.bf16 %v245_v18, %v244_v17  ;;  %v792_v22 = vpack.c.bf16 %v247_v21, %v246_v20  ;;  %v248_v23 = vld [vmem:[#allocation2 + $0x70] sm:$0xff]  ;;  %v249_v24 = vld [vmem:[#allocation2 + $0x78] sm:$0xff]  ;;  %v1073_v56 = vld [vmem:[#allocation4] ss:$0 sm:$0xff]  ;;  %s1082_s25 = scalar_lea.vmem %s1152_s3, %s634_s16 }
  0x48   : > { %v202_v9 = vld [vmem:[%s1039_s23] sm:$0xff]  ;;  %v796_v25 = vpack.c.bf16 %v249_v24, %v248_v23  ;;  %v203_v26 = vld [vmem:[%s1039_s23 + $0x8] sm:$0xff]  ;;  %v204_v28 = vld [vmem:[%s1039_s23 + $0x10] sm:$0xff] }
  0x49   : > { %v218_v10 = vld [vmem:[%s1039_s23 + $0x80] sm:$0xff]  ;;  %720 = vmatprep.mubr.f32.mxu0 %v202_v9  ;;  %v219_v27 = vld [vmem:[%s1039_s23 + $0x88] sm:$0xff]  ;;  %v220_v29 = vld [vmem:[%s1039_s23 + $0x90] sm:$0xff] }
  0x4a   : > { %744 = vmatprep.mubr.f32.mxu1 %v218_v10  ;;  %775 = vmatpush3.bf16.msra.mxu0 %v772_v5  ;;  %v205_v30 = vld [vmem:[%s1039_s23 + $0x18] sm:$0xff]  ;;  %v206_v32 = vld [vmem:[%s1039_s23 + $0x20] sm:$0xff]  ;;  %v207_v34 = vld [vmem:[%s1039_s23 + $0x28] sm:$0xff] }
  0x4b   : > { %809 = vmatpush3.bf16.msra.mxu1 %v772_v5  ;;  %777 = vmatprep.subr.bf16.mxu0 %v776_v8  ;;  %v221_v31 = vld [vmem:[%s1039_s23 + $0x98] sm:$0xff]  ;;  %v222_v33 = vld [vmem:[%s1039_s23 + $0xa0] sm:$0xff]  ;;  %v223_v35 = vld [vmem:[%s1039_s23 + $0xa8] sm:$0xff] }
  0x4c   : > { %802 = vmatprep.subr.bf16.mxu1 %v776_v8  ;;  %v208_v36 = vld [vmem:[%s1039_s23 + $0x30] sm:$0xff]  ;;  %v209_v38 = vld [vmem:[%s1039_s23 + $0x38] sm:$0xff]  ;;  %v210_v40 = vld [vmem:[%s1039_s23 + $0x40] sm:$0xff] }
  0x4d   : > { %v224_v37 = vld [vmem:[%s1039_s23 + $0xb0] sm:$0xff]  ;;  %v225_v39 = vld [vmem:[%s1039_s23 + $0xb8] sm:$0xff]  ;;  %v226_v41 = vld [vmem:[%s1039_s23 + $0xc0] sm:$0xff] }
  0x4e   : > { %779 = vmatpush3.bf16.msra.mxu0 %v776_v8  ;;  %v211_v42 = vld [vmem:[%s1039_s23 + $0x48] sm:$0xff]  ;;  %v212_v44 = vld [vmem:[%s1039_s23 + $0x50] sm:$0xff]  ;;  %v213_v46 = vld [vmem:[%s1039_s23 + $0x58] sm:$0xff] }
  0x4f   : > { %810 = vmatpush3.bf16.msra.mxu1 %v776_v8  ;;  %781 = vmatprep.subr.bf16.mxu0 %v780_v13  ;;  %v227_v43 = vld [vmem:[%s1039_s23 + $0xc8] sm:$0xff]  ;;  %v228_v45 = vld [vmem:[%s1039_s23 + $0xd0] sm:$0xff]  ;;  %v229_v47 = vld [vmem:[%s1039_s23 + $0xd8] sm:$0xff] }
  0x50   : > { %803 = vmatprep.subr.bf16.mxu1 %v780_v13  ;;  %v214_v48 = vld [vmem:[%s1039_s23 + $0x60] sm:$0xff]  ;;  %v215_v50 = vld [vmem:[%s1039_s23 + $0x68] sm:$0xff]  ;;  %v216_v52 = vld [vmem:[%s1039_s23 + $0x70] sm:$0xff] }
  0x51   : > { %v230_v49 = vld [vmem:[%s1039_s23 + $0xe0] sm:$0xff]  ;;  %v231_v51 = vld [vmem:[%s1039_s23 + $0xe8] sm:$0xff]  ;;  %v232_v53 = vld [vmem:[%s1039_s23 + $0xf0] sm:$0xff] }
  0x52   : > { %783 = vmatpush3.bf16.msra.mxu0 %v780_v13  ;;  %v217_v54 = vld [vmem:[%s1039_s23 + $0x78] sm:$0xff] }
  0x53   : > { %811 = vmatpush3.bf16.msra.mxu1 %v780_v13  ;;  %785 = vmatprep.subr.bf16.mxu0 %v784_v16  ;;  %v233_v55 = vld [vmem:[%s1039_s23 + $0xf8] sm:$0xff] }
  0x54   : > { %804 = vmatprep.subr.bf16.mxu1 %v784_v16 }
  0x56   : > { %787 = vmatpush3.bf16.msra.mxu0 %v784_v16 }
  0x57   : > { %812 = vmatpush3.bf16.msra.mxu1 %v784_v16  ;;  %789 = vmatprep.subr.bf16.mxu0 %v788_v19 }
  0x58   : > { %805 = vmatprep.subr.bf16.mxu1 %v788_v19 }
  0x5a   : > { %791 = vmatpush3.bf16.msra.mxu0 %v788_v19 }
  0x5b   : > { %813 = vmatpush3.bf16.msra.mxu1 %v788_v19  ;;  %793 = vmatprep.subr.bf16.mxu0 %v792_v22 }
  0x5c   : > { %806 = vmatprep.subr.bf16.mxu1 %v792_v22 }
  0x5e   : > { %795 = vmatpush3.bf16.msra.mxu0 %v792_v22 }
  0x5f   : > { %814 = vmatpush3.bf16.msra.mxu1 %v792_v22  ;;  %797 = vmatprep.subr.bf16.mxu0 %v796_v25 }
  0x60   : > { %807 = vmatprep.subr.bf16.mxu1 %v796_v25 }
  0x62   : > { %799 = vmatpush3.bf16.msra.mxu0 %v796_v25 }
  0x63   : > { %815 = vmatpush3.bf16.msra.mxu1 %v796_v25 }
  0x65   : > { %721 = vmatmul.mubr.f32.vlgmr.msra.gmra.mrb[0].mxu0 %v203_v26 }
  0x66   : > { %745 = vmatmul.mubr.f32.vlgmr.msra.gmra.mrb[0].mxu1 %v219_v27  ;;  %723 = vmatprep.mubr.f32.mxu0 %v204_v28 }
  0x67   : > { %747 = vmatprep.mubr.f32.mxu1 %v220_v29 }
  0x69   : > { %724 = vmatmul.mubr.f32.gmra.mrb[2].mxu0 %v205_v30 }
  0x6a   : > { %748 = vmatmul.mubr.f32.gmra.mrb[2].mxu1 %v221_v31  ;;  %726 = vmatprep.mubr.f32.mxu0 %v206_v32 }
  0x6b   : > { %750 = vmatprep.mubr.f32.mxu1 %v222_v33 }
  0x6d   : > { %727 = vmatmul.mubr.f32.gmra.mrb[4].mxu0 %v207_v34 }
  0x6e   : > { %751 = vmatmul.mubr.f32.gmra.mrb[4].mxu1 %v223_v35  ;;  %729 = vmatprep.mubr.f32.mxu0 %v208_v36 }
  0x6f   : > { %753 = vmatprep.mubr.f32.mxu1 %v224_v37 }
  0x71   : > { %730 = vmatmul.mubr.f32.gmra.mrb[6].mxu0 %v209_v38 }
  0x72   : > { %754 = vmatmul.mubr.f32.gmra.mrb[6].mxu1 %v225_v39  ;;  %732 = vmatprep.mubr.f32.mxu0 %v210_v40 }
  0x73   : > { %756 = vmatprep.mubr.f32.mxu1 %v226_v41 }
  0x75   : > { %733 = vmatmul.mubr.f32.gmra.mrb[8].mxu0 %v211_v42 }
  0x76   : > { %757 = vmatmul.mubr.f32.gmra.mrb[8].mxu1 %v227_v43  ;;  %735 = vmatprep.mubr.f32.mxu0 %v212_v44 }
  0x77   : > { %759 = vmatprep.mubr.f32.mxu1 %v228_v45 }
  0x79   : > { %736 = vmatmul.mubr.f32.gmra.mrb[10].mxu0 %v213_v46 }
  0x7a   : > { %760 = vmatmul.mubr.f32.gmra.mrb[10].mxu1 %v229_v47  ;;  %738 = vmatprep.mubr.f32.mxu0 %v214_v48 }
  0x7b   : > { %762 = vmatprep.mubr.f32.mxu1 %v230_v49 }
  0x7d   : > { %739 = vmatmul.mubr.f32.gmra.mrb[12].mxu0 %v215_v50 }
  0x7e   : > { %763 = vmatmul.mubr.f32.gmra.mrb[12].mxu1 %v231_v51  ;;  %741 = vmatprep.mubr.f32.mxu0 %v216_v52 }
  0x7f   : > { %765 = vmatprep.mubr.f32.mxu1 %v232_v53 }
  0x81   : > { %742 = vmatmul.mubr.f32.gmra.mrb[14].mxu0 %v217_v54 }
  0x82   : > { %766 = vmatmul.mubr.f32.gmra.mrb[14].mxu1 %v233_v55 }
 0x138   : > { %v722_v57 = vpop.f32.mrb[0].mxu0 }
 0x139   : > { %v746_v58 = vpop.f32.mrb[0].mxu1  ;;  %v329_v59 = vadd.f32 %v722_v57, %v1073_v56  ;;  %v323_v61 = vpop.f32.mrb[1].mxu0 }
 0x13a   : > { %v409_v60 = vadd.f32 %v746_v58, %v1073_v56  ;;  %v403_v62 = vpop.f32.mrb[1].mxu1  ;;  %v324_v63 = vadd.f32 %v1073_v56, %v323_v61 }
 0x13b   : > { %v404_v0 = vadd.f32 %v1073_v56, %v403_v62  ;;  %v483_v1 = vmax.f32 %v329_v59, 0.0 }
 0x13c   : > { %v499_v2 = vmax.f32 %v409_v60, 0.0  ;;  %v482_v3 = vmax.f32 %v324_v63, 0.0  ;;  %v725_v5 = vpop.f32.mrb[2].mxu0 }
 0x13d   : > { %v498_v4 = vmax.f32 %v404_v0, 0.0  ;;  %v749_v6 = vpop.f32.mrb[2].mxu1  ;;  %515 = vst [vmem:[%s1082_s25 + $0x8] sm:$0xff] %v483_v1  ;;  %v339_v7 = vadd.f32 %v725_v5, %v1073_v56  ;;  %v333_v9 = vpop.f32.mrb[3].mxu0 }
 0x13e   : > { %531 = vst [vmem:[%s1082_s25 + $0x88] sm:$0xff] %v499_v2  ;;  %v419_v8 = vadd.f32 %v749_v6, %v1073_v56  ;;  %v413_v10 = vpop.f32.mrb[3].mxu1  ;;  %514 = vst [vmem:[%s1082_s25] sm:$0xff] %v482_v3  ;;  %v334_v11 = vadd.f32 %v1073_v56, %v333_v9 }
 0x13f   : > { %530 = vst [vmem:[%s1082_s25 + $0x80] sm:$0xff] %v498_v4  ;;  %v414_v12 = vadd.f32 %v1073_v56, %v413_v10  ;;  %v485_v13 = vmax.f32 %v339_v7, 0.0 }
 0x140   : > { %v501_v14 = vmax.f32 %v419_v8, 0.0  ;;  %v484_v15 = vmax.f32 %v334_v11, 0.0  ;;  %v728_v17 = vpop.f32.mrb[4].mxu0 }
 0x141   : > { %v500_v16 = vmax.f32 %v414_v12, 0.0  ;;  %v752_v18 = vpop.f32.mrb[4].mxu1  ;;  %517 = vst [vmem:[%s1082_s25 + $0x18] sm:$0xff] %v485_v13  ;;  %v349_v19 = vadd.f32 %v728_v17, %v1073_v56  ;;  %v343_v21 = vpop.f32.mrb[5].mxu0 }
 0x142   : > { %533 = vst [vmem:[%s1082_s25 + $0x98] sm:$0xff] %v501_v14  ;;  %v429_v20 = vadd.f32 %v752_v18, %v1073_v56  ;;  %v423_v22 = vpop.f32.mrb[5].mxu1  ;;  %516 = vst [vmem:[%s1082_s25 + $0x10] sm:$0xff] %v484_v15  ;;  %v344_v23 = vadd.f32 %v1073_v56, %v343_v21 }
 0x143   : > { %532 = vst [vmem:[%s1082_s25 + $0x90] sm:$0xff] %v500_v16  ;;  %v424_v24 = vadd.f32 %v1073_v56, %v423_v22  ;;  %v487_v25 = vmax.f32 %v349_v19, 0.0 }
 0x144   : > { %v503_v26 = vmax.f32 %v429_v20, 0.0  ;;  %v486_v27 = vmax.f32 %v344_v23, 0.0  ;;  %v731_v29 = vpop.f32.mrb[6].mxu0 }
 0x145   : > { %v502_v28 = vmax.f32 %v424_v24, 0.0  ;;  %v755_v30 = vpop.f32.mrb[6].mxu1  ;;  %519 = vst [vmem:[%s1082_s25 + $0x28] sm:$0xff] %v487_v25  ;;  %v359_v31 = vadd.f32 %v731_v29, %v1073_v56  ;;  %v353_v33 = vpop.f32.mrb[7].mxu0 }
 0x146   : > { %535 = vst [vmem:[%s1082_s25 + $0xa8] sm:$0xff] %v503_v26  ;;  %v439_v32 = vadd.f32 %v755_v30, %v1073_v56  ;;  %v433_v34 = vpop.f32.mrb[7].mxu1  ;;  %518 = vst [vmem:[%s1082_s25 + $0x20] sm:$0xff] %v486_v27  ;;  %v354_v35 = vadd.f32 %v1073_v56, %v353_v33 }
 0x147   : > { %534 = vst [vmem:[%s1082_s25 + $0xa0] sm:$0xff] %v502_v28  ;;  %v434_v36 = vadd.f32 %v1073_v56, %v433_v34  ;;  %v489_v37 = vmax.f32 %v359_v31, 0.0 }
 0x148   : > { %v505_v38 = vmax.f32 %v439_v32, 0.0  ;;  %v488_v39 = vmax.f32 %v354_v35, 0.0  ;;  %v734_v41 = vpop.f32.mrb[8].mxu0 }
 0x149   : > { %v504_v40 = vmax.f32 %v434_v36, 0.0  ;;  %v758_v42 = vpop.f32.mrb[8].mxu1  ;;  %521 = vst [vmem:[%s1082_s25 + $0x38] sm:$0xff] %v489_v37  ;;  %v369_v43 = vadd.f32 %v734_v41, %v1073_v56  ;;  %v363_v45 = vpop.f32.mrb[9].mxu0 }
 0x14a   : > { %537 = vst [vmem:[%s1082_s25 + $0xb8] sm:$0xff] %v505_v38  ;;  %v449_v44 = vadd.f32 %v758_v42, %v1073_v56  ;;  %v443_v46 = vpop.f32.mrb[9].mxu1  ;;  %520 = vst [vmem:[%s1082_s25 + $0x30] sm:$0xff] %v488_v39  ;;  %v364_v47 = vadd.f32 %v1073_v56, %v363_v45 }
 0x14b   : > { %536 = vst [vmem:[%s1082_s25 + $0xb0] sm:$0xff] %v504_v40  ;;  %v444_v48 = vadd.f32 %v1073_v56, %v443_v46  ;;  %v491_v49 = vmax.f32 %v369_v43, 0.0 }
 0x14c   : > { %v507_v50 = vmax.f32 %v449_v44, 0.0  ;;  %v490_v51 = vmax.f32 %v364_v47, 0.0  ;;  %v737_v53 = vpop.f32.mrb[10].mxu0 }
 0x14d   : > { %v506_v52 = vmax.f32 %v444_v48, 0.0  ;;  %v761_v54 = vpop.f32.mrb[10].mxu1  ;;  %523 = vst [vmem:[%s1082_s25 + $0x48] sm:$0xff] %v491_v49  ;;  %v379_v55 = vadd.f32 %v737_v53, %v1073_v56  ;;  %v373_v58 = vpop.f32.mrb[11].mxu0 }
 0x14e   : > { %539 = vst [vmem:[%s1082_s25 + $0xc8] sm:$0xff] %v507_v50  ;;  %v459_v57 = vadd.f32 %v761_v54, %v1073_v56  ;;  %v453_v59 = vpop.f32.mrb[11].mxu1  ;;  %522 = vst [vmem:[%s1082_s25 + $0x40] sm:$0xff] %v490_v51  ;;  %v374_v60 = vadd.f32 %v1073_v56, %v373_v58 }
 0x14f   : > { %538 = vst [vmem:[%s1082_s25 + $0xc0] sm:$0xff] %v506_v52  ;;  %v454_v61 = vadd.f32 %v1073_v56, %v453_v59  ;;  %v493_v62 = vmax.f32 %v379_v55, 0.0 }
 0x150   : > { %v509_v63 = vmax.f32 %v459_v57, 0.0  ;;  %v492_v0 = vmax.f32 %v374_v60, 0.0  ;;  %v740_v2 = vpop.f32.mrb[12].mxu0 }
 0x151   : > { %v508_v1 = vmax.f32 %v454_v61, 0.0  ;;  %v764_v3 = vpop.f32.mrb[12].mxu1  ;;  %525 = vst [vmem:[%s1082_s25 + $0x58] sm:$0xff] %v493_v62  ;;  %v389_v4 = vadd.f32 %v740_v2, %v1073_v56  ;;  %v383_v6 = vpop.f32.mrb[13].mxu0 }
 0x152   : > { %541 = vst [vmem:[%s1082_s25 + $0xd8] sm:$0xff] %v509_v63  ;;  %v469_v5 = vadd.f32 %v764_v3, %v1073_v56  ;;  %v463_v7 = vpop.f32.mrb[13].mxu1  ;;  %524 = vst [vmem:[%s1082_s25 + $0x50] sm:$0xff] %v492_v0  ;;  %v384_v8 = vadd.f32 %v1073_v56, %v383_v6 }
 0x153   : > { %540 = vst [vmem:[%s1082_s25 + $0xd0] sm:$0xff] %v508_v1  ;;  %v464_v9 = vadd.f32 %v1073_v56, %v463_v7  ;;  %v495_v10 = vmax.f32 %v389_v4, 0.0 }
 0x154   : > { %v511_v11 = vmax.f32 %v469_v5, 0.0  ;;  %v494_v12 = vmax.f32 %v384_v8, 0.0  ;;  %v743_v14 = vpop.f32.mrb[14].mxu0 }
 0x155   : > { %v510_v13 = vmax.f32 %v464_v9, 0.0  ;;  %v767_v15 = vpop.f32.mrb[14].mxu1  ;;  %527 = vst [vmem:[%s1082_s25 + $0x68] sm:$0xff] %v495_v10  ;;  %v399_v16 = vadd.f32 %v743_v14, %v1073_v56  ;;  %v393_v18 = vpop.f32.mrb[15].mxu0 }
 0x156   : > { %543 = vst [vmem:[%s1082_s25 + $0xe8] sm:$0xff] %v511_v11  ;;  %v479_v17 = vadd.f32 %v767_v15, %v1073_v56  ;;  %v473_v19 = vpop.f32.mrb[15].mxu1  ;;  %526 = vst [vmem:[%s1082_s25 + $0x60] sm:$0xff] %v494_v12  ;;  %v394_v20 = vadd.f32 %v1073_v56, %v393_v18 }
 0x157   : > { %542 = vst [vmem:[%s1082_s25 + $0xe0] sm:$0xff] %v510_v13  ;;  %v474_v21 = vadd.f32 %v1073_v56, %v473_v19  ;;  %v497_v22 = vmax.f32 %v399_v16, 0.0 }
 0x158   : > { %v513_v23 = vmax.f32 %v479_v17, 0.0  ;;  %v496_v24 = vmax.f32 %v394_v20, 0.0 }
 0x159   : > { %v512_v25 = vmax.f32 %v474_v21, 0.0  ;;  %529 = vst [vmem:[%s1082_s25 + $0x78] sm:$0xff] %v497_v22 }
 0x15a   : > { %545 = vst [vmem:[%s1082_s25 + $0xf8] sm:$0xff] %v513_v23  ;;  %528 = vst [vmem:[%s1082_s25 + $0x70] sm:$0xff] %v496_v24 }
 0x15b   : > { %544 = vst [vmem:[%s1082_s25 + $0xf0] sm:$0xff] %v512_v25 }
 0x15c PF: > { %s15_s12 = sadd.s32 1, %s917_s12  }
 0x15d   : > { %p12_p5 = scmp.ge.s32.totalorder %s15_s12, 4  }
 0x15f   :  { %14 = sbr.rel (!%p12_p5) target bundleno = 2 (0x2), region = 71 }
 0x166   :  { %568 = vsyncpa [#allocation3], 1 }
 0x167   :  { %570 = vsyncpa [#allocation3 + $0x1], 1 }
 0x168   :  { %571 = vsyncpa [#allocation5], 1 }

// kernel: bottleneck_forward.3
= control target key start
LH: loop header
LB: loop body
LE: loop exit
PB: predicated region body
PF: predicated region fallthrough
CT: control target
= control target key end

     0   :  { %s6778_s21 = smov 0   ;;  %s8803_s0 = inlined_call_operand.vmem [shape: f32[512,128], index: 0, kind: input, shape index: {}]   ;;  %s8804_s1 = inlined_call_operand.vmem [shape: f32[512,128], index: 1, kind: input, shape index: {}, may-alias: {1,6}]   ;;  %s8805_s2 = inlined_call_operand.vmem [shape: f32[3,3,128,128], index: 2, kind: input, shape index: {}]   ;;  %s8806_s3 = inlined_call_operand.vmem [shape: f32[1,128], index: 3, kind: input, shape index: {}]   ;;  %s8807_s4 = inlined_call_operand.vmem [shape: f32[128,128], index: 4, kind: input, shape index: {}]   ;;  %s8808_s5 = inlined_call_operand.vmem [shape: f32[1,128], index: 5, kind: input, shape index: {}]   ;;  %s8809_s6 = inlined_call_operand.vmem [shape: f32[512,128], index: 6, kind: output, shape index: {}, may-alias: {1,6}]  }
   0x1 LB: > { %s4508_s22 = sadd.s32 4294967295, %s6741_s21   ;;  %p4512_p0 = scmp.ge.s32.totalorder %s6741_s21, 1  ;;  %s6741_s21 = sphi %s6778_s21, %s16_s21  }
   0x2   : > { %p224_p1 = scmp.lt.s32.totalorder %s6741_s21, 3 }
   0x4   : > { %p225_p2 = pnand %p4512_p0, %p224_p1 }
   0x6   : > { %228 = sbr.rel (%p225_p2) target bundleno = 848 (0x350), region = 44 }
   0xd   : > { %v1016_v0 = vld [vmem:[%s8805_s2] sm:$0xff]  ;;  %v1017_v1 = vld [vmem:[%s8805_s2 + $0x8] sm:$0xff]  ;;  %s4513_s29 = sshll.u32 %s4508_s22, 5  ;;  %v309_v3 = vlaneseq  ;;  %v1018_v6 = vld [vmem:[%s8805_s2 + $0x10] sm:$0xff] }
   0xe   : > { %v4611_v2 = vld [vmem:[%s8805_s2 + $0x180] sm:$0xff]  ;;  %v6117_v4 = vpack.c.bf16 %v1017_v1, %v1016_v0  ;;  %v4612_v5 = vld [vmem:[%s8805_s2 + $0x188] sm:$0xff]  ;;  %v1019_v7 = vld [vmem:[%s8805_s2 + $0x18] sm:$0xff]  ;;  %p260_p3 = scmp.lt.s32.totalorder %s4513_s29, 63 }
   0xf   : > { %v6213_v8 = vpack.c.bf16 %v4612_v5, %v4611_v2  ;;  %v6121_v9 = vpack.c.bf16 %v1019_v7, %v1018_v6  ;;  %v4613_v10 = vld [vmem:[%s8805_s2 + $0x190] sm:$0xff]  ;;  %v4614_v11 = vld [vmem:[%s8805_s2 + $0x198] sm:$0xff]  ;;  %v1020_v12 = vld [vmem:[%s8805_s2 + $0x20] sm:$0xff]  ;;  %v6822_v17 = vshrl.u32 %v309_v3, 7 }
  0x10   : > { %6118 = vmatprep.subr.bf16.mxu0 %v6117_v4  ;;  %v6217_v13 = vpack.c.bf16 %v4614_v11, %v4613_v10  ;;  %v1021_v14 = vld [vmem:[%s8805_s2 + $0x28] sm:$0xff]  ;;  %v4615_v15 = vld [vmem:[%s8805_s2 + $0x1a0] sm:$0xff]  ;;  %s9070_s29 = smov (!%p260_p3, %s4513_s29), 63  ;;  %v1022_v20 = vld [vmem:[%s8805_s2 + $0x30] sm:$0xff] }
  0x11   : > { %v4616_v16 = vld [vmem:[%s8805_s2 + $0x1a8] sm:$0xff]  ;;  %6214 = vmatprep.subr.bf16.mxu1 %v6213_v8  ;;  %6120 = vmatpush3.bf16.msra.mxu0 %v6117_v4  ;;  %v6125_v18 = vpack.c.bf16 %v1021_v14, %v1020_v12  ;;  %s6824_s25 = sshll.u32 %s9070_s29, 3  ;;  %v1023_v21 = vld [vmem:[%s8805_s2 + $0x38] sm:$0xff]  ;;  %v4617_v22 = vld [vmem:[%s8805_s2 + $0x1b0] sm:$0xff]  ;;  %v346_v24 = vand.u32 15, %v6822_v17  ;;  %vm790_vm0 = vcmp.lt.s32.totalorder %v6822_v17, 1 }
  0x12   : > { %6216 = vmatpush3.bf16.msra.mxu1 %v6213_v8  ;;  %6122 = vmatprep.subr.bf16.mxu0 %v6121_v9  ;;  %v6221_v19 = vpack.c.bf16 %v4616_v16, %v4615_v15  ;;  %v4618_v23 = vld [vmem:[%s8805_s2 + $0x1b8] sm:$0xff]  ;;  %s6842_s12 = scalar_lea.vmem %s8803_s0, %s6824_s25  ;;  %v6129_v25 = vpack.c.bf16 %v1023_v21, %v1022_v20  ;;  %v1024_v27 = vld [vmem:[%s8805_s2 + $0x40] sm:$0xff]  ;;  %v1025_v28 = vld [vmem:[%s8805_s2 + $0x48] sm:$0xff]  ;;  %v312_v59 = vadd.s32 16, %v6822_v17  ;;  %v314_v2 = vadd.s32 32, %v6822_v17  ;;  %s8619_s9 = scalar_lea.vmem %s8804_s1, %s6824_s25 }
  0x13   : > { %6218 = vmatprep.subr.bf16.mxu1 %v6217_v13  ;;  %v6225_v26 = vpack.c.bf16 %v4618_v23, %v4617_v22  ;;  %v6852_v29 = vld [vmem:[%s6842_s12] sm:$0xff]  ;;  %v4620_v31 = vld [vmem:[%s8805_s2 + $0x1c8] sm:$0xff]  ;;  %v6861_v32 = vld [vmem:[%s6842_s12 + $0xf8] sm:$0xff]  ;;  %vm4835_vm1 = vcmp.ne.s32.totalorder %v346_v24, 0  ;;  %v6133_v35 = vpack.c.bf16 %v1025_v28, %v1024_v27  ;;  %v316_v11 = vadd.s32 48, %v6822_v17  ;;  %s8703_s14 = scalar_lea.vmem %s8809_s6, %s6824_s25 }
  0x14   : > { %v4619_v30 = vld [vmem:[%s8805_s2 + $0x1c0] sm:$0xff]  ;;  %v758_v33 = vrot.slane %v6852_v29, 7  ;;  %v789_v34 = vrot.slane %v6861_v32, 7  ;;  %v1026_v37 = vld [vmem:[%s8805_s2 + $0x50] sm:$0xff]  ;;  %v1027_v38 = vld [vmem:[%s8805_s2 + $0x58] sm:$0xff]  ;;  %v360_v3 = vand.u32 15, %v312_v59 }
  0x15   : > { %6124 = vmatpush3.bf16.msra.mxu0 %v6121_v9  ;;  %v6229_v36 = vpack.c.bf16 %v4620_v31, %v4619_v30  ;;  %v4621_v40 = vld [vmem:[%s8805_s2 + $0x1d0] sm:$0xff]  ;;  %v4622_v41 = vld [vmem:[%s8805_s2 + $0x1d8] sm:$0xff]  ;;  %v6137_v42 = vpack.c.bf16 %v1027_v38, %v1026_v37  ;;  %v1028_v44 = vld [vmem:[%s8805_s2 + $0x60] sm:$0xff]  ;;  %v374_v14 = vand.u32 15, %v314_v2  ;;  %v388_v28 = vand.u32 15, %v316_v11 }
  0x16   : > { %6220 = vmatpush3.bf16.msra.mxu1 %v6217_v13  ;;  %6126 = vmatprep.subr.bf16.mxu0 %v6125_v18  ;;  %v822_v39 = vsel %vm790_vm0, %v789_v34, %v758_v33  ;;  %v6233_v43 = vpack.c.bf16 %v4622_v41, %v4621_v40  ;;  %v1029_v45 = vld [vmem:[%s8805_s2 + $0x68] sm:$0xff]  ;;  %v4623_v46 = vld [vmem:[%s8805_s2 + $0x1e0] sm:$0xff]  ;;  %v1030_v50 = vld [vmem:[%s8805_s2 + $0x70] sm:$0xff]  ;;  %vm6962_vm2 = vcmp.ne.s32.totalorder %v360_v3, 0  ;;  %v318_v30 = vadd.s32 64, %v6822_v17 }
  0x17   : > { %6222 = vmatprep.subr.bf16.mxu1 %v6221_v19  ;;  %5367 = vmatprep.mubr.msk.f32.mxu0 %vm4835_vm1, %v822_v39  ;;  %v4624_v47 = vld [vmem:[%s8805_s2 + $0x1e8] sm:$0xff]  ;;  %v6141_v48 = vpack.c.bf16 %v1029_v45, %v1028_v44  ;;  %v1031_v51 = vld [vmem:[%s8805_s2 + $0x78] sm:$0xff]  ;;  %v4625_v52 = vld [vmem:[%s8805_s2 + $0x1f0] sm:$0xff]  ;;  %vm7000_vm3 = vcmp.ne.s32.totalorder %v374_v14, 0  ;;  %vm7050_vm4 = vcmp.ne.s32.totalorder %v388_v28, 0 }
  0x18   : > { %5598 = vmatprep.mubr.msk.f32.mxu1 %vm4835_vm1, %v822_v39  ;;  %v6237_v49 = vpack.c.bf16 %v4624_v47, %v4623_v46  ;;  %v4626_v53 = vld [vmem:[%s8805_s2 + $0x1f8] sm:$0xff]  ;;  %v6145_v54 = vpack.c.bf16 %v1031_v51, %v1030_v50  ;;  %v6909_v55 = vld [vmem:[%s6842_s12 + $0x8] sm:$0xff]  ;;  %v4549_v57 = vld [vmem:[%s8805_s2 + $0x80] sm:$0xff] }
  0x19   : > { %6128 = vmatpush3.bf16.msra.mxu0 %v6125_v18  ;;  %v6241_v56 = vpack.c.bf16 %v4626_v53, %v4625_v52  ;;  %v4550_v58 = vld [vmem:[%s8805_s2 + $0x88] sm:$0xff]  ;;  %v6919_v60 = vld [vmem:[%s6842_s12 + $0x10] sm:$0xff]  ;;  %v4659_v61 = vld [vmem:[%s8805_s2 + $0x200] sm:$0xff]  ;;  %v759_v63 = vrot.slane %v6909_v55, 7  ;;  %v402_v52 = vand.u32 15, %v318_v30 }
  0x1a   : > { %6224 = vmatpush3.bf16.msra.mxu1 %v6221_v19  ;;  %6130 = vmatprep.subr.bf16.mxu0 %v6129_v25  ;;  %v4660_v62 = vld [vmem:[%s8805_s2 + $0x208] sm:$0xff]  ;;  %v6149_v0 = vpack.c.bf16 %v4550_v58, %v4549_v57  ;;  %v6929_v1 = vld [vmem:[%s6842_s12 + $0x18] sm:$0xff]  ;;  %v760_v4 = vrot.slane %v6919_v60, 7  ;;  %v6934_v5 = vld [vmem:[%s6842_s12 + $0x20] sm:$0xff]  ;;  %v8992_v19 = vrot.slane %v6861_v32, 1 }
  0x1b   : > { %6226 = vmatprep.subr.bf16.mxu1 %v6225_v26  ;;  %v6245_v6 = vpack.c.bf16 %v4660_v62, %v4659_v61  ;;  %v4551_v7 = vld [vmem:[%s8805_s2 + $0x90] sm:$0xff]  ;;  %v4552_v8 = vld [vmem:[%s8805_s2 + $0x98] sm:$0xff]  ;;  %v821_v9 = vsel %vm790_vm0, %v758_v33, %v759_v63  ;;  %v761_v10 = vrot.slane %v6929_v1, 7  ;;  %v762_v15 = vrot.slane %v6934_v5, 7  ;;  %v6956_v16 = vld [vmem:[%s6842_s12 + $0x28] sm:$0xff] }
  0x1c   : > { %v4661_v12 = vld [vmem:[%s8805_s2 + $0x210] sm:$0xff]  ;;  %v4662_v13 = vld [vmem:[%s8805_s2 + $0x218] sm:$0xff]  ;;  %v6960_v18 = vsel %vm790_vm0, %v759_v63, %v760_v4  ;;  %v6153_v20 = vpack.c.bf16 %v4552_v8, %v4551_v7  ;;  %v4553_v23 = vld [vmem:[%s8805_s2 + $0xa0] sm:$0xff]  ;;  %v763_v27 = vrot.slane %v6956_v16, 7  ;;  %vm7091_vm5 = vcmp.ne.s32.totalorder %v402_v52, 0 }
  0x1d   : > { %6132 = vmatpush3.bf16.msra.mxu0 %v6129_v25  ;;  %v6967_v21 = vld [vmem:[%s6842_s12 + $0x30] sm:$0xff]  ;;  %v4554_v24 = vld [vmem:[%s8805_s2 + $0xa8] sm:$0xff]  ;;  %v6249_v25 = vpack.c.bf16 %v4662_v13, %v4661_v12  ;;  %v4663_v31 = vld [vmem:[%s8805_s2 + $0x220] sm:$0xff] }
  0x1e   : > { %6228 = vmatpush3.bf16.msra.mxu1 %v6225_v26  ;;  %6134 = vmatprep.subr.bf16.mxu0 %v6133_v35  ;;  %v6970_v22 = vld [vmem:[%s6842_s12 + $0xf0] sm:$0xff]  ;;  %v6980_v26 = vsel %vm790_vm0, %v760_v4, %v761_v10  ;;  %v4664_v33 = vld [vmem:[%s8805_s2 + $0x228] sm:$0xff]  ;;  %v764_v37 = vrot.slane %v6967_v21, 7  ;;  %v7006_v38 = vld [vmem:[%s6842_s12 + $0x38] sm:$0xff]  ;;  %v6157_v41 = vpack.c.bf16 %v4554_v24, %v4553_v23  ;;  %v7033_v46 = vsel %vm790_vm0, %v762_v15, %v763_v27 }
  0x1f   : > { %6230 = vmatprep.subr.bf16.mxu1 %v6229_v36  ;;  %v8810_v39 = vrot.slane %v6970_v22, 7  ;;  %v7010_v40 = vld [vmem:[%s6842_s12 + $0x40] sm:$0xff]  ;;  %v6253_v44 = vpack.c.bf16 %v4664_v33, %v4663_v31  ;;  %v765_v47 = vrot.slane %v7006_v38, 7  ;;  %v4558_v59 = vld [vmem:[%s8805_s2 + $0xc8] sm:$0xff]  ;;  %v4559_v12 = vld [vmem:[%s8805_s2 + $0xd0] sm:$0xff]  ;;  %v324_v33 = vadd.s32 112, %v6822_v17 }
  0x20   : > { %v7048_v50 = vsel %vm790_vm0, %v763_v27, %v764_v37  ;;  %v766_v53 = vrot.slane %v7010_v40, 7  ;;  %v4557_v58 = vld [vmem:[%s8805_s2 + $0xc0] sm:$0xff]  ;;  %v4668_v3 = vld [vmem:[%s8805_s2 + $0x248] sm:$0xff]  ;;  %v4560_v13 = vld [vmem:[%s8805_s2 + $0xd8] sm:$0xff] }
  0x21   : > { %6136 = vmatpush3.bf16.msra.mxu0 %v6133_v35  ;;  %v6998_v35 = vsel %vm790_vm0, %v761_v10, %v762_v15  ;;  %v7025_v45 = vsel %vm790_vm0, %v8810_v39, %v789_v34  ;;  %v4665_v34 = vld [vmem:[%s8805_s2 + $0x230] sm:$0xff]  ;;  %v7074_v62 = vsel %vm790_vm0, %v764_v37, %v765_v47  ;;  %v4667_v2 = vld [vmem:[%s8805_s2 + $0x240] sm:$0xff]  ;;  %v6165_v11 = vpack.c.bf16 %v4558_v59, %v4557_v58  ;;  %v7137_v31 = vld [vmem:[%s6842_s12 + $0x68] sm:$0xff] }
  0x22   : > { %6232 = vmatpush3.bf16.msra.mxu1 %v6229_v36  ;;  %6138 = vmatprep.subr.bf16.mxu0 %v6137_v42  ;;  %8882 = vst [vmem:[#allocation3_spill] sm:$0xff] %v7025_v45  ;;  %v7089_v4 = vsel %vm790_vm0, %v765_v47, %v766_v53  ;;  %v7100_v10 = vld [vmem:[%s6842_s12 + $0x60] sm:$0xff]  ;;  %v6261_v14 = vpack.c.bf16 %v4668_v3, %v4667_v2  ;;  %v4669_v24 = vld [vmem:[%s8805_s2 + $0x250] sm:$0xff]  ;;  %v4672_v52 = vld [vmem:[%s8805_s2 + $0x268] sm:$0xff] }
  0x23   : > { %6234 = vmatprep.subr.bf16.mxu1 %v6233_v43  ;;  %v770_v30 = vrot.slane %v7100_v10, 7  ;;  %v7141_v37 = vld [vmem:[%s6842_s12 + $0x70] sm:$0xff]  ;;  %v7178_v59 = vld [vmem:[%s6842_s12 + $0x78] sm:$0xff]  ;;  %v4782_v28 = vld [vmem:[%s8805_s2 + $0x3e8] sm:$0xff] }
  0x24   : > { %v772_v58 = vrot.slane %v7141_v37, 7  ;;  %v4563_v2 = vld [vmem:[%s8805_s2 + $0xf0] sm:$0xff]  ;;  %v4564_v3 = vld [vmem:[%s8805_s2 + $0xf8] sm:$0xff] }
  0x25   : > { %6140 = vmatpush3.bf16.msra.mxu0 %v6137_v42  ;;  %v4555_v42 = vld [vmem:[%s8805_s2 + $0xb0] sm:$0xff]  ;;  %v4776_v36 = vld [vmem:[%s8805_s2 + $0x3b8] sm:$0xff] }
  0x26   : > { %6236 = vmatpush3.bf16.msra.mxu1 %v6233_v43  ;;  %6142 = vmatprep.subr.bf16.mxu0 %v6141_v48  ;;  %v4556_v43 = vld [vmem:[%s8805_s2 + $0xb8] sm:$0xff]  ;;  %v4779_v51 = vld [vmem:[%s8805_s2 + $0x3d0] sm:$0xff] }
  0x27   : > { %6238 = vmatprep.subr.bf16.mxu1 %v6237_v49  ;;  %v6161_v57 = vpack.c.bf16 %v4556_v43, %v4555_v42  ;;  %v4561_v42 = vld [vmem:[%s8805_s2 + $0xe0] sm:$0xff]  ;;  %v4562_v43 = vld [vmem:[%s8805_s2 + $0xe8] sm:$0xff] }
  0x29   : > { %6144 = vmatpush3.bf16.msra.mxu0 %v6141_v48  ;;  %v320_v48 = vadd.s32 80, %v6822_v17 }
  0x2a   : > { %6240 = vmatpush3.bf16.msra.mxu1 %v6237_v49  ;;  %6146 = vmatprep.subr.bf16.mxu0 %v6145_v54  ;;  %v4666_v49 = vld [vmem:[%s8805_s2 + $0x238] sm:$0xff] }
  0x2b   : > { %6242 = vmatprep.subr.bf16.mxu1 %v6241_v56  ;;  %v6257_v61 = vpack.c.bf16 %v4666_v49, %v4665_v34  ;;  %v416_v7 = vand.u32 15, %v320_v48  ;;  %v8890_v48 = vmov 0  ;;  %v771_v34 = vrot.slane %v7137_v31, 7  ;;  %v4671_v49 = vld [vmem:[%s8805_s2 + $0x260] sm:$0xff] }
  0x2d   : > { %6148 = vmatpush3.bf16.msra.mxu0 %v6145_v54  ;;  %v7056_v54 = vld [vmem:[%s6842_s12 + $0x48] sm:$0xff]  ;;  %vm7131_vm6 = vcmp.ne.s32.totalorder %v416_v7, 0  ;;  %v6269_v7 = vpack.c.bf16 %v4672_v52, %v4671_v49 }
  0x2e   : > { %6244 = vmatpush3.bf16.msra.mxu1 %v6241_v56  ;;  %6150 = vmatprep.subr.bf16.mxu0 %v6149_v0  ;;  %v7059_v56 = vld [vmem:[%s6842_s12 + $0x50] sm:$0xff]  ;;  %v767_v63 = vrot.slane %v7056_v54, 7 }
  0x2f   : > { %6246 = vmatprep.subr.bf16.mxu1 %v6245_v6  ;;  %v768_v8 = vrot.slane %v7059_v56, 7 }
  0x30   : > { %5368 = vmatmul.mubr.f32.vlgmr.msra.gmra.mrb[0].mxu0 %v821_v9  ;;  %v7115_v15 = vsel %vm790_vm0, %v766_v53, %v767_v63 }
  0x31   : > { %5599 = vmatmul.mubr.f32.vlgmr.msra.gmra.mrb[0].mxu1 %v821_v9  ;;  %6152 = vmatpush3.bf16.msra.mxu0 %v6149_v0  ;;  %v322_v0 = vadd.s32 96, %v6822_v17  ;;  %v7097_v9 = vld [vmem:[%s6842_s12 + $0x58] sm:$0xff]  ;;  %v7129_v27 = vsel %vm790_vm0, %v767_v63, %v768_v8  ;;  %v326_v63 = vadd.s32 128, %v6822_v17 }
  0x32   : > { %5370 = vmatprep.mubr.msk.f32.mxu0 %vm6962_vm2, %v6960_v18  ;;  %5601 = vmatprep.mubr.msk.f32.mxu1 %vm6962_vm2, %v6960_v18 }
  0x33   : > { %6154 = vmatprep.subr.bf16.mxu0 %v6153_v20  ;;  %6248 = vmatpush3.bf16.msra.mxu1 %v6245_v6  ;;  %v430_v23 = vand.u32 15, %v322_v0  ;;  %v6173_v0 = vpack.c.bf16 %v4562_v43, %v4561_v42  ;;  %v6177_v42 = vpack.c.bf16 %v4564_v3, %v4563_v2  ;;  %v4565_v43 = vld [vmem:[%s8805_s2 + $0x100] sm:$0xff] }
  0x34   : > { %5371 = vmatmul.mubr.f32.gmra.mrb[2].mxu0 %v6980_v26  ;;  %6250 = vmatprep.subr.bf16.mxu1 %v6249_v25 }
  0x35   : > { %5602 = vmatmul.mubr.f32.gmra.mrb[2].mxu1 %v6980_v26  ;;  %5373 = vmatprep.mubr.msk.f32.mxu0 %vm7000_vm3, %v6998_v35  ;;  %vm7158_vm7 = vcmp.ne.s32.totalorder %v430_v23, 0  ;;  %v8896_v23 = vmov 0 }
  0x36   : > { %5604 = vmatprep.mubr.msk.f32.mxu1 %vm7000_vm3, %v6998_v35  ;;  %6156 = vmatpush3.bf16.msra.mxu0 %v6153_v20  ;;  %v769_v20 = vrot.slane %v7097_v9, 7  ;;  %v8891_v48 = vsel %vm7158_vm7, 4294967295, %v8890_v48 }
  0x37   : > { %6158 = vmatprep.subr.bf16.mxu0 %v6157_v41  ;;  %6252 = vmatpush3.bf16.msra.mxu1 %v6249_v25  ;;  %v4670_v25 = vld [vmem:[%s8805_s2 + $0x258] sm:$0xff]  ;;  %8892 = vst [vmem:[#allocation5_spill] sm:$0xff] %v8891_v48 }
  0x38   : > { %5374 = vmatmul.mubr.f32.gmra.mrb[4].mxu0 %v7033_v46  ;;  %6254 = vmatprep.subr.bf16.mxu1 %v6253_v44  ;;  %v7156_v47 = vsel %vm790_vm0, %v768_v8, %v769_v20  ;;  %v7174_v53 = vsel %vm790_vm0, %v769_v20, %v770_v30  ;;  %v7197_v8 = vsel %vm790_vm0, %v770_v30, %v771_v34  ;;  %v328_v30 = vadd.s32 144, %v6822_v17 }
  0x39   : > { %5605 = vmatmul.mubr.f32.gmra.mrb[4].mxu1 %v7033_v46  ;;  %5376 = vmatprep.mubr.msk.f32.mxu0 %vm7050_vm4, %v7048_v50  ;;  %8889 = vst [vmem:[#allocation4_spill] sm:$0xff] %v7156_v47  ;;  %8893 = vst [vmem:[#allocation6_spill] sm:$0xff] %v7174_v53  ;;  %v7212_v20 = vsel %vm790_vm0, %v771_v34, %v772_v58  ;;  %v4566_v34 = vld [vmem:[%s8805_s2 + $0x108] sm:$0xff] }
  0x3a   : > { %5607 = vmatprep.mubr.msk.f32.mxu1 %vm7050_vm4, %v7048_v50  ;;  %6160 = vmatpush3.bf16.msra.mxu0 %v6157_v41  ;;  %v6169_v41 = vpack.c.bf16 %v4560_v13, %v4559_v12  ;;  %8894 = vst [vmem:[#allocation7_spill] sm:$0xff] %v7197_v8  ;;  %v4673_v13 = vld [vmem:[%s8805_s2 + $0x270] sm:$0xff]  ;;  %8895 = vst [vmem:[#allocation8_spill] sm:$0xff] %v7212_v20  ;;  %v472_v2 = vand.u32 15, %v328_v30  ;;  %v7266_v39 = vpack.c.bf16 %v4566_v34, %v4565_v43  ;;  %v8906_v34 = vmov 0 }
  0x3b   : > { %6162 = vmatprep.subr.bf16.mxu0 %v6161_v57  ;;  %6256 = vmatpush3.bf16.msra.mxu1 %v6253_v44  ;;  %v6265_v44 = vpack.c.bf16 %v4670_v25, %v4669_v24  ;;  %v458_v24 = vand.u32 15, %v326_v63  ;;  %v7219_v25 = vld [vmem:[%s6842_s12 + $0x88] sm:$0xff] }
  0x3c   : > { %5377 = vmatmul.mubr.f32.gmra.mrb[6].mxu0 %v7074_v62  ;;  %6258 = vmatprep.subr.bf16.mxu1 %v6257_v61  ;;  %v775_v52 = vrot.slane %v7219_v25, 7  ;;  %v4676_v63 = vld [vmem:[%s8805_s2 + $0x288] sm:$0xff]  ;;  %vm7288_vm10 = vcmp.ne.s32.totalorder %v472_v2, 0  ;;  %v8911_v2 = vmov 0 }
  0x3d   : > { %5608 = vmatmul.mubr.f32.gmra.mrb[6].mxu1 %v7074_v62  ;;  %5379 = vmatprep.mubr.msk.f32.mxu0 %vm7091_vm5, %v7089_v4  ;;  %vm7254_vm9 = vcmp.ne.s32.totalorder %v458_v24, 0  ;;  %v8907_v34 = vsel %vm7288_vm10, 4294967295, %v8906_v34 }
  0x3e   : > { %5610 = vmatprep.mubr.msk.f32.mxu1 %vm7091_vm5, %v7089_v4  ;;  %6164 = vmatpush3.bf16.msra.mxu0 %v6161_v57  ;;  %v444_v57 = vand.u32 15, %v324_v33  ;;  %v7223_v33 = vld [vmem:[%s6842_s12 + $0x90] sm:$0xff]  ;;  %8908 = vst [vmem:[#allocation15_spill] sm:$0xff] %v8907_v34 }
  0x3f   : > { %6166 = vmatprep.subr.bf16.mxu0 %v6165_v11  ;;  %6260 = vmatpush3.bf16.msra.mxu1 %v6257_v61  ;;  %v7181_v61 = vld [vmem:[%s6842_s12 + $0x80] sm:$0xff]  ;;  %v776_v3 = vrot.slane %v7223_v33, 7 }
  0x40   : > { %5380 = vmatmul.mubr.f32.gmra.mrb[8].mxu0 %v7115_v15  ;;  %6262 = vmatprep.subr.bf16.mxu1 %v6261_v14  ;;  %v774_v12 = vrot.slane %v7181_v61, 7  ;;  %vm7214_vm8 = vcmp.ne.s32.totalorder %v444_v57, 0  ;;  %v4675_v57 = vld [vmem:[%s8805_s2 + $0x280] sm:$0xff]  ;;  %v8996_v6 = vld [vmem:[#allocation4_spill] sm:$0xff] }
  0x41   : > { %5611 = vmatmul.mubr.f32.gmra.mrb[8].mxu1 %v7115_v15  ;;  %5382 = vmatprep.mubr.msk.f32.mxu0 %vm7131_vm6, %v7129_v27  ;;  %v8897_v23 = vsel %vm7214_vm8, 4294967295, %v8896_v23  ;;  %v7269_v24 = vpack.c.bf16 %v4676_v63, %v4675_v57  ;;  %v7286_v43 = vsel %vm790_vm0, %v775_v52, %v776_v3  ;;  %v7293_v63 = vld [vmem:[%s6842_s12 + $0xa8] sm:$0xff] }
  0x42   : > { %5613 = vmatprep.mubr.msk.f32.mxu1 %vm7131_vm6, %v7129_v27  ;;  %6168 = vmatpush3.bf16.msra.mxu0 %v6165_v11  ;;  %v773_v11 = vrot.slane %v7178_v59, 7  ;;  %8898 = vst [vmem:[#allocation9_spill] sm:$0xff] %v8897_v23  ;;  %8905 = vst [vmem:[#allocation14_spill] sm:$0xff] %v7286_v43  ;;  %v336_v23 = vadd.s32 208, %v6822_v17 }
  0x43   : > { %6170 = vmatprep.subr.bf16.mxu0 %v6169_v41  ;;  %6264 = vmatpush3.bf16.msra.mxu1 %v6261_v14  ;;  %v4674_v14 = vld [vmem:[%s8805_s2 + $0x278] sm:$0xff] }
  0x44   : > { %5383 = vmatmul.mubr.f32.gmra.mrb[10].mxu0 %v7156_v47  ;;  %6266 = vmatprep.subr.bf16.mxu1 %v6265_v44  ;;  %v6273_v49 = vpack.c.bf16 %v4674_v14, %v4673_v13  ;;  %v7263_v13 = vld [vmem:[%s6842_s12 + $0xa0] sm:$0xff]  ;;  %v330_v14 = vadd.s32 160, %v6822_v17 }
  0x45   : > { %5614 = vmatmul.mubr.f32.gmra.mrb[10].mxu1 %v7156_v47  ;;  %5385 = vmatprep.mubr.msk.f32.mxu0 %vm7158_vm7, %v7174_v53  ;;  %v778_v30 = vrot.slane %v7263_v13, 7  ;;  %v4789_v47 = vld [vmem:[%s8805_s2 + $0x420] sm:$0xff] }
  0x46   : > { %5616 = vmatprep.mubr.msk.f32.mxu1 %vm7158_vm7, %v7174_v53  ;;  %6172 = vmatpush3.bf16.msra.mxu0 %v6169_v41  ;;  %v7238_v41 = vsel %vm790_vm0, %v772_v58, %v773_v11  ;;  %v8901_v58 = vmov 0  ;;  %v486_v57 = vand.u32 15, %v330_v14  ;;  %v7411_v53 = vld [vmem:[%s6842_s12 + $0xe8] sm:$0xff] }
  0x47   : > { %6174 = vmatprep.subr.bf16.mxu0 %v6173_v0  ;;  %6268 = vmatpush3.bf16.msra.mxu1 %v6265_v44  ;;  %8899 = vst [vmem:[#allocation10_spill] sm:$0xff] %v7238_v41  ;;  %v7242_v44 = vsel %vm790_vm0, %v773_v11, %v774_v12  ;;  %v8902_v58 = vsel %vm7254_vm9, 4294967295, %v8901_v58  ;;  %v7260_v11 = vld [vmem:[%s6842_s12 + $0x98] sm:$0xff] }
  0x48   : > { %5386 = vmatmul.mubr.f32.gmra.mrb[12].mxu0 %v7197_v8  ;;  %6270 = vmatprep.subr.bf16.mxu1 %v6269_v7  ;;  %8900 = vst [vmem:[#allocation11_spill] sm:$0xff] %v7242_v44  ;;  %8903 = vst [vmem:[#allocation12_spill] sm:$0xff] %v8902_v58  ;;  %vm7318_vm11 = vcmp.ne.s32.totalorder %v486_v57, 0  ;;  %v7327_v58 = vld [vmem:[%s6842_s12 + $0xc0] sm:$0xff] }
  0x49   : > { %5617 = vmatmul.mubr.f32.gmra.mrb[12].mxu1 %v7197_v8  ;;  %5388 = vmatprep.mubr.msk.f32.mxu0 %vm7214_vm8, %v7212_v20  ;;  %v8912_v2 = vsel %vm7318_vm11, 4294967295, %v8911_v2  ;;  %v782_v34 = vrot.slane %v7327_v58, 7  ;;  %v338_v8 = vadd.s32 224, %v6822_v17 }
  0x4a   : > { %5619 = vmatprep.mubr.msk.f32.mxu1 %vm7214_vm8, %v7212_v20  ;;  %6176 = vmatpush3.bf16.msra.mxu0 %v6173_v0  ;;  %v7277_v0 = vsel %vm790_vm0, %v774_v12, %v775_v52  ;;  %v332_v12 = vadd.s32 176, %v6822_v17  ;;  %8913 = vst [vmem:[#allocation18_spill] sm:$0xff] %v8912_v2  ;;  %v7357_v20 = vld [vmem:[%s6842_s12 + $0xd0] sm:$0xff]  ;;  %v528_v2 = vand.u32 15, %v336_v23 }
  0x4b   : > { %6178 = vmatprep.subr.bf16.mxu0 %v6177_v42  ;;  %6272 = vmatpush3.bf16.msra.mxu1 %v6269_v7  ;;  %8904 = vst [vmem:[#allocation13_spill] sm:$0xff] %v7277_v0  ;;  %v777_v7 = vrot.slane %v7260_v11, 7 }
  0x4c   : > { %5389 = vmatmul.mubr.f32.gmra.mrb[14].mxu0 %v7238_v41  ;;  %6274 = vmatprep.subr.bf16.mxu1 %v6273_v49  ;;  %v500_v14 = vand.u32 15, %v332_v12  ;;  %vm7405_vm14 = vcmp.ne.s32.totalorder %v528_v2, 0 }
  0x4d   : > { %5620 = vmatmul.mubr.f32.gmra.mrb[14].mxu1 %v7238_v41  ;;  %5391 = vmatprep.mubr.msk.f32.mxu0 %vm7254_vm9, %v7242_v44  ;;  %v7297_v41 = vld [vmem:[%s6842_s12 + $0xb0] sm:$0xff]  ;;  %v7308_v52 = vsel %vm790_vm0, %v776_v3, %v777_v7  ;;  %v7324_v3 = vld [vmem:[%s6842_s12 + $0xb8] sm:$0xff] }
  0x4e   : > { %5622 = vmatprep.mubr.msk.f32.mxu1 %vm7254_vm9, %v7242_v44  ;;  %6180 = vmatpush3.bf16.msra.mxu0 %v6177_v42  ;;  %8909 = vst [vmem:[#allocation16_spill] sm:$0xff] %v7308_v52  ;;  %v7312_v42 = vsel %vm790_vm0, %v777_v7, %v778_v30  ;;  %v334_v7 = vadd.s32 192, %v6822_v17  ;;  %v781_v12 = vrot.slane %v7324_v3, 7  ;;  %vm7348_vm12 = vcmp.ne.s32.totalorder %v500_v14, 0 }
  0x4f   : > { %6182 = vmatprep.subr.bf16.mxu0 %v7266_v39  ;;  %6276 = vmatpush3.bf16.msra.mxu1 %v6273_v49  ;;  %8910 = vst [vmem:[#allocation17_spill] sm:$0xff] %v7312_v42  ;;  %v779_v49 = vrot.slane %v7293_v63, 7 }
  0x50   : > { %5392 = vmatmul.mubr.f32.gmra.mrb[16].mxu0 %v7277_v0  ;;  %6278 = vmatprep.subr.bf16.mxu1 %v7269_v24  ;;  %v514_v44 = vand.u32 15, %v334_v7  ;;  %v7370_v14 = vsel %vm790_vm0, %v781_v12, %v782_v34 }
  0x51   : > { %5623 = vmatmul.mubr.f32.gmra.mrb[16].mxu1 %v7277_v0  ;;  %5394 = vmatprep.mubr.msk.f32.mxu0 %vm7288_vm10, %v7286_v43  ;;  %v780_v0 = vrot.slane %v7297_v41, 7  ;;  %v7337_v57 = vsel %vm790_vm0, %v778_v30, %v779_v49  ;;  %v7353_v30 = vld [vmem:[%s6842_s12 + $0xc8] sm:$0xff]  ;;  %8920 = vst [vmem:[#allocation23_spill] sm:$0xff] %v7370_v14 }
  0x52   : > { %5625 = vmatprep.mubr.msk.f32.mxu1 %vm7288_vm10, %v7286_v43  ;;  %8914 = vst [vmem:[#allocation19_spill] sm:$0xff] %v7337_v57  ;;  %v783_v7 = vrot.slane %v7353_v30, 7  ;;  %vm7376_vm13 = vcmp.ne.s32.totalorder %v514_v44, 0 }
  0x53   : > { %v7346_v43 = vsel %vm790_vm0, %v779_v49, %v780_v0  ;;  %v7366_v49 = vsel %vm790_vm0, %v780_v0, %v781_v12  ;;  %v7382_v0 = vld [vmem:[%s6842_s12 + $0xd8] sm:$0xff]  ;;  %v7386_v12 = vld [vmem:[%s6842_s12 + $0xe0] sm:$0xff] }
  0x54   : > { %5395 = vmatmul.mubr.f32.gmra.mrb[18].mxu0 %v7308_v52  ;;  %8915 = vst [vmem:[#allocation20_spill] sm:$0xff] %v7346_v43  ;;  %8919 = vst [vmem:[#allocation22_spill] sm:$0xff] %v7366_v49  ;;  %v7395_v44 = vsel %vm790_vm0, %v782_v34, %v783_v7  ;;  %v785_v23 = vrot.slane %v7382_v0, 7  ;;  %v786_v48 = vrot.slane %v7386_v12, 7  ;;  %v340_v34 = vadd.s32 240, %v6822_v17 }
  0x55   : > { %5626 = vmatmul.mubr.f32.gmra.mrb[18].mxu1 %v7308_v52  ;;  %5397 = vmatprep.mubr.msk.f32.mxu0 %vm7318_vm11, %v7312_v42  ;;  %v8916_v52 = vmov 0  ;;  %8924 = vst [vmem:[#allocation25_spill] sm:$0xff] %v7395_v44 }
  0x56   : > { %5628 = vmatprep.mubr.msk.f32.mxu1 %vm7318_vm11, %v7312_v42  ;;  %v8917_v52 = vsel %vm7348_vm12, 4294967295, %v8916_v52  ;;  %v784_v42 = vrot.slane %v7357_v20, 7 }
  0x57   : > { %8918 = vst [vmem:[#allocation21_spill] sm:$0xff] %v8917_v52 }
  0x58   : > { %5398 = vmatmul.mubr.f32.gmra.mrb[20].mxu0 %v7337_v57  ;;  %v7403_v52 = vsel %vm790_vm0, %v783_v7, %v784_v42  ;;  %v7421_v2 = vsel %vm790_vm0, %v784_v42, %v785_v23  ;;  %v7429_v7 = vsel %vm790_vm0, %v785_v23, %v786_v48 }
  0x59   : > { %5629 = vmatmul.mubr.f32.gmra.mrb[20].mxu1 %v7337_v57  ;;  %5400 = vmatprep.mubr.msk.f32.mxu0 %vm7348_vm12, %v7346_v43  ;;  %v8921_v57 = vmov 0  ;;  %8925 = vst [vmem:[#allocation26_spill] sm:$0xff] %v7403_v52  ;;  %8929 = vst [vmem:[#allocation28_spill] sm:$0xff] %v7421_v2 }
  0x5a   : > { %5631 = vmatprep.mubr.msk.f32.mxu1 %vm7348_vm12, %v7346_v43  ;;  %v8922_v57 = vsel %vm7376_vm13, 4294967295, %v8921_v57  ;;  %v542_v43 = vand.u32 15, %v338_v8  ;;  %v787_v8 = vrot.slane %v7411_v53, 7  ;;  %8930 = vst [vmem:[#allocation29_spill] sm:$0xff] %v7429_v7 }
  0x5b   : > { %8923 = vst [vmem:[#allocation24_spill] sm:$0xff] %v8922_v57  ;;  %v556_v57 = vand.u32 15, %v340_v34  ;;  %v8937_v34 = vmov 0 }
  0x5c   : > { %5401 = vmatmul.mubr.f32.gmra.mrb[22].mxu0 %v7366_v49  ;;  %vm7431_vm15 = vcmp.ne.s32.totalorder %v542_v43, 0  ;;  %v7442_v42 = vsel %vm790_vm0, %v786_v48, %v787_v8  ;;  %v8935_v43 = vrot.slane %v6970_v22, 7  ;;  %v4567_v48 = vld [vmem:[%s8805_s2 + $0x110] sm:$0xff] }
  0x5d   : > { %5632 = vmatmul.mubr.f32.gmra.mrb[22].mxu1 %v7366_v49  ;;  %5403 = vmatprep.mubr.msk.f32.mxu0 %vm7376_vm13, %v7370_v14  ;;  %v8926_v49 = vmov 0  ;;  %8934 = vst [vmem:[#allocation31_spill] sm:$0xff] %v7442_v42  ;;  %vm7453_vm1 = vcmp.ne.s32.totalorder %v556_v57, 0  ;;  %v8835_v57 = vrot.slane %v6861_v32, 1 }
  0x5e   : > { %5634 = vmatprep.mubr.msk.f32.mxu1 %vm7376_vm13, %v7370_v14  ;;  %v8927_v49 = vsel %vm7405_vm14, 4294967295, %v8926_v49  ;;  %v7451_v23 = vsel %vm790_vm0, %v787_v8, %v8935_v43  ;;  %v8938_v34 = vsel %vm7453_vm1, 4294967295, %v8937_v34  ;;  %v8836_v8 = vrot.slane %v6852_v29, 1 }
  0x5f   : > { %8928 = vst [vmem:[#allocation27_spill] sm:$0xff] %v8927_v49  ;;  %8936 = vst [vmem:[#allocation32_spill] sm:$0xff] %v7451_v23  ;;  %vm8849_vm0 = vcmp.lt.s32.totalorder %v6822_v17, 7 }
  0x60   : > { %5404 = vmatmul.mubr.f32.gmra.mrb[24].mxu0 %v7395_v44  ;;  %8939 = vst [vmem:[#allocation33_spill] sm:$0xff] %v8938_v34  ;;  %v4570_v34 = vld [vmem:[%s8805_s2 + $0x128] sm:$0xff] }
  0x61   : > { %5635 = vmatmul.mubr.f32.gmra.mrb[24].mxu1 %v7395_v44  ;;  %5406 = vmatprep.mubr.msk.f32.mxu0 %vm7405_vm14, %v7403_v52  ;;  %v8931_v44 = vmov 0 }
  0x62   : > { %5637 = vmatprep.mubr.msk.f32.mxu1 %vm7405_vm14, %v7403_v52  ;;  %v8932_v44 = vsel %vm7431_vm15, 4294967295, %v8931_v44  ;;  %v894_v52 = vrot.slane %v7006_v38, 1 }
  0x63   : > { %8933 = vst [vmem:[#allocation30_spill] sm:$0xff] %v8932_v44  ;;  %v4568_v44 = vld [vmem:[%s8805_s2 + $0x118] sm:$0xff] }
  0x64   : > { %5407 = vmatmul.mubr.f32.gmra.mrb[26].mxu0 %v7421_v2  ;;  %v6185_v43 = vpack.c.bf16 %v4568_v44, %v4567_v48  ;;  %v4677_v44 = vld [vmem:[%s8805_s2 + $0x290] sm:$0xff]  ;;  %v4678_v48 = vld [vmem:[%s8805_s2 + $0x298] sm:$0xff] }
  0x65   : > { %5638 = vmatmul.mubr.f32.gmra.mrb[26].mxu1 %v7421_v2  ;;  %5409 = vmatprep.mubr.msk.f32.mxu0 %vm7431_vm15, %v7429_v7 }
  0x66   : > { %5640 = vmatprep.mubr.msk.f32.mxu1 %vm7431_vm15, %v7429_v7  ;;  %v4569_v7 = vld [vmem:[%s8805_s2 + $0x120] sm:$0xff] }
  0x68   : > { %5410 = vmatmul.mubr.f32.gmra.mrb[28].mxu0 %v7442_v42 }
  0x69   : > { %5641 = vmatmul.mubr.f32.gmra.mrb[28].mxu1 %v7442_v42  ;;  %5444 = vmatprep.mubr.f32.mxu0 %v6852_v29  ;;  %v7478_v42 = vsel %vm8849_vm0, %v8835_v57, %v8836_v8  ;;  %v6189_v57 = vpack.c.bf16 %v4570_v34, %v4569_v7  ;;  %v4572_v8 = vld [vmem:[%s8805_s2 + $0x138] sm:$0xff]  ;;  %v4680_v7 = vld [vmem:[%s8805_s2 + $0x2a8] sm:$0xff] }
  0x6a   : > { %5643 = vmatprep.mubr.msk.f32.mxu1 %vm7453_vm1, %v7451_v23  ;;  %v4679_v23 = vld [vmem:[%s8805_s2 + $0x2a0] sm:$0xff] }
  0x6b   : > { %v6285_v2 = vpack.c.bf16 %v4680_v7, %v4679_v23  ;;  %v4575_v23 = vld [vmem:[%s8805_s2 + $0x150] sm:$0xff] }
  0x6c   : > { %5445 = vmatmul.mubr.f32.vlgmr.msra.gmra.mrb[0].mxu0 %v6909_v55 }
  0x6d   : > { %5644 = vmatmul.mubr.f32.gmra.mrb[30].mxu1 %v7025_v45  ;;  %6184 = vmatpush3.bf16.msra.mxu0 %v7266_v39  ;;  %v4571_v39 = vld [vmem:[%s8805_s2 + $0x130] sm:$0xff]  ;;  %v6281_v45 = vpack.c.bf16 %v4678_v48, %v4677_v44  ;;  %v4573_v44 = vld [vmem:[%s8805_s2 + $0x140] sm:$0xff]  ;;  %v4574_v48 = vld [vmem:[%s8805_s2 + $0x148] sm:$0xff] }
  0x6e   : > { %5447 = vmatprep.mubr.f32.mxu0 %v6919_v60  ;;  %5678 = vmatprep.mubr.f32.mxu1 %v6852_v29  ;;  %v6193_v34 = vpack.c.bf16 %v4572_v8, %v4571_v39  ;;  %v4682_v8 = vld [vmem:[%s8805_s2 + $0x2b8] sm:$0xff] }
  0x6f   : > { %6186 = vmatprep.subr.bf16.mxu0 %v6185_v43  ;;  %v4576_v39 = vld [vmem:[%s8805_s2 + $0x158] sm:$0xff] }
  0x70   : > { %5448 = vmatmul.mubr.f32.gmra.mrb[2].mxu0 %v6929_v1 }
  0x71   : > { %5679 = vmatmul.mubr.f32.vlgmr.msra.gmra.mrb[0].mxu1 %v6909_v55  ;;  %5450 = vmatprep.mubr.f32.mxu0 %v6934_v5 }
  0x72   : > { %5681 = vmatprep.mubr.f32.mxu1 %v6919_v60  ;;  %6188 = vmatpush3.bf16.msra.mxu0 %v6185_v43  ;;  %v6197_v43 = vpack.c.bf16 %v4574_v48, %v4573_v44  ;;  %v6201_v44 = vpack.c.bf16 %v4576_v39, %v4575_v23  ;;  %v4577_v48 = vld [vmem:[%s8805_s2 + $0x160] sm:$0xff]  ;;  %v4579_v39 = vld [vmem:[%s8805_s2 + $0x170] sm:$0xff] }
  0x73   : > { %6190 = vmatprep.subr.bf16.mxu0 %v6189_v57  ;;  %6280 = vmatpush3.bf16.msra.mxu1 %v7269_v24  ;;  %v4681_v24 = vld [vmem:[%s8805_s2 + $0x2b0] sm:$0xff] }
  0x74   : > { %5451 = vmatmul.mubr.f32.gmra.mrb[4].mxu0 %v6956_v16  ;;  %6282 = vmatprep.subr.bf16.mxu1 %v6281_v45  ;;  %v6289_v7 = vpack.c.bf16 %v4682_v8, %v4681_v24  ;;  %v4578_v24 = vld [vmem:[%s8805_s2 + $0x168] sm:$0xff] }
  0x75   : > { %5682 = vmatmul.mubr.f32.gmra.mrb[2].mxu1 %v6929_v1  ;;  %5453 = vmatprep.mubr.f32.mxu0 %v6967_v21  ;;  %v6205_v23 = vpack.c.bf16 %v4578_v24, %v4577_v48 }
  0x76   : > { %5684 = vmatprep.mubr.f32.mxu1 %v6934_v5  ;;  %6192 = vmatpush3.bf16.msra.mxu0 %v6189_v57  ;;  %v4684_v57 = vld [vmem:[%s8805_s2 + $0x2c8] sm:$0xff] }
  0x77   : > { %6194 = vmatprep.subr.bf16.mxu0 %v6193_v34  ;;  %6284 = vmatpush3.bf16.msra.mxu1 %v6281_v45  ;;  %v4683_v45 = vld [vmem:[%s8805_s2 + $0x2c0] sm:$0xff] }
  0x78   : > { %5454 = vmatmul.mubr.f32.gmra.mrb[6].mxu0 %v7006_v38  ;;  %6286 = vmatprep.subr.bf16.mxu1 %v6285_v2  ;;  %v6293_v8 = vpack.c.bf16 %v4684_v57, %v4683_v45  ;;  %v4580_v45 = vld [vmem:[%s8805_s2 + $0x178] sm:$0xff] }
  0x79   : > { %5685 = vmatmul.mubr.f32.gmra.mrb[4].mxu1 %v6956_v16  ;;  %5456 = vmatprep.mubr.f32.mxu0 %v7010_v40  ;;  %v6209_v48 = vpack.c.bf16 %v4580_v45, %v4579_v39 }
  0x7a   : > { %5687 = vmatprep.mubr.f32.mxu1 %v6967_v21  ;;  %6196 = vmatpush3.bf16.msra.mxu0 %v6193_v34  ;;  %v4686_v34 = vld [vmem:[%s8805_s2 + $0x2d8] sm:$0xff] }
  0x7b   : > { %6198 = vmatprep.subr.bf16.mxu0 %v6197_v43  ;;  %6288 = vmatpush3.bf16.msra.mxu1 %v6285_v2  ;;  %v4685_v2 = vld [vmem:[%s8805_s2 + $0x2d0] sm:$0xff] }
  0x7c   : > { %5457 = vmatmul.mubr.f32.gmra.mrb[8].mxu0 %v7056_v54  ;;  %6290 = vmatprep.subr.bf16.mxu1 %v6289_v7  ;;  %v6297_v57 = vpack.c.bf16 %v4686_v34, %v4685_v2  ;;  %v4723_v2 = vld [vmem:[%s8805_s2 + $0x300] sm:$0xff]  ;;  %v4724_v34 = vld [vmem:[%s8805_s2 + $0x308] sm:$0xff] }
  0x7d   : > { %5688 = vmatmul.mubr.f32.gmra.mrb[6].mxu1 %v7006_v38  ;;  %5459 = vmatprep.mubr.f32.mxu0 %v7059_v56  ;;  %v7594_v39 = vpack.c.bf16 %v4724_v34, %v4723_v2  ;;  %v889_v2 = vrot.slane %v6919_v60, 1  ;;  %v313_v34 = vadd.s32 24, %v6822_v17  ;;  %v4726_v60 = vld [vmem:[%s8805_s2 + $0x318] sm:$0xff] }
  0x7e   : > { %5690 = vmatprep.mubr.f32.mxu1 %v7010_v40  ;;  %6200 = vmatpush3.bf16.msra.mxu0 %v6197_v43  ;;  %v4687_v43 = vld [vmem:[%s8805_s2 + $0x2e0] sm:$0xff] }
  0x7f   : > { %6202 = vmatprep.subr.bf16.mxu0 %v6201_v44  ;;  %6292 = vmatpush3.bf16.msra.mxu1 %v6289_v7  ;;  %v4688_v7 = vld [vmem:[%s8805_s2 + $0x2e8] sm:$0xff] }
  0x80   : > { %5460 = vmatmul.mubr.f32.gmra.mrb[10].mxu0 %v7097_v9  ;;  %6294 = vmatprep.subr.bf16.mxu1 %v6293_v8  ;;  %v6301_v24 = vpack.c.bf16 %v4688_v7, %v4687_v43  ;;  %v4785_v43 = vld [vmem:[%s8805_s2 + $0x400] sm:$0xff]  ;;  %v311_v7 = vadd.s32 8, %v6822_v17 }
  0x81   : > { %5691 = vmatmul.mubr.f32.gmra.mrb[8].mxu1 %v7056_v54  ;;  %5462 = vmatprep.mubr.f32.mxu0 %v7100_v10 }
  0x82   : > { %5693 = vmatprep.mubr.f32.mxu1 %v7059_v56  ;;  %6204 = vmatpush3.bf16.msra.mxu0 %v6201_v44  ;;  %v4689_v44 = vld [vmem:[%s8805_s2 + $0x2f0] sm:$0xff] }
  0x83   : > { %6206 = vmatprep.subr.bf16.mxu0 %v6205_v23  ;;  %6296 = vmatpush3.bf16.msra.mxu1 %v6293_v8  ;;  %v4690_v8 = vld [vmem:[%s8805_s2 + $0x2f8] sm:$0xff] }
  0x84   : > { %5463 = vmatmul.mubr.f32.gmra.mrb[12].mxu0 %v7137_v31  ;;  %6298 = vmatprep.subr.bf16.mxu1 %v6297_v57  ;;  %v6305_v45 = vpack.c.bf16 %v4690_v8, %v4689_v44  ;;  %v8940_v44 = vrot.slane %v6852_v29, 1 }
  0x85   : > { %5694 = vmatmul.mubr.f32.gmra.mrb[10].mxu1 %v7097_v9  ;;  %5465 = vmatprep.mubr.f32.mxu0 %v7141_v37 }
  0x86   : > { %5696 = vmatprep.mubr.f32.mxu1 %v7100_v10  ;;  %6208 = vmatpush3.bf16.msra.mxu0 %v6205_v23  ;;  %v4786_v23 = vld [vmem:[%s8805_s2 + $0x408] sm:$0xff] }
  0x87   : > { %6210 = vmatprep.subr.bf16.mxu0 %v6209_v48  ;;  %6300 = vmatpush3.bf16.msra.mxu1 %v6297_v57  ;;  %v7608_v57 = vpack.c.bf16 %v4786_v23, %v4785_v43  ;;  %v4725_v43 = vld [vmem:[%s8805_s2 + $0x310] sm:$0xff]  ;;  %v367_v23 = vand.u32 15, %v313_v34 }
  0x88   : > { %5466 = vmatmul.mubr.f32.gmra.mrb[14].mxu0 %v7178_v59  ;;  %6302 = vmatprep.subr.bf16.mxu1 %v6301_v24  ;;  %v6313_v49 = vpack.c.bf16 %v4726_v60, %v4725_v43  ;;  %v317_v43 = vadd.s32 56, %v6822_v17 }
  0x89   : > { %5697 = vmatmul.mubr.f32.gmra.mrb[12].mxu1 %v7137_v31  ;;  %5468 = vmatprep.mubr.f32.mxu0 %v7181_v61  ;;  %vm7679_vm15 = vcmp.ne.s32.totalorder %v367_v23, 15  ;;  %v4729_v23 = vld [vmem:[%s8805_s2 + $0x330] sm:$0xff] }
  0x8a   : > { %5699 = vmatprep.mubr.f32.mxu1 %v7141_v37  ;;  %6212 = vmatpush3.bf16.msra.mxu0 %v6209_v48  ;;  %v888_v48 = vrot.slane %v6909_v55, 1  ;;  %v890_v55 = vrot.slane %v6929_v1, 1  ;;  %v4790_v1 = vld [vmem:[%s8805_s2 + $0x428] sm:$0xff] }
  0x8b   : > { %6310 = vmatprep.subr.bf16.mxu0 %v7594_v39  ;;  %6304 = vmatpush3.bf16.msra.mxu1 %v6301_v24  ;;  %v353_v24 = vand.u32 15, %v311_v7  ;;  %v892_v7 = vrot.slane %v6956_v16, 1  ;;  %v4728_v16 = vld [vmem:[%s8805_s2 + $0x328] sm:$0xff] }
  0x8c   : > { %5469 = vmatmul.mubr.f32.gmra.mrb[16].mxu0 %v7219_v25  ;;  %6306 = vmatprep.subr.bf16.mxu1 %v6305_v45  ;;  %v950_v8 = vsel %vm8849_vm0, %v8940_v44, %v888_v48  ;;  %v949_v29 = vsel %vm8849_vm0, %v888_v48, %v889_v2  ;;  %v7663_v44 = vsel %vm8849_vm0, %v889_v2, %v890_v55  ;;  %v8945_v2 = vmov 0 }
  0x8d   : > { %5700 = vmatmul.mubr.f32.gmra.mrb[14].mxu1 %v7178_v59  ;;  %5471 = vmatprep.mubr.f32.mxu0 %v7223_v33  ;;  %vm7654_vm1 = vcmp.ne.s32.totalorder %v353_v24, 15  ;;  %8943 = vst [vmem:[#allocation34_spill] sm:$0xff] %v7663_v44  ;;  %v4727_v24 = vld [vmem:[%s8805_s2 + $0x320] sm:$0xff]  ;;  %v8946_v2 = vsel %vm7679_vm15, 4294967295, %v8945_v2 }
  0x8e   : > { %5702 = vmatprep.mubr.f32.mxu1 %v7181_v61  ;;  %8947 = vst [vmem:[#allocation36_spill] sm:$0xff] %v8946_v2  ;;  %v905_v2 = vrot.slane %v7223_v33, 1 }
  0x8f   : > { %6308 = vmatpush3.bf16.msra.mxu1 %v6305_v45  ;;  %v891_v45 = vrot.slane %v6934_v5, 1  ;;  %v315_v5 = vadd.s32 40, %v6822_v17 }
  0x90   : > { %5472 = vmatmul.mubr.f32.gmra.mrb[18].mxu0 %v7260_v11  ;;  %6437 = vmatprep.subr.bf16.mxu1 %v7608_v57 }
  0x91   : > { %5703 = vmatmul.mubr.f32.gmra.mrb[16].mxu1 %v7219_v25  ;;  %5474 = vmatprep.mubr.f32.mxu0 %v7263_v13  ;;  %v7669_v48 = vsel %vm8849_vm0, %v890_v55, %v891_v45  ;;  %v381_v34 = vand.u32 15, %v315_v5  ;;  %v893_v55 = vrot.slane %v6967_v21, 1  ;;  %v7689_v60 = vsel %vm8849_vm0, %v891_v45, %v892_v7  ;;  %v7703_v45 = vld [vmem:[%s6842_s12 + $0xf8] sm:$0xff] }
  0x92   : > { %5705 = vmatprep.mubr.f32.mxu1 %v7223_v33  ;;  %8944 = vst [vmem:[#allocation35_spill] sm:$0xff] %v7669_v48  ;;  %8948 = vst [vmem:[#allocation37_spill] sm:$0xff] %v7689_v60  ;;  %v895_v21 = vrot.slane %v7010_v40, 1  ;;  %v8951_v40 = vmov 0  ;;  %v395_v5 = vand.u32 15, %v317_v43 }
  0x93   : > { %8949 = vst [vmem:[#allocation38_spill] sm:$0xff] %v7703_v45  ;;  %v7709_v38 = vsel %vm8849_vm0, %v892_v7, %v893_v55  ;;  %vm7711_vm14 = vcmp.ne.s32.totalorder %v381_v34, 15  ;;  %v7724_v7 = vsel %vm8849_vm0, %v893_v55, %v894_v52  ;;  %v896_v34 = vrot.slane %v7056_v54, 1  ;;  %v8999_v54 = vld [vmem:[#allocation7_spill] sm:$0xff] }
  0x94   : > { %5475 = vmatmul.mubr.f32.gmra.mrb[20].mxu0 %v7293_v63  ;;  %8950 = vst [vmem:[#allocation39_spill] sm:$0xff] %v7709_v38  ;;  %v8952_v40 = vsel %vm7711_vm14, 4294967295, %v8951_v40  ;;  %v7732_v14 = vsel %vm8849_vm0, %v894_v52, %v895_v21  ;;  %vm7745_vm13 = vcmp.ne.s32.totalorder %v395_v5, 15  ;;  %v899_v5 = vrot.slane %v7100_v10, 1 }
  0x95   : > { %5706 = vmatmul.mubr.f32.gmra.mrb[18].mxu1 %v7260_v11  ;;  %5477 = vmatprep.mubr.f32.mxu0 %v7297_v41  ;;  %8953 = vst [vmem:[#allocation40_spill] sm:$0xff] %v8952_v40  ;;  %v903_v40 = vrot.slane %v7181_v61, 1 }
  0x96   : > { %5708 = vmatprep.mubr.f32.mxu1 %v7263_v13 }
  0x98   : > { %5478 = vmatmul.mubr.f32.gmra.mrb[22].mxu0 %v7324_v3 }
  0x99   : > { %5709 = vmatmul.mubr.f32.gmra.mrb[20].mxu1 %v7293_v63  ;;  %5480 = vmatprep.mubr.f32.mxu0 %v7327_v58 }
  0x9a   : > { %5711 = vmatprep.mubr.f32.mxu1 %v7297_v41 }
  0x9c   : > { %5481 = vmatmul.mubr.f32.gmra.mrb[24].mxu0 %v7353_v30 }
  0x9d   : > { %5712 = vmatmul.mubr.f32.gmra.mrb[22].mxu1 %v7324_v3  ;;  %5483 = vmatprep.mubr.f32.mxu0 %v7357_v20 }
  0x9e   : > { %5714 = vmatprep.mubr.f32.mxu1 %v7327_v58 }
  0xa0   : > { %5484 = vmatmul.mubr.f32.gmra.mrb[26].mxu0 %v7382_v0 }
  0xa1   : > { %5715 = vmatmul.mubr.f32.gmra.mrb[24].mxu1 %v7353_v30  ;;  %5486 = vmatprep.mubr.f32.mxu0 %v7386_v12 }
  0xa2   : > { %5717 = vmatprep.mubr.f32.mxu1 %v7357_v20 }
  0xa4   : > { %5487 = vmatmul.mubr.f32.gmra.mrb[28].mxu0 %v7411_v53 }
  0xa5   : > { %5718 = vmatmul.mubr.f32.gmra.mrb[26].mxu1 %v7382_v0  ;;  %5521 = vmatprep.mubr.f32.mxu0 %v950_v8 }
  0xa6   : > { %5720 = vmatprep.mubr.f32.mxu1 %v7386_v12 }
  0xa8   : > { %5522 = vmatmul.mubr.msk.f32.vlgmr.msra.gmra.mrb[0].mxu0 %vm7654_vm1, %v949_v29 }
  0xa9   : > { %5721 = vmatmul.mubr.f32.gmra.mrb[28].mxu1 %v7411_v53  ;;  %6312 = vmatpush3.bf16.msra.mxu0 %v7594_v39  ;;  %v6317_v39 = vpack.c.bf16 %v4728_v16, %v4727_v24  ;;  %v319_v24 = vadd.s32 72, %v6822_v17  ;;  %v4787_v16 = vld [vmem:[%s8805_s2 + $0x410] sm:$0xff] }
  0xaa   : > { %5524 = vmatprep.mubr.f32.mxu0 %v7663_v44  ;;  %5723 = vmatprep.mubr.f32.mxu1 %v6970_v22  ;;  %v4730_v22 = vld [vmem:[%s8805_s2 + $0x338] sm:$0xff] }
  0xab   : > { %6314 = vmatprep.subr.bf16.mxu0 %v6313_v49  ;;  %v6321_v43 = vpack.c.bf16 %v4730_v22, %v4729_v23  ;;  %v409_v52 = vand.u32 15, %v319_v24  ;;  %v897_v23 = vrot.slane %v7059_v56, 1  ;;  %v321_v22 = vadd.s32 88, %v6822_v17  ;;  %v4733_v24 = vld [vmem:[%s8805_s2 + $0x350] sm:$0xff] }
  0xac   : > { %5525 = vmatmul.mubr.msk.f32.gmra.mrb[2].mxu0 %vm7679_vm15, %v7669_v48 }
  0xad   : > { %5724 = vmatmul.mubr.f32.gmra.mrb[30].mxu1 %v7703_v45  ;;  %5527 = vmatprep.mubr.f32.mxu0 %v7689_v60  ;;  %v4788_v45 = vld [vmem:[%s8805_s2 + $0x418] sm:$0xff]  ;;  %v7783_v10 = vsel %vm8849_vm0, %v896_v34, %v897_v23 }
  0xae   : > { %5758 = vmatprep.mubr.f32.mxu1 %v950_v8  ;;  %6316 = vmatpush3.bf16.msra.mxu0 %v6313_v49  ;;  %v4731_v49 = vld [vmem:[%s8805_s2 + $0x340] sm:$0xff]  ;;  %v4732_v8 = vld [vmem:[%s8805_s2 + $0x348] sm:$0xff]  ;;  %v7740_v55 = vpack.c.bf16 %v4788_v45, %v4787_v16  ;;  %v898_v45 = vrot.slane %v7097_v9, 1  ;;  %v7775_v9 = vpack.c.bf16 %v4790_v1, %v4789_v47  ;;  %v423_v16 = vand.u32 15, %v321_v22  ;;  %v4791_v47 = vld [vmem:[%s8805_s2 + $0x430] sm:$0xff] }
  0xaf   : > { %6318 = vmatprep.subr.bf16.mxu0 %v6317_v39  ;;  %v6325_v56 = vpack.c.bf16 %v4732_v8, %v4731_v49  ;;  %v323_v49 = vadd.s32 104, %v6822_v17  ;;  %v4792_v8 = vld [vmem:[%s8805_s2 + $0x438] sm:$0xff] }
  0xb0   : > { %5528 = vmatmul.mubr.msk.f32.gmra.mrb[4].mxu0 %vm7711_vm14, %v7709_v38  ;;  %v7808_v1 = vsel %vm8849_vm0, %v898_v45, %v899_v5 }
  0xb1   : > { %5759 = vmatmul.mubr.msk.f32.vlgmr.msra.gmra.mrb[0].mxu1 %vm7654_vm1, %v949_v29  ;;  %5530 = vmatprep.mubr.f32.mxu0 %v7724_v7  ;;  %v7760_v29 = vsel %vm8849_vm0, %v895_v21, %v896_v34  ;;  %vm7785_vm1 = vcmp.ne.s32.totalorder %v409_v52, 15  ;;  %v7799_v34 = vsel %vm8849_vm0, %v897_v23, %v898_v45  ;;  %v900_v52 = vrot.slane %v7137_v31, 1  ;;  %v4735_v23 = vld [vmem:[%s8805_s2 + $0x360] sm:$0xff]  ;;  %v4736_v31 = vld [vmem:[%s8805_s2 + $0x368] sm:$0xff]  ;;  %v9002_v21 = vld [vmem:[#allocation10_spill] sm:$0xff] }
  0xb2   : > { %5761 = vmatprep.mubr.f32.mxu1 %v7663_v44  ;;  %6320 = vmatpush3.bf16.msra.mxu0 %v6317_v39  ;;  %v4734_v39 = vld [vmem:[%s8805_s2 + $0x358] sm:$0xff]  ;;  %vm7823_vm0 = vcmp.ne.s32.totalorder %v423_v16, 15 }
  0xb3   : > { %6322 = vmatprep.subr.bf16.mxu0 %v6321_v43  ;;  %6445 = vmatpush3.bf16.msra.mxu1 %v7608_v57  ;;  %v6329_v22 = vpack.c.bf16 %v4734_v39, %v4733_v24  ;;  %v437_v24 = vand.u32 15, %v323_v49  ;;  %v901_v39 = vrot.slane %v7141_v37, 1  ;;  %v902_v49 = vrot.slane %v7178_v59, 1  ;;  %v9008_v45 = vld [vmem:[#allocation14_spill] sm:$0xff] }
  0xb4   : > { %5531 = vmatmul.mubr.msk.f32.gmra.mrb[6].mxu0 %vm7745_vm13, %v7732_v14  ;;  %6438 = vmatprep.subr.bf16.mxu1 %v7740_v55  ;;  %v6333_v37 = vpack.c.bf16 %v4736_v31, %v4735_v23  ;;  %v327_v31 = vadd.s32 136, %v6822_v17 }
  0xb5   : > { %5762 = vmatmul.mubr.msk.f32.gmra.mrb[2].mxu1 %vm7679_vm15, %v7669_v48  ;;  %5533 = vmatprep.mubr.f32.mxu0 %v7760_v29  ;;  %vm7863_vm15 = vcmp.ne.s32.totalorder %v437_v24, 15  ;;  %v904_v24 = vrot.slane %v7219_v25, 1  ;;  %v4769_v48 = vld [vmem:[%s8805_s2 + $0x380] sm:$0xff] }
  0xb6   : > { %5764 = vmatprep.mubr.f32.mxu1 %v7689_v60  ;;  %6324 = vmatpush3.bf16.msra.mxu0 %v6321_v43  ;;  %v7817_v43 = vpack.c.bf16 %v4792_v8, %v4791_v47  ;;  %v325_v60 = vadd.s32 120, %v6822_v17  ;;  %v4793_v47 = vld [vmem:[%s8805_s2 + $0x440] sm:$0xff]  ;;  %v4794_v8 = vld [vmem:[%s8805_s2 + $0x448] sm:$0xff] }
  0xb7   : > { %6326 = vmatprep.subr.bf16.mxu0 %v6325_v56  ;;  %6446 = vmatpush3.bf16.msra.mxu1 %v7740_v55  ;;  %v7853_v59 = vpack.c.bf16 %v4794_v8, %v4793_v47  ;;  %v4795_v47 = vld [vmem:[%s8805_s2 + $0x450] sm:$0xff]  ;;  %v4796_v8 = vld [vmem:[%s8805_s2 + $0x458] sm:$0xff] }
  0xb8   : > { %5534 = vmatmul.mubr.msk.f32.gmra.mrb[8].mxu0 %vm7785_vm1, %v7783_v10  ;;  %6439 = vmatprep.subr.bf16.mxu1 %v7775_v9  ;;  %8958 = vst [vmem:[#allocation41_spill] sm:$0xff] %v7817_v43  ;;  %v451_v23 = vand.u32 15, %v325_v60  ;;  %v7892_v25 = vpack.c.bf16 %v4796_v8, %v4795_v47  ;;  %v4797_v47 = vld [vmem:[%s8805_s2 + $0x460] sm:$0xff]  ;;  %v4798_v8 = vld [vmem:[%s8805_s2 + $0x468] sm:$0xff] }
  0xb9   : > { %5765 = vmatmul.mubr.msk.f32.gmra.mrb[4].mxu1 %vm7711_vm14, %v7709_v38  ;;  %5536 = vmatprep.mubr.f32.mxu0 %v7799_v34  ;;  %vm8961_vm14 = vcmp.lt.s32.totalorder %v6822_v17, 7  ;;  %v4737_v38 = vld [vmem:[%s8805_s2 + $0x370] sm:$0xff]  ;;  %8962 = vst [vmem:[#allocation42_spill] sm:$0xff] %v7853_v59 }
  0xba   : > { %5767 = vmatprep.mubr.f32.mxu1 %v7724_v7  ;;  %v7838_v16 = vsel %vm8961_vm14, %v899_v5, %v900_v52  ;;  %6328 = vmatpush3.bf16.msra.mxu0 %v6325_v56  ;;  %v4738_v5 = vld [vmem:[%s8805_s2 + $0x378] sm:$0xff]  ;;  %v7861_v61 = vsel %vm8961_vm14, %v900_v52, %v901_v39  ;;  %v8963_v56 = vmov 0  ;;  %v7877_v52 = vsel %vm8961_vm14, %v901_v39, %v902_v49  ;;  %v4770_v39 = vld [vmem:[%s8805_s2 + $0x388] sm:$0xff]  ;;  %vm8968_vm11 = vmmov %vm8961_vm14 }
  0xbb   : > { %6330 = vmatprep.subr.bf16.mxu0 %v6329_v22  ;;  %6447 = vmatpush3.bf16.msra.mxu1 %v7775_v9  ;;  %v8964_v56 = vsel %vm7863_vm15, 4294967295, %v8963_v56  ;;  %v6337_v60 = vpack.c.bf16 %v4738_v5, %v4737_v38  ;;  %8965 = vst [vmem:[#allocation43_spill] sm:$0xff] %v7892_v25  ;;  %v7900_v33 = vsel %vm8961_vm14, %v902_v49, %v903_v40  ;;  %vm7902_vm12 = vcmp.ne.s32.totalorder %v451_v23, 15  ;;  %vm8975_vm9 = vmmov %vm8968_vm11 }
  0xbc   : > { %5537 = vmatmul.mubr.msk.f32.gmra.mrb[10].mxu0 %vm7823_vm0, %v7808_v1  ;;  %6440 = vmatprep.subr.bf16.mxu1 %v7817_v43  ;;  %v8966_v38 = vmov 0  ;;  %v329_v5 = vadd.s32 152, %v6822_v17  ;;  %v7916_v49 = vsel %vm8961_vm14, %v903_v40, %v904_v24  ;;  %v906_v23 = vrot.slane %v7260_v11, 1 }
  0xbd   : > { %5768 = vmatmul.mubr.msk.f32.gmra.mrb[6].mxu1 %vm7745_vm13, %v7732_v14  ;;  %5539 = vmatprep.mubr.f32.mxu0 %v7838_v16  ;;  %v8967_v38 = vsel %vm7902_vm12, 4294967295, %v8966_v38  ;;  %v7927_v44 = vsel %vm8968_vm11, %v904_v24, %v905_v2  ;;  %v7930_v40 = vpack.c.bf16 %v4798_v8, %v4797_v47  ;;  %v8970_v11 = vmov 0  ;;  %v4800_v47 = vld [vmem:[%s8805_s2 + $0x478] sm:$0xff] }
  0xbe   : > { %5770 = vmatprep.mubr.f32.mxu1 %v7760_v29  ;;  %6332 = vmatpush3.bf16.msra.mxu0 %v6329_v22  ;;  %v465_v22 = vand.u32 15, %v327_v31  ;;  %v7919_v31 = vpack.c.bf16 %v4770_v39, %v4769_v48  ;;  %v479_v48 = vand.u32 15, %v329_v5  ;;  %v331_v24 = vadd.s32 168, %v6822_v17  ;;  %v4799_v39 = vld [vmem:[%s8805_s2 + $0x470] sm:$0xff] }
  0xbf   : > { %6334 = vmatprep.subr.bf16.mxu0 %v6333_v37  ;;  %6448 = vmatpush3.bf16.msra.mxu1 %v7817_v43  ;;  %8969 = vst [vmem:[#allocation44_spill] sm:$0xff] %v7930_v40  ;;  %v908_v5 = vrot.slane %v7293_v63, 1  ;;  %v7961_v8 = vpack.c.bf16 %v4800_v47, %v4799_v39  ;;  %v910_v47 = vrot.slane %v7324_v3, 1  ;;  %v8977_v3 = vmov 0  ;;  %v4774_v43 = vld [vmem:[%s8805_s2 + $0x3a8] sm:$0xff] }
  0xc0   : > { %5540 = vmatmul.mubr.msk.f32.gmra.mrb[12].mxu0 %vm7863_vm15, %v7861_v61  ;;  %6441 = vmatprep.subr.bf16.mxu1 %v7853_v59  ;;  %vm7936_vm14 = vcmp.ne.s32.totalorder %v465_v22, 15  ;;  %v7951_v22 = vsel %vm8968_vm11, %v905_v2, %v906_v23  ;;  %vm7971_vm10 = vcmp.ne.s32.totalorder %v479_v48, 15  ;;  %v8973_v2 = vmov 0 }
  0xc1   : > { %5771 = vmatmul.mubr.msk.f32.gmra.mrb[8].mxu1 %vm7785_vm1, %v7783_v10  ;;  %5542 = vmatprep.mubr.f32.mxu0 %v7877_v52  ;;  %v8971_v11 = vsel %vm7936_vm14, 4294967295, %v8970_v11  ;;  %8972 = vst [vmem:[#allocation45_spill] sm:$0xff] %v7961_v8  ;;  %v8974_v2 = vsel %vm7971_vm10, 4294967295, %v8973_v2 }
  0xc2   : > { %5773 = vmatprep.mubr.f32.mxu1 %v7799_v34  ;;  %6336 = vmatpush3.bf16.msra.mxu0 %v6333_v37  ;;  %v907_v37 = vrot.slane %v7263_v13, 1  ;;  %v909_v13 = vrot.slane %v7297_v41, 1  ;;  %v333_v41 = vadd.s32 184, %v6822_v17 }
  0xc3   : > { %6338 = vmatprep.subr.bf16.mxu0 %v6337_v60  ;;  %6449 = vmatpush3.bf16.msra.mxu1 %v7853_v59 }
  0xc4   : > { %5543 = vmatmul.mubr.msk.f32.gmra.mrb[14].mxu0 %vm7902_vm12, %v7900_v33  ;;  %6442 = vmatprep.subr.bf16.mxu1 %v7892_v25  ;;  %v7969_v63 = vsel %vm8968_vm11, %v906_v23, %v907_v37  ;;  %v7979_v39 = vsel %vm8975_vm9, %v907_v37, %v908_v5  ;;  %vm8976_vm11 = vmmov %vm8975_vm9  ;;  %v507_v48 = vand.u32 15, %v333_v41  ;;  %v911_v37 = vrot.slane %v7327_v58, 1 }
  0xc5   : > { %5774 = vmatmul.mubr.msk.f32.gmra.mrb[10].mxu1 %vm7823_vm0, %v7808_v1  ;;  %5545 = vmatprep.mubr.f32.mxu0 %v7916_v49  ;;  %v7988_v23 = vsel %vm8976_vm11, %v908_v5, %v909_v13  ;;  %v8004_v5 = vsel %vm8976_vm11, %v909_v13, %v910_v47  ;;  %v337_v41 = vadd.s32 216, %v6822_v17 }
  0xc6   : > { %5776 = vmatprep.mubr.f32.mxu1 %v7838_v16  ;;  %6340 = vmatpush3.bf16.msra.mxu0 %v6337_v60  ;;  %v493_v60 = vand.u32 15, %v331_v24  ;;  %v335_v24 = vadd.s32 200, %v6822_v17 }
  0xc7   : > { %6342 = vmatprep.subr.bf16.mxu0 %v7919_v31  ;;  %6450 = vmatpush3.bf16.msra.mxu1 %v7892_v25  ;;  %v916_v25 = vrot.slane %v7411_v53, 1  ;;  %v8070_v53 = vld [vmem:[%s6842_s12 + $0xf0] sm:$0xff] }
  0xc8   : > { %5546 = vmatmul.mubr.msk.f32.gmra.mrb[16].mxu0 %vm7936_vm14, %v7927_v44  ;;  %6443 = vmatprep.subr.bf16.mxu1 %v7930_v40  ;;  %vm7995_vm9 = vcmp.ne.s32.totalorder %v493_v60, 15  ;;  %v913_v60 = vrot.slane %v7357_v20, 1  ;;  %v521_v13 = vand.u32 15, %v335_v24  ;;  %v339_v24 = vadd.s32 232, %v6822_v17  ;;  %8988 = vst [vmem:[#allocation46_spill] sm:$0xff] %v8070_v53 }
  0xc9   : > { %5777 = vmatmul.mubr.msk.f32.gmra.mrb[12].mxu1 %vm7863_vm15, %v7861_v61  ;;  %5548 = vmatprep.mubr.f32.mxu0 %v7951_v22  ;;  %v8978_v3 = vsel %vm7995_vm9, 4294967295, %v8977_v3 }
  0xca   : > { %5779 = vmatprep.mubr.f32.mxu1 %v7877_v52 }
  0xcb   : > { %6451 = vmatpush3.bf16.msra.mxu1 %v7930_v40  ;;  %v912_v40 = vrot.slane %v7353_v30, 1  ;;  %v6707_v30 = vld [vmem:[%s6842_s12 + $0x10] sm:$0xff] }
  0xcc   : > { %5549 = vmatmul.mubr.msk.f32.gmra.mrb[18].mxu0 %vm7971_vm10, %v7969_v63  ;;  %6444 = vmatprep.subr.bf16.mxu1 %v7961_v8 }
  0xcd   : > { %5780 = vmatmul.mubr.msk.f32.gmra.mrb[14].mxu1 %vm7902_vm12, %v7900_v33  ;;  %5551 = vmatprep.mubr.f32.mxu0 %v7979_v39  ;;  %vm8979_vm12 = vmmov %vm8976_vm11  ;;  %vm8020_vm11 = vcmp.ne.s32.totalorder %v507_v48, 15  ;;  %v6711_v48 = vld [vmem:[%s6842_s12 + $0x30] sm:$0xff] }
  0xce   : > { %5782 = vmatprep.mubr.f32.mxu1 %v7916_v49  ;;  %v8018_v58 = vsel %vm8979_vm12, %v910_v47, %v911_v37  ;;  %vm8982_vm15 = vmmov %vm8979_vm12  ;;  %v8036_v47 = vsel %vm8979_vm12, %v912_v40, %v913_v60 }
  0xcf   : > { %6452 = vmatpush3.bf16.msra.mxu1 %v7961_v8  ;;  %v8028_v20 = vsel %vm8982_vm15, %v911_v37, %v912_v40  ;;  %v914_v8 = vrot.slane %v7382_v0, 1  ;;  %v535_v0 = vand.u32 15, %v337_v41  ;;  %v915_v37 = vrot.slane %v7386_v12, 1  ;;  %vm8985_vm15 = vmmov %vm8979_vm12 }
  0xd0   : > { %5552 = vmatmul.mubr.msk.f32.gmra.mrb[20].mxu0 %vm7995_vm9, %v7988_v23  ;;  %v917_v41 = vrot.slane %v8070_v53, 1  ;;  %v4773_v53 = vld [vmem:[%s8805_s2 + $0x3a0] sm:$0xff] }
  0xd1   : > { %5783 = vmatmul.mubr.msk.f32.gmra.mrb[16].mxu1 %vm7936_vm14, %v7927_v44  ;;  %5554 = vmatprep.mubr.f32.mxu0 %v8004_v5  ;;  %vm8042_vm14 = vcmp.ne.s32.totalorder %v521_v13, 15  ;;  %v8051_v40 = vsel %vm8985_vm15, %v913_v60, %v914_v8  ;;  %v8063_v12 = vsel %vm8979_vm12, %v914_v8, %v915_v37  ;;  %v549_v60 = vand.u32 15, %v339_v24  ;;  %vm8989_vm15 = vmmov %vm8979_vm12  ;;  %v4772_v24 = vld [vmem:[%s8805_s2 + $0x398] sm:$0xff]  ;;  %v6715_v13 = vld [vmem:[%s6842_s12 + $0x50] sm:$0xff] }
  0xd2   : > { %5785 = vmatprep.mubr.f32.mxu1 %v7951_v22  ;;  %v8076_v59 = vsel %vm8989_vm15, %v915_v37, %v916_v25  ;;  %v8087_v8 = vsel %vm8979_vm12, %v916_v25, %v917_v41  ;;  %v4771_v37 = vld [vmem:[%s8805_s2 + $0x390] sm:$0xff]  ;;  %v341_v25 = vadd.s32 248, %v6822_v17 }
  0xd3   : > { %v9044_v17 = vld [vmem:[#allocation45_spill] sm:$0xff] }
  0xd4   : > { %5555 = vmatmul.mubr.msk.f32.gmra.mrb[22].mxu0 %vm8020_vm11, %v8018_v58 }
  0xd5   : > { %5786 = vmatmul.mubr.msk.f32.gmra.mrb[18].mxu1 %vm7971_vm10, %v7969_v63  ;;  %5557 = vmatprep.mubr.f32.mxu0 %v8028_v20  ;;  %vm8065_vm10 = vcmp.ne.s32.totalorder %v535_v0, 15  ;;  %v6717_v0 = vld [vmem:[%s6842_s12 + $0x60] sm:$0xff] }
  0xd6   : > { %5788 = vmatprep.mubr.f32.mxu1 %v7979_v39 }
  0xd8   : > { %5558 = vmatmul.mubr.msk.f32.gmra.mrb[24].mxu0 %vm8042_vm14, %v8036_v47 }
  0xd9   : > { %5789 = vmatmul.mubr.msk.f32.gmra.mrb[20].mxu1 %vm7995_vm9, %v7988_v23  ;;  %5560 = vmatprep.mubr.f32.mxu0 %v8051_v40  ;;  %vm8089_vm9 = vcmp.ne.s32.totalorder %v549_v60, 15  ;;  %v6345_v60 = vpack.c.bf16 %v4772_v24, %v4771_v37  ;;  %v6349_v37 = vpack.c.bf16 %v4774_v43, %v4773_v53  ;;  %v4784_v43 = vld [vmem:[%s8805_s2 + $0x3f8] sm:$0xff]  ;;  %v9000_v53 = vld [vmem:[#allocation8_spill] sm:$0xff] }
  0xda   : > { %5791 = vmatprep.mubr.f32.mxu1 %v8004_v5  ;;  %v9004_v24 = vld [vmem:[#allocation12_spill] sm:$0xff] }
  0xdc   : > { %5561 = vmatmul.mubr.msk.f32.gmra.mrb[26].mxu0 %vm8065_vm10, %v8063_v12 }
  0xdd   : > { %5792 = vmatmul.mubr.msk.f32.gmra.mrb[22].mxu1 %vm8020_vm11, %v8018_v58  ;;  %5563 = vmatprep.mubr.f32.mxu0 %v8076_v59 }
  0xde   : > { %5794 = vmatprep.mubr.f32.mxu1 %v8028_v20 }
  0xe0   : > { %5564 = vmatmul.mubr.msk.f32.gmra.mrb[28].mxu0 %vm8089_vm9, %v8087_v8 }
  0xe1   : > { %5795 = vmatmul.mubr.msk.f32.gmra.mrb[24].mxu1 %vm8042_vm14, %v8036_v47  ;;  %5838 = vmatprep.mubr.msk.f32.mxu0 %vm6962_vm2, %v6960_v18  ;;  %v563_v18 = vand.u32 15, %v341_v25  ;;  %vm8993_vm2 = vmmov %vm8979_vm12  ;;  %v9017_v25 = vld [vmem:[#allocation19_spill] sm:$0xff]  ;;  %vm9026_vm12 = vnez %v8978_v3  ;;  %v9036_v3 = vld [vmem:[#allocation32_spill] sm:$0xff] }
  0xe2   : > { %5797 = vmatprep.mubr.f32.mxu1 %v8051_v40 }
  0xe4   : > { %5839 = vmatmul.mubr.f32.vlgmr.msra.gmra.mrb[30].mxu0 %v6980_v26  ;;  %v8130_v26 = vsel %vm8993_vm2, %v917_v41, %v8992_v19  ;;  %v6718_v19 = vld [vmem:[%s6842_s12 + $0x68] sm:$0xff] }
  0xe5   : > { %5798 = vmatmul.mubr.msk.f32.gmra.mrb[26].mxu1 %vm8065_vm10, %v8063_v12  ;;  %6344 = vmatpush3.bf16.msra.mxu0 %v7919_v31  ;;  %v4775_v31 = vld [vmem:[%s8805_s2 + $0x3b0] sm:$0xff]  ;;  %v9049_v41 = vld [vmem:[#allocation36_spill] sm:$0xff] }
  0xe6   : > { %5800 = vmatprep.mubr.f32.mxu1 %v8076_v59  ;;  %5841 = vmatprep.mubr.msk.f32.mxu0 %vm7000_vm3, %v6998_v35  ;;  %vm8146_vm3 = vcmp.ne.s32.totalorder %v563_v18, 15  ;;  %v6353_v32 = vpack.c.bf16 %v4776_v36, %v4775_v31  ;;  %v4777_v35 = vld [vmem:[%s8805_s2 + $0x3c0] sm:$0xff]  ;;  %v9024_v18 = vld [vmem:[#allocation24_spill] sm:$0xff]  ;;  %v6720_v31 = vld [vmem:[%s6842_s12 + $0x78] sm:$0xff] }
  0xe7   : > { %6346 = vmatprep.subr.bf16.mxu0 %v6345_v60  ;;  %vm9025_vm15 = vnez %v9024_v18  ;;  %v6721_v36 = vld [vmem:[%s6842_s12 + $0x80] sm:$0xff] }
  0xe8   : > { %5842 = vmatmul.mubr.f32.gmra.mrb[32].mxu0 %v7033_v46  ;;  %v4778_v46 = vld [vmem:[%s8805_s2 + $0x3c8] sm:$0xff] }
  0xe9   : > { %5801 = vmatmul.mubr.msk.f32.gmra.mrb[28].mxu1 %vm8089_vm9, %v8087_v8  ;;  %5844 = vmatprep.mubr.msk.f32.mxu0 %vm7050_vm4, %v7048_v50  ;;  %v6357_v50 = vpack.c.bf16 %v4778_v46, %v4777_v35  ;;  %vm9005_vm4 = vnez %v9004_v24  ;;  %v6723_v35 = vld [vmem:[%s6842_s12 + $0x90] sm:$0xff]  ;;  %v6724_v46 = vld [vmem:[%s6842_s12 + $0x98] sm:$0xff] }
  0xea   : > { %5803 = vmatprep.mubr.f32.mxu1 %v8130_v26  ;;  %6348 = vmatpush3.bf16.msra.mxu0 %v6345_v60  ;;  %v9023_v60 = vld [vmem:[#allocation23_spill] sm:$0xff] }
  0xeb   : > { %6350 = vmatprep.subr.bf16.mxu0 %v6349_v37 }
  0xec   : > { %5845 = vmatmul.mubr.f32.gmra.mrb[34].mxu0 %v7074_v62  ;;  %v4780_v62 = vld [vmem:[%s8805_s2 + $0x3d8] sm:$0xff] }
  0xed   : > { %5804 = vmatmul.mubr.msk.f32.gmra.mrb[30].mxu1 %vm8146_vm3, %v7478_v42  ;;  %5847 = vmatprep.mubr.msk.f32.mxu0 %vm7091_vm5, %v7089_v4  ;;  %v6361_v4 = vpack.c.bf16 %v4780_v62, %v4779_v51  ;;  %vm9006_vm5 = vnez %v8964_v56  ;;  %v9013_v56 = vld [vmem:[#allocation17_spill] sm:$0xff]  ;;  %v6726_v51 = vld [vmem:[%s6842_s12 + $0xa8] sm:$0xff] }
  0xee   : > { %6352 = vmatpush3.bf16.msra.mxu0 %v6349_v37  ;;  %5998 = vmatprep.mubr.f32.mxu1 %v7724_v7  ;;  %v9043_v37 = vld [vmem:[#allocation44_spill] sm:$0xff]  ;;  %v6727_v62 = vld [vmem:[%s6842_s12 + $0xb0] sm:$0xff]  ;;  %v6733_v7 = vld [vmem:[%s6842_s12 + $0xe0] sm:$0xff] }
  0xef   : > { %6354 = vmatprep.subr.bf16.mxu0 %v6353_v32 }
  0xf0   : > { %5848 = vmatmul.mubr.f32.gmra.mrb[36].mxu0 %v7115_v15  ;;  %v4781_v15 = vld [vmem:[%s8805_s2 + $0x3e0] sm:$0xff] }
  0xf1   : > { %5850 = vmatprep.mubr.msk.f32.mxu0 %vm7131_vm6, %v7129_v27  ;;  %5999 = vmatmul.mubr.msk.f32.vlgmr.msra.gmra.mrb[32].mxu1 %vm7745_vm13, %v7732_v14  ;;  %v8997_v27 = vld [vmem:[#allocation6_spill] sm:$0xff]  ;;  %v6365_v14 = vpack.c.bf16 %v4782_v28, %v4781_v15  ;;  %vm9016_vm13 = vnez %v8971_v11  ;;  %v6730_v15 = vld [vmem:[%s6842_s12 + $0xc8] sm:$0xff]  ;;  %v6731_v28 = vld [vmem:[%s6842_s12 + $0xd0] sm:$0xff] }
  0xf2   : > { %6356 = vmatpush3.bf16.msra.mxu0 %v6353_v32  ;;  %6001 = vmatprep.mubr.f32.mxu1 %v7760_v29  ;;  %v4783_v29 = vld [vmem:[%s8805_s2 + $0x3f0] sm:$0xff]  ;;  %v9028_v11 = vld [vmem:[#allocation26_spill] sm:$0xff]  ;;  %v6722_v32 = vld [vmem:[%s6842_s12 + $0x88] sm:$0xff] }
  0xf3   : > { %6358 = vmatprep.subr.bf16.mxu0 %v6357_v50 }
  0xf4   : > { %5851 = vmatmul.mubr.f32.gmra.mrb[38].mxu0 %v8996_v6  ;;  %v6729_v6 = vld [vmem:[%s6842_s12 + $0xc0] sm:$0xff] }
  0xf5   : > { %5853 = vmatprep.mubr.msk.f32.mxu0 %vm7158_vm7, %v8997_v27  ;;  %6002 = vmatmul.mubr.msk.f32.gmra.mrb[34].mxu1 %vm7785_vm1, %v7783_v10  ;;  %v6369_v10 = vpack.c.bf16 %v4784_v43, %v4783_v29  ;;  %vm9011_vm7 = vnez %v8967_v38  ;;  %v9019_v38 = vld [vmem:[#allocation21_spill] sm:$0xff]  ;;  %vm9021_vm1 = vnez %v8974_v2  ;;  %v6732_v27 = vld [vmem:[%s6842_s12 + $0xd8] sm:$0xff] }
  0xf6   : > { %6360 = vmatpush3.bf16.msra.mxu0 %v6357_v50  ;;  %6004 = vmatprep.mubr.f32.mxu1 %v7799_v34  ;;  %v9003_v34 = vld [vmem:[#allocation11_spill] sm:$0xff]  ;;  %v9032_v2 = vld [vmem:[#allocation29_spill] sm:$0xff]  ;;  %v9046_v29 = vld [vmem:[#allocation38_spill] sm:$0xff] }
  0xf7   : > { %6362 = vmatprep.subr.bf16.mxu0 %v6361_v4  ;;  %v6725_v50 = vld [vmem:[%s6842_s12 + $0xa0] sm:$0xff]  ;;  %v9047_v43 = vld [vmem:[#allocation34_spill] sm:$0xff] }
  0xf8   : > { %5854 = vmatmul.mubr.f32.gmra.mrb[40].mxu0 %v8999_v54  ;;  %v9045_v54 = vld [vmem:[#allocation46_spill] sm:$0xff] }
  0xf9   : > { %5856 = vmatprep.mubr.msk.f32.mxu0 %vm7214_vm8, %v9000_v53  ;;  %6005 = vmatmul.mubr.msk.f32.gmra.mrb[36].mxu1 %vm7823_vm0, %v7808_v1  ;;  %v9007_v1 = vld [vmem:[#allocation13_spill] sm:$0xff]  ;;  %vm9020_vm0 = vnez %v9019_v38  ;;  %v9048_v53 = vld [vmem:[#allocation35_spill] sm:$0xff] }
  0xfa   : > { %6364 = vmatpush3.bf16.msra.mxu0 %v6361_v4  ;;  %6007 = vmatprep.mubr.f32.mxu1 %v7838_v16  ;;  %v9009_v16 = vld [vmem:[#allocation15_spill] sm:$0xff]  ;;  %v6728_v4 = vld [vmem:[%s6842_s12 + $0xb8] sm:$0xff] }
  0xfb   : > { %6366 = vmatprep.subr.bf16.mxu0 %v6365_v14  ;;  %vm9010_vm6 = vnez %v9009_v16  ;;  %v4064_v38 = vld [vmem:[%s8807_s4] sm:$0xff] }
  0xfc   : > { %5857 = vmatmul.mubr.f32.gmra.mrb[42].mxu0 %v9002_v21  ;;  %v9052_v21 = vld [vmem:[#allocation39_spill] sm:$0xff] }
  0xfd   : > { %5859 = vmatprep.mubr.msk.f32.mxu0 %vm9005_vm4, %v9003_v34  ;;  %6008 = vmatmul.mubr.msk.f32.gmra.mrb[38].mxu1 %vm9006_vm5, %v7861_v61  ;;  %v9012_v61 = vld [vmem:[#allocation16_spill] sm:$0xff] }
  0xfe   : > { %6368 = vmatpush3.bf16.msra.mxu0 %v6365_v14  ;;  %6010 = vmatprep.mubr.f32.mxu1 %v7877_v52  ;;  %v9014_v52 = vld [vmem:[#allocation18_spill] sm:$0xff]  ;;  %v6734_v14 = vld [vmem:[%s6842_s12 + $0xe8] sm:$0xff] }
  0xff   : > { %6370 = vmatprep.subr.bf16.mxu0 %v6369_v10  ;;  %vm9015_vm8 = vnez %v9014_v52  ;;  %v9053_v34 = vld [vmem:[#allocation40_spill] sm:$0xff] }
 0x100   : > { %5860 = vmatmul.mubr.f32.gmra.mrb[44].mxu0 %v9007_v1 }
 0x101   : > { %5862 = vmatprep.mubr.msk.f32.mxu0 %vm9010_vm6, %v9008_v45  ;;  %6011 = vmatmul.mubr.msk.f32.gmra.mrb[40].mxu1 %vm9011_vm7, %v7900_v33  ;;  %v9018_v33 = vld [vmem:[#allocation20_spill] sm:$0xff] }
 0x102   : > { %6372 = vmatpush3.bf16.msra.mxu0 %v6369_v10  ;;  %6013 = vmatprep.mubr.f32.mxu1 %v7916_v49  ;;  %v9022_v49 = vld [vmem:[#allocation22_spill] sm:$0xff]  ;;  %v9051_v10 = vld [vmem:[#allocation37_spill] sm:$0xff] }
 0x103   : > { %6374 = vmatprep.subr.bf16.mxu0 %v7608_v57 }
 0x104   : > { %5863 = vmatmul.mubr.f32.gmra.mrb[46].mxu0 %v9012_v61 }
 0x105   : > { %5865 = vmatprep.mubr.msk.f32.mxu0 %vm9015_vm8, %v9013_v56  ;;  %6014 = vmatmul.mubr.msk.f32.gmra.mrb[42].mxu1 %vm9016_vm13, %v7927_v44  ;;  %v9027_v44 = vld [vmem:[#allocation25_spill] sm:$0xff] }
 0x106   : > { %6016 = vmatprep.mubr.f32.mxu1 %v7951_v22  ;;  %v9029_v22 = vld [vmem:[#allocation27_spill] sm:$0xff] }
 0x107   : > { %vm9030_vm2 = vnez %v9029_v22 }
 0x108   : > { %5866 = vmatmul.mubr.f32.gmra.mrb[48].mxu0 %v9017_v25 }
 0x109   : > { %5868 = vmatprep.mubr.msk.f32.mxu0 %vm9020_vm0, %v9018_v33  ;;  %6017 = vmatmul.mubr.msk.f32.gmra.mrb[44].mxu1 %vm9021_vm1, %v7969_v63  ;;  %v9031_v63 = vld [vmem:[#allocation28_spill] sm:$0xff] }
 0x10a   : > { %6019 = vmatprep.mubr.f32.mxu1 %v7979_v39  ;;  %v9033_v39 = vld [vmem:[#allocation30_spill] sm:$0xff] }
 0x10b   : > { %vm9034_vm4 = vnez %v9033_v39 }
 0x10c   : > { %5869 = vmatmul.mubr.f32.gmra.mrb[50].mxu0 %v9022_v49  ;;  %v4065_v49 = vld [vmem:[%s8807_s4 + $0x8] sm:$0xff] }
 0x10d   : > { %5871 = vmatprep.mubr.msk.f32.mxu0 %vm9025_vm15, %v9023_v60  ;;  %6020 = vmatmul.mubr.msk.f32.gmra.mrb[46].mxu1 %vm9026_vm12, %v7988_v23  ;;  %v9035_v23 = vld [vmem:[#allocation31_spill] sm:$0xff] }
 0x10e   : > { %6022 = vmatprep.mubr.f32.mxu1 %v8004_v5  ;;  %v9037_v5 = vld [vmem:[#allocation33_spill] sm:$0xff] }
 0x110   : > { %5872 = vmatmul.mubr.f32.gmra.mrb[52].mxu0 %v9027_v44  ;;  %v6405_v44 = vpack.c.bf16 %v4065_v49, %v4064_v38 }
 0x111   : > { %5874 = vmatprep.mubr.msk.f32.mxu0 %vm9030_vm2, %v9028_v11  ;;  %6023 = vmatmul.mubr.msk.f32.gmra.mrb[48].mxu1 %vm8020_vm11, %v8018_v58  ;;  %vm9038_vm11 = vnez %v9037_v5  ;;  %v9039_v58 = vld [vmem:[#allocation3_spill] sm:$0xff] }
 0x112   : > { %6025 = vmatprep.mubr.f32.mxu1 %v8028_v20  ;;  %v6708_v20 = vld [vmem:[%s6842_s12 + $0x18] sm:$0xff]  ;;  %6406 = vmatprep.subr.bf16.mxu1 %v6405_v44 }
 0x113   : > { %6408 = vmatpush3.bf16.msra.mxu1 %v6405_v44 }
 0x114   : > { %5875 = vmatmul.mubr.f32.gmra.mrb[54].mxu0 %v9031_v63 }
 0x115   : > { %5877 = vmatprep.mubr.msk.f32.mxu0 %vm9034_vm4, %v9032_v2  ;;  %6026 = vmatmul.mubr.msk.f32.gmra.mrb[50].mxu1 %vm8042_vm14, %v8036_v47  ;;  %v6709_v47 = vld [vmem:[%s6842_s12 + $0x20] sm:$0xff]  ;;  %vm9054_vm14 = vnez %v9053_v34 }
 0x116   : > { %6028 = vmatprep.mubr.f32.mxu1 %v8051_v40  ;;  %v6713_v40 = vld [vmem:[%s6842_s12 + $0x40] sm:$0xff] }
 0x117   : > { %v4072_v34 = vld [vmem:[%s8807_s4 + $0x40] sm:$0xff] }
 0x118   : > { %5878 = vmatmul.mubr.f32.gmra.mrb[56].mxu0 %v9035_v23 }
 0x119   : > { %5880 = vmatprep.mubr.msk.f32.mxu0 %vm9038_vm11, %v9036_v3  ;;  %6029 = vmatmul.mubr.msk.f32.gmra.mrb[52].mxu1 %vm8065_vm10, %v8063_v12  ;;  %v9040_v12 = vld [vmem:[#allocation41_spill] sm:$0xff]  ;;  %vm9050_vm10 = vnez %v9049_v41 }
 0x11a   : > { %6031 = vmatprep.mubr.f32.mxu1 %v8076_v59  ;;  %v6710_v59 = vld [vmem:[%s6842_s12 + $0x28] sm:$0xff] }
 0x11c   : > { %5881 = vmatmul.mubr.f32.gmra.mrb[58].mxu0 %v9039_v58 }
 0x11d   : > { %5915 = vmatprep.mubr.f32.mxu0 %v6707_v30  ;;  %6032 = vmatmul.mubr.msk.f32.gmra.mrb[54].mxu1 %vm8089_vm9, %v8087_v8  ;;  %v6716_v8 = vld [vmem:[%s6842_s12 + $0x58] sm:$0xff] }
 0x11e   : > { %6034 = vmatprep.mubr.f32.mxu1 %v8130_v26  ;;  %v6719_v26 = vld [vmem:[%s6842_s12 + $0x70] sm:$0xff] }
 0x120   : > { %5916 = vmatmul.mubr.f32.vlgmr.msra.gmra.mrb[30].mxu0 %v6708_v20  ;;  %v4066_v20 = vld [vmem:[%s8807_s4 + $0x10] sm:$0xff] }
 0x121   : > { %6376 = vmatpush3.bf16.msra.mxu0 %v7608_v57  ;;  %5918 = vmatprep.mubr.f32.mxu0 %v6709_v47  ;;  %v6712_v57 = vld [vmem:[%s6842_s12 + $0x38] sm:$0xff] }
 0x122   : > { %6378 = vmatprep.subr.bf16.mxu0 %v7740_v55  ;;  %6035 = vmatmul.mubr.msk.f32.gmra.mrb[56].mxu1 %vm8146_vm3, %v7478_v42  ;;  %v6714_v42 = vld [vmem:[%s6842_s12 + $0x48] sm:$0xff]  ;;  %v4067_v47 = vld [vmem:[%s8807_s4 + $0x18] sm:$0xff] }
 0x124   : > { %5919 = vmatmul.mubr.f32.gmra.mrb[32].mxu0 %v6710_v59 }
 0x125   : > { %5921 = vmatprep.mubr.f32.mxu0 %v6711_v48  ;;  %6380 = vmatpush3.bf16.msra.mxu0 %v7740_v55  ;;  %v9041_v55 = vld [vmem:[#allocation42_spill] sm:$0xff] }
 0x126   : > { %6382 = vmatprep.subr.bf16.mxu0 %v7775_v9 }
 0x128   : > { %5922 = vmatmul.mubr.f32.gmra.mrb[34].mxu0 %v6712_v57  ;;  %v6409_v57 = vpack.c.bf16 %v4067_v47, %v4066_v20 }
 0x129   : > { %5924 = vmatprep.mubr.f32.mxu0 %v6713_v40  ;;  %6384 = vmatpush3.bf16.msra.mxu0 %v7775_v9  ;;  %v9042_v9 = vld [vmem:[#allocation43_spill] sm:$0xff] }
 0x12a   : > { %6386 = vmatprep.subr.bf16.mxu0 %v9040_v12  ;;  %6410 = vmatprep.subr.bf16.mxu1 %v6409_v57 }
 0x12b   : > { %6412 = vmatpush3.bf16.msra.mxu1 %v6409_v57  ;;  %v4076_v57 = vld [vmem:[%s8807_s4 + $0x60] sm:$0xff] }
 0x12c   : > { %5925 = vmatmul.mubr.f32.gmra.mrb[36].mxu0 %v6714_v42 }
 0x12d   : > { %5927 = vmatprep.mubr.f32.mxu0 %v6715_v13  ;;  %6388 = vmatpush3.bf16.msra.mxu0 %v9040_v12 }
 0x12e   : > { %6390 = vmatprep.subr.bf16.mxu0 %v9041_v55 }
 0x130   : > { %5928 = vmatmul.mubr.f32.gmra.mrb[38].mxu0 %v6716_v8 }
 0x131   : > { %5930 = vmatprep.mubr.f32.mxu0 %v6717_v0  ;;  %6392 = vmatpush3.bf16.msra.mxu0 %v9041_v55 }
 0x132   : > { %6394 = vmatprep.subr.bf16.mxu0 %v9042_v9 }
 0x134   : > { %5931 = vmatmul.mubr.f32.gmra.mrb[40].mxu0 %v6718_v19 }
 0x135   : > { %5933 = vmatprep.mubr.f32.mxu0 %v6719_v26  ;;  %6396 = vmatpush3.bf16.msra.mxu0 %v9042_v9  ;;  %v4068_v26 = vld [vmem:[%s8807_s4 + $0x20] sm:$0xff] }
 0x136   : > { %6398 = vmatprep.subr.bf16.mxu0 %v9043_v37 }
 0x138   : > { %5934 = vmatmul.mubr.f32.gmra.mrb[42].mxu0 %v6720_v31 }
 0x139   : > { %5936 = vmatprep.mubr.f32.mxu0 %v6721_v36  ;;  %6400 = vmatpush3.bf16.msra.mxu0 %v9043_v37  ;;  %v4069_v37 = vld [vmem:[%s8807_s4 + $0x28] sm:$0xff] }
 0x13a   : > { %6402 = vmatprep.subr.bf16.mxu0 %v9044_v17  ;;  %v6413_v36 = vpack.c.bf16 %v4069_v37, %v4068_v26 }
 0x13c   : > { %5937 = vmatmul.mubr.f32.gmra.mrb[44].mxu0 %v6722_v32  ;;  %6414 = vmatprep.subr.bf16.mxu1 %v6413_v36 }
 0x13d   : > { %5939 = vmatprep.mubr.f32.mxu0 %v6723_v35  ;;  %6404 = vmatpush3.bf16.msra.mxu0 %v9044_v17 }
 0x13e   : > { %6416 = vmatpush3.bf16.msra.mxu1 %v6413_v36  ;;  %v4078_v36 = vld [vmem:[%s8807_s4 + $0x70] sm:$0xff] }
 0x140   : > { %5940 = vmatmul.mubr.f32.gmra.mrb[46].mxu0 %v6724_v46 }
 0x141   : > { %5942 = vmatprep.mubr.f32.mxu0 %v6725_v50 }
 0x144   : > { %5943 = vmatmul.mubr.f32.gmra.mrb[48].mxu0 %v6726_v51 }
 0x145   : > { %5945 = vmatprep.mubr.f32.mxu0 %v6727_v62  ;;  %v4070_v62 = vld [vmem:[%s8807_s4 + $0x30] sm:$0xff] }
 0x148   : > { %5946 = vmatmul.mubr.f32.gmra.mrb[50].mxu0 %v6728_v4  ;;  %v4071_v4 = vld [vmem:[%s8807_s4 + $0x38] sm:$0xff] }
 0x149   : > { %5948 = vmatprep.mubr.f32.mxu0 %v6729_v6 }
 0x14c   : > { %5949 = vmatmul.mubr.f32.gmra.mrb[52].mxu0 %v6730_v15 }
 0x14d   : > { %5951 = vmatprep.mubr.f32.mxu0 %v6731_v28  ;;  %v6417_v28 = vpack.c.bf16 %v4071_v4, %v4070_v62 }
 0x14f   : > { %6418 = vmatprep.subr.bf16.mxu1 %v6417_v28 }
 0x150   : > { %5952 = vmatmul.mubr.f32.gmra.mrb[54].mxu0 %v6732_v27  ;;  %6420 = vmatpush3.bf16.msra.mxu1 %v6417_v28 }
 0x151   : > { %5954 = vmatprep.mubr.f32.mxu0 %v6733_v7 }
 0x154   : > { %5955 = vmatmul.mubr.f32.gmra.mrb[56].mxu0 %v6734_v14 }
 0x155   : > { %5957 = vmatprep.mubr.f32.mxu0 %v9045_v54 }
 0x158   : > { %5958 = vmatmul.mubr.f32.gmra.mrb[58].mxu0 %v9046_v29 }
 0x159   : > { %5992 = vmatprep.mubr.f32.mxu0 %v9047_v43 }
 0x15c   : > { %5993 = vmatmul.mubr.msk.f32.vlgmr.msra.gmra.mrb[30].mxu0 %vm9050_vm10, %v9048_v53 }
 0x15d   : > { %5995 = vmatprep.mubr.f32.mxu0 %v9051_v10 }
 0x160   : > { %5996 = vmatmul.mubr.msk.f32.gmra.mrb[32].mxu0 %vm9054_vm14, %v9052_v21 }
 0x17b   : > { %v5523_v24 = vpop.f32.mrb[0].mxu0 }
 0x17c   : > { %v1742_v1 = vpop.f32.mrb[1].mxu0 }
 0x17f   : > { %v5526_v45 = vpop.f32.mrb[2].mxu0 }
 0x180   : > { %v1752_v16 = vpop.f32.mrb[3].mxu0 }
 0x183   : > { %v5529_v61 = vpop.f32.mrb[4].mxu0 }
 0x184   : > { %v8332_v56 = vpop.f32.mrb[0].mxu1  ;;  %v1762_v52 = vpop.f32.mrb[5].mxu0 }
 0x185   : > { %9055 = vst [vmem:[#allocation4_spill] sm:$0xff] %v8332_v56  ;;  %v8334_v25 = vpop.f32.mrb[1].mxu1 }
 0x186   : > { %9056 = vst [vmem:[#allocation6_spill] sm:$0xff] %v8334_v25 }
 0x187   : > { %v5532_v33 = vpop.f32.mrb[6].mxu0 }
 0x188   : > { %v5763_v60 = vpop.f32.mrb[2].mxu1  ;;  %v1772_v18 = vpop.f32.mrb[7].mxu0 }
 0x189   : > { %v8342_v11 = vadd.f32 %v5763_v60, %v5523_v24  ;;  %v2750_v22 = vpop.f32.mrb[3].mxu1  ;;  %v4073_v24 = vld [vmem:[%s8807_s4 + $0x48] sm:$0xff] }
 0x18a   : > { %v8344_v63 = vadd.f32 %v2750_v22, %v1742_v1 }
 0x18b   : > { %9057 = vst [vmem:[#allocation5_spill] sm:$0xff] %v8342_v11  ;;  %v5535_v2 = vpop.f32.mrb[8].mxu0 }
 0x18c   : > { %9058 = vst [vmem:[#allocation7_spill] sm:$0xff] %v8344_v63  ;;  %v5766_v39 = vpop.f32.mrb[4].mxu1  ;;  %v1782_v23 = vpop.f32.mrb[9].mxu0 }
 0x18d   : > { %v8346_v3 = vadd.f32 %v5766_v39, %v5526_v45  ;;  %v2760_v5 = vpop.f32.mrb[5].mxu1  ;;  %v4075_v39 = vld [vmem:[%s8807_s4 + $0x58] sm:$0xff] }
 0x18e   : > { %v8348_v58 = vadd.f32 %v2760_v5, %v1752_v16  ;;  %v6421_v16 = vpack.c.bf16 %v4073_v24, %v4072_v34 }
 0x18f   : > { %v5538_v30 = vpop.f32.mrb[10].mxu0 }
 0x190   : > { %v5769_v59 = vpop.f32.mrb[6].mxu1  ;;  %v1792_v48 = vpop.f32.mrb[11].mxu0  ;;  %6422 = vmatprep.subr.bf16.mxu1 %v6421_v16 }
 0x191   : > { %v8356_v40 = vadd.f32 %v5769_v59, %v5529_v61  ;;  %v2770_v12 = vpop.f32.mrb[7].mxu1  ;;  %6424 = vmatpush3.bf16.msra.mxu1 %v6421_v16 }
 0x192   : > { %v8358_v42 = vadd.f32 %v2770_v12, %v1762_v52  ;;  %v4077_v12 = vld [vmem:[%s8807_s4 + $0x68] sm:$0xff] }
 0x193   : > { %v5541_v13 = vpop.f32.mrb[12].mxu0 }
 0x194   : > { %v5772_v55 = vpop.f32.mrb[8].mxu1  ;;  %v1802_v8 = vpop.f32.mrb[13].mxu0 }
 0x195   : > { %v8360_v0 = vadd.f32 %v5772_v55, %v5532_v33  ;;  %v2780_v9 = vpop.f32.mrb[9].mxu1  ;;  %v6429_v55 = vpack.c.bf16 %v4077_v12, %v4076_v57 }
 0x196   : > { %v8362_v19 = vadd.f32 %v2780_v9, %v1772_v18 }
 0x197   : > { %v5544_v31 = vpop.f32.mrb[14].mxu0 }
 0x198   : > { %v5775_v17 = vpop.f32.mrb[10].mxu1  ;;  %v1812_v32 = vpop.f32.mrb[15].mxu0 }
 0x199   : > { %v8370_v35 = vadd.f32 %v5775_v17, %v5535_v2  ;;  %v2790_v46 = vpop.f32.mrb[11].mxu1  ;;  %v4074_v2 = vld [vmem:[%s8807_s4 + $0x50] sm:$0xff]  ;;  %v4079_v17 = vld [vmem:[%s8807_s4 + $0x78] sm:$0xff] }
 0x19a   : > { %v8372_v50 = vadd.f32 %v2790_v46, %v1782_v23  ;;  %v6425_v5 = vpack.c.bf16 %v4075_v39, %v4074_v2  ;;  %v6433_v46 = vpack.c.bf16 %v4079_v17, %v4078_v36 }
 0x19b   : > { %v5547_v51 = vpop.f32.mrb[16].mxu0 }
 0x19c   : > { %v5778_v6 = vpop.f32.mrb[12].mxu1  ;;  %v1822_v15 = vpop.f32.mrb[17].mxu0  ;;  %6426 = vmatprep.subr.bf16.mxu1 %v6425_v5 }
 0x19d   : > { %v8380_v27 = vadd.f32 %v5778_v6, %v5538_v30  ;;  %v2800_v7 = vpop.f32.mrb[13].mxu1  ;;  %6428 = vmatpush3.bf16.msra.mxu1 %v6425_v5 }
 0x19e   : > { %v8382_v14 = vadd.f32 %v2800_v7, %v1792_v48  ;;  %6430 = vmatprep.subr.bf16.mxu1 %v6429_v55 }
 0x19f   : > { %v5550_v54 = vpop.f32.mrb[18].mxu0 }
 0x1a0   : > { %v5781_v29 = vpop.f32.mrb[14].mxu1  ;;  %v1832_v43 = vpop.f32.mrb[19].mxu0 }
 0x1a1   : > { %v8384_v53 = vadd.f32 %v5781_v29, %v5541_v13  ;;  %v2810_v41 = vpop.f32.mrb[15].mxu1  ;;  %6432 = vmatpush3.bf16.msra.mxu1 %v6429_v55 }
 0x1a2   : > { %v8386_v10 = vadd.f32 %v2810_v41, %v1802_v8  ;;  %6434 = vmatprep.subr.bf16.mxu1 %v6433_v46 }
 0x1a3   : > { %v5553_v21 = vpop.f32.mrb[20].mxu0 }
 0x1a4   : > { %v5784_v1 = vpop.f32.mrb[16].mxu1  ;;  %v1842_v45 = vpop.f32.mrb[21].mxu0 }
 0x1a5   : > { %v8394_v61 = vadd.f32 %v5784_v1, %v5544_v31  ;;  %v2820_v52 = vpop.f32.mrb[17].mxu1  ;;  %6436 = vmatpush3.bf16.msra.mxu1 %v6433_v46 }
 0x1a6   : > { %v8396_v33 = vadd.f32 %v2820_v52, %v1812_v32 }
 0x1a7   : > { %v5556_v38 = vpop.f32.mrb[22].mxu0 }
 0x1a8   : > { %v5787_v49 = vpop.f32.mrb[18].mxu1  ;;  %v1852_v60 = vpop.f32.mrb[23].mxu0 }
 0x1a9   : > { %v8398_v18 = vadd.f32 %v5787_v49, %v5547_v51  ;;  %v2830_v44 = vpop.f32.mrb[19].mxu1 }
 0x1aa   : > { %v8400_v22 = vadd.f32 %v2830_v44, %v1822_v15 }
 0x1ab   : > { %v5559_v23 = vpop.f32.mrb[24].mxu0 }
 0x1ac   : > { %v5790_v30 = vpop.f32.mrb[20].mxu1  ;;  %v1862_v20 = vpop.f32.mrb[25].mxu0 }
 0x1ad   : > { %v8408_v47 = vadd.f32 %v5790_v30, %v5550_v54  ;;  %v2840_v59 = vpop.f32.mrb[21].mxu1 }
 0x1ae   : > { %v8410_v48 = vadd.f32 %v2840_v59, %v1832_v43 }
 0x1af   : > { %v5562_v13 = vpop.f32.mrb[26].mxu0 }
 0x1b0   : > { %v5793_v8 = vpop.f32.mrb[22].mxu1  ;;  %v1872_v9 = vpop.f32.mrb[27].mxu0 }
 0x1b1   : > { %v8418_v26 = vadd.f32 %v5793_v8, %v5553_v21  ;;  %v2850_v37 = vpop.f32.mrb[23].mxu1 }
 0x1b2   : > { %v8420_v31 = vadd.f32 %v2850_v37, %v1842_v45 }
 0x1b3   : > { %v5565_v32 = vpop.f32.mrb[28].mxu0 }
 0x1b4   : > { %v5796_v51 = vpop.f32.mrb[24].mxu1  ;;  %v1882_v62 = vpop.f32.mrb[29].mxu0 }
 0x1b5   : > { %v8428_v4 = vadd.f32 %v5796_v51, %v5556_v38  ;;  %v2860_v6 = vpop.f32.mrb[25].mxu1 }
 0x1b6   : > { %v8430_v15 = vadd.f32 %v2860_v6, %v1852_v60 }
 0x1b8   : > { %v5799_v28 = vpop.f32.mrb[26].mxu1 }
 0x1b9   : > { %v8432_v7 = vadd.f32 %v5799_v28, %v5559_v23  ;;  %v2870_v54 = vpop.f32.mrb[27].mxu1 }
 0x1ba   : > { %v8434_v29 = vadd.f32 %v2870_v54, %v1862_v20 }
 0x1bc   : > { %v5802_v43 = vpop.f32.mrb[28].mxu1 }
 0x1bd   : > { %v8436_v41 = vadd.f32 %v5802_v43, %v5562_v13  ;;  %v2880_v21 = vpop.f32.mrb[29].mxu1 }
 0x1be   : > { %v8438_v34 = vadd.f32 %v2880_v21, %v1872_v9 }
 0x1c0   : > { %v5805_v24 = vpop.f32.mrb[30].mxu1 }
 0x1c1   : > { %v8440_v1 = vadd.f32 %v5805_v24, %v5565_v32  ;;  %v2890_v45 = vpop.f32.mrb[31].mxu1 }
 0x1c2   : > { %v8442_v16 = vadd.f32 %v2890_v45, %v1882_v62 }
 0x1c3   : > { %9059 = vst [vmem:[#allocation8_spill] sm:$0xff] %v8440_v1 }
 0x1c4   : > { %9060 = vst [vmem:[#allocation9_spill] sm:$0xff] %v8442_v16  ;;  %v6000_v52 = vpop.f32.mrb[32].mxu1 }
 0x1c5   : > { %v3742_v38 = vpop.f32.mrb[33].mxu1 }
 0x1c8   : > { %v6003_v49 = vpop.f32.mrb[34].mxu1 }
 0x1c9   : > { %v3752_v60 = vpop.f32.mrb[35].mxu1 }
 0x1cc   : > { %v6006_v44 = vpop.f32.mrb[36].mxu1 }
 0x1cd   : > { %v3762_v2 = vpop.f32.mrb[37].mxu1 }
 0x1d0   : > { %v6009_v39 = vpop.f32.mrb[38].mxu1 }
 0x1d1   : > { %v3772_v23 = vpop.f32.mrb[39].mxu1 }
 0x1d4   : > { %v6012_v5 = vpop.f32.mrb[40].mxu1 }
 0x1d5   : > { %v3782_v30 = vpop.f32.mrb[41].mxu1 }
 0x1d8   : > { %v6015_v20 = vpop.f32.mrb[42].mxu1 }
 0x1d9   : > { %v3792_v59 = vpop.f32.mrb[43].mxu1 }
 0x1dc   : > { %v6018_v57 = vpop.f32.mrb[44].mxu1 }
 0x1dd   : > { %v3802_v12 = vpop.f32.mrb[45].mxu1 }
 0x1e0   : > { %v6021_v13 = vpop.f32.mrb[46].mxu1 }
 0x1e1   : > { %v3812_v55 = vpop.f32.mrb[47].mxu1 }
 0x1e4   : > { %v6024_v8 = vpop.f32.mrb[48].mxu1 }
 0x1e5   : > { %v3822_v9 = vpop.f32.mrb[49].mxu1 }
 0x1e8   : > { %v8444_v37 = vpop.f32.mrb[50].mxu1 }
 0x1e9   : > { %v8446_v36 = vpop.f32.mrb[51].mxu1 }
 0x1ec   : > { %v8448_v17 = vpop.f32.mrb[52].mxu1 }
 0x1ed   : > { %v8450_v32 = vpop.f32.mrb[53].mxu1 }
 0x1f0   : > { %v8452_v46 = vpop.f32.mrb[54].mxu1 }
 0x1f1   : > { %v8454_v51 = vpop.f32.mrb[55].mxu1 }
 0x1f5   : > { %v8456_v62 = vpop.f32.mrb[56].mxu1 }
 0x1f6   : > { %v8458_v6 = vpop.f32.mrb[57].mxu1 }
 0x1f7   : > { %9061 = vst [vmem:[#allocation10_spill] sm:$0xff] %v8458_v6 }
 0x1fb   : > { %v5923_v28 = vpop.f32.mrb[34].mxu0 }
 0x1fc   : > { %v6458_v54 = vadd.f32 %v8346_v3, %v5923_v28  ;;  %v3420_v43 = vpop.f32.mrb[35].mxu0 }
 0x1fd   : > { %v6461_v21 = vadd.f32 %v8348_v58, %v3420_v43 }
 0x1fe   : > { %v8462_v24 = vadd.f32 %v6458_v54, %v6000_v52 }
 0x1ff   : > { %v8464_v45 = vadd.f32 %v6461_v21, %v3742_v38  ;;  %v5926_v1 = vpop.f32.mrb[36].mxu0 }
 0x200   : > { %v6464_v16 = vadd.f32 %v8356_v40, %v5926_v1  ;;  %v3430_v63 = vpop.f32.mrb[37].mxu0 }
 0x201   : > { %v6467_v11 = vadd.f32 %v8358_v42, %v3430_v63 }
 0x202   : > { %v8468_v25 = vadd.f32 %v6464_v16, %v6003_v49 }
 0x203   : > { %v8470_v56 = vadd.f32 %v6467_v11, %v3752_v60  ;;  %v5929_v6 = vpop.f32.mrb[38].mxu0 }
 0x204   : > { %v6470_v3 = vadd.f32 %v8360_v0, %v5929_v6  ;;  %v3440_v28 = vpop.f32.mrb[39].mxu0 }
 0x205   : > { %v6473_v58 = vadd.f32 %v8362_v19, %v3440_v28 }
 0x206   : > { %v8474_v52 = vadd.f32 %v6470_v3, %v6006_v44 }
 0x207   : > { %v8476_v38 = vadd.f32 %v6473_v58, %v3762_v2  ;;  %v5932_v54 = vpop.f32.mrb[40].mxu0 }
 0x208   : > { %v6476_v40 = vadd.f32 %v8370_v35, %v5932_v54  ;;  %v3450_v1 = vpop.f32.mrb[41].mxu0 }
 0x209   : > { %v6479_v63 = vadd.f32 %v8372_v50, %v3450_v1 }
 0x20a   : > { %v8480_v42 = vadd.f32 %v6476_v40, %v6009_v39 }
 0x20b   : > { %v8482_v11 = vadd.f32 %v6479_v63, %v3772_v23  ;;  %v5935_v16 = vpop.f32.mrb[42].mxu0 }
 0x20c   : > { %v6482_v0 = vadd.f32 %v8380_v27, %v5935_v16  ;;  %v3460_v49 = vpop.f32.mrb[43].mxu0 }
 0x20d   : > { %v6485_v19 = vadd.f32 %v8382_v14, %v3460_v49 }
 0x20e   : > { %v8486_v60 = vadd.f32 %v6482_v0, %v6012_v5 }
 0x20f   : > { %v8488_v44 = vadd.f32 %v6485_v19, %v3782_v30  ;;  %v5938_v2 = vpop.f32.mrb[44].mxu0 }
 0x210   : > { %v6488_v35 = vadd.f32 %v8384_v53, %v5938_v2  ;;  %v3470_v6 = vpop.f32.mrb[45].mxu0  ;;  %v9062_v2 = vld [vmem:[#allocation10_spill] sm:$0xff] }
 0x211   : > { %v6491_v50 = vadd.f32 %v8386_v10, %v3470_v6 }
 0x212   : > { %v8492_v39 = vadd.f32 %v6488_v35, %v6015_v20 }
 0x213   : > { %v8494_v23 = vadd.f32 %v6491_v50, %v3792_v59  ;;  %v5941_v43 = vpop.f32.mrb[46].mxu0  ;;  %v9064_v50 = vld [vmem:[#allocation6_spill] sm:$0xff] }
 0x214   : > { %v6494_v27 = vadd.f32 %v8394_v61, %v5941_v43  ;;  %v3480_v21 = vpop.f32.mrb[47].mxu0 }
 0x215   : > { %v6497_v14 = vadd.f32 %v8396_v33, %v3480_v21 }
 0x216   : > { %v8498_v5 = vadd.f32 %v6494_v27, %v6018_v57  ;;  %v9065_v27 = vld [vmem:[#allocation5_spill] sm:$0xff] }
 0x217   : > { %v8500_v30 = vadd.f32 %v6497_v14, %v3802_v12  ;;  %v5944_v3 = vpop.f32.mrb[48].mxu0 }
 0x218   : > { %v6500_v53 = vadd.f32 %v8398_v18, %v5944_v3  ;;  %v3490_v28 = vpop.f32.mrb[49].mxu0 }
 0x219   : > { %v6503_v10 = vadd.f32 %v8400_v22, %v3490_v28 }
 0x21a   : > { %v8504_v20 = vadd.f32 %v6500_v53, %v6021_v13  ;;  %v9066_v53 = vld [vmem:[#allocation7_spill] sm:$0xff] }
 0x21b   : > { %v8506_v59 = vadd.f32 %v6503_v10, %v3812_v55  ;;  %v5947_v58 = vpop.f32.mrb[50].mxu0 }
 0x21c   : > { %v6506_v61 = vadd.f32 %v8408_v47, %v5947_v58  ;;  %v3500_v54 = vpop.f32.mrb[51].mxu0 }
 0x21d   : > { %v6509_v33 = vadd.f32 %v8410_v48, %v3500_v54 }
 0x21e   : > { %v8510_v57 = vadd.f32 %v6506_v61, %v6024_v8 }
 0x21f   : > { %v8512_v12 = vadd.f32 %v6509_v33, %v3822_v9  ;;  %v5950_v40 = vpop.f32.mrb[52].mxu0 }
 0x220   : > { %v6512_v18 = vadd.f32 %v8418_v26, %v5950_v40  ;;  %v3510_v1 = vpop.f32.mrb[53].mxu0 }
 0x221   : > { %v6515_v22 = vadd.f32 %v8420_v31, %v3510_v1 }
 0x222   : > { %v8517_v13 = vadd.f32 %v6512_v18, %v8444_v37 }
 0x223   : > { %v8520_v55 = vadd.f32 %v6515_v22, %v8446_v36  ;;  %v5953_v47 = vpop.f32.mrb[54].mxu0 }
 0x224   : > { %v6518_v63 = vadd.f32 %v8428_v4, %v5953_v47  ;;  %v3520_v48 = vpop.f32.mrb[55].mxu0 }
 0x225   : > { %v6521_v8 = vadd.f32 %v8430_v15, %v3520_v48 }
 0x226   : > { %v8525_v9 = vadd.f32 %v6518_v63, %v8448_v17 }
 0x227   : > { %v8528_v26 = vadd.f32 %v6521_v8, %v8450_v32  ;;  %v5956_v16 = vpop.f32.mrb[56].mxu0 }
 0x228   : > { %v6524_v31 = vadd.f32 %v8432_v7, %v5956_v16  ;;  %v3530_v37 = vpop.f32.mrb[57].mxu0 }
 0x229   : > { %v6527_v0 = vadd.f32 %v8434_v29, %v3530_v37  ;;  %v9063_v29 = vld [vmem:[#allocation4_spill] sm:$0xff] }
 0x22a   : > { %v8533_v36 = vadd.f32 %v6524_v31, %v8452_v46 }
 0x22b   : > { %v8536_v4 = vadd.f32 %v6527_v0, %v8454_v51  ;;  %v5959_v49 = vpop.f32.mrb[58].mxu0  ;;  %v8550_v51 = vld [vmem:[%s8806_s3] ss:$0 sm:$0xff] }
 0x22c   : > { %v6530_v15 = vadd.f32 %v8436_v41, %v5959_v49  ;;  %v3540_v17 = vpop.f32.mrb[59].mxu0  ;;  %v4004_v61 = vadd.f32 %v8464_v45, %v8550_v51  ;;  %v4005_v40 = vadd.f32 %v8462_v24, %v8550_v51  ;;  %v4006_v22 = vadd.f32 %v8470_v56, %v8550_v51 }
 0x22d   : > { %v6533_v19 = vadd.f32 %v8438_v34, %v3540_v17  ;;  %v4007_v45 = vadd.f32 %v8468_v25, %v8550_v51  ;;  %v4008_v48 = vadd.f32 %v8476_v38, %v8550_v51  ;;  %v4009_v24 = vadd.f32 %v8474_v52, %v8550_v51 }
 0x22e   : > { %v8541_v32 = vadd.f32 %v6530_v15, %v8456_v62  ;;  %v4036_v1 = vmax.f32 %v4004_v61, 0.0  ;;  %v4037_v47 = vmax.f32 %v4005_v40, 0.0  ;;  %v4038_v63 = vmax.f32 %v4006_v22, 0.0  ;;  %v4317_v22 = vld [vmem:[%s8619_s9 + $0x28] sm:$0xff] }
 0x22f   : > { %v8544_v7 = vadd.f32 %v6533_v19, %v9062_v2  ;;  %v5994_v35 = vpop.f32.mrb[30].mxu0  ;;  %v4039_v8 = vmax.f32 %v4007_v45, 0.0  ;;  %v4040_v16 = vmax.f32 %v4008_v48, 0.0  ;;  %v4010_v56 = vadd.f32 %v8482_v11, %v8550_v51  ;;  %v4319_v45 = vld [vmem:[%s8619_s9 + $0x38] sm:$0xff]  ;;  %v8637_v48 = vld [vmem:[%s8619_s9 + $0x48] sm:$0xff] }
 0x230   : > { %v6537_v6 = vadd.f32 %v5994_v35, %v9063_v29  ;;  %v3722_v46 = vpop.f32.mrb[31].mxu0  ;;  %v4041_v31 = vmax.f32 %v4009_v24, 0.0  ;;  %v4011_v25 = vadd.f32 %v8480_v42, %v8550_v51  ;;  %v4012_v38 = vadd.f32 %v8488_v44, %v8550_v51  ;;  %v8643_v24 = vld [vmem:[%s8619_s9 + $0x58] sm:$0xff] }
 0x231   : > { %v6538_v41 = vadd.f32 %v3722_v46, %v9064_v50  ;;  %v4042_v37 = vmax.f32 %v4010_v56, 0.0  ;;  %v4013_v52 = vadd.f32 %v8486_v60, %v8550_v51  ;;  %v4014_v11 = vadd.f32 %v8494_v23, %v8550_v51  ;;  %v8649_v56 = vld [vmem:[%s8619_s9 + $0x68] sm:$0xff] }
 0x232   : > { %v4001_v43 = vadd.f32 %v6537_v6, %v8550_v51  ;;  %v4043_v0 = vmax.f32 %v4011_v25, 0.0  ;;  %v4044_v49 = vmax.f32 %v4012_v38, 0.0  ;;  %v4015_v42 = vadd.f32 %v8492_v39, %v8550_v51  ;;  %v8655_v25 = vld [vmem:[%s8619_s9 + $0x78] sm:$0xff]  ;;  %v8661_v38 = vld [vmem:[%s8619_s9 + $0x88] sm:$0xff] }
 0x233   : > { %v4000_v34 = vadd.f32 %v6538_v41, %v8550_v51  ;;  %v5997_v62 = vpop.f32.mrb[32].mxu0  ;;  %v4045_v15 = vmax.f32 %v4013_v52, 0.0  ;;  %v4046_v17 = vmax.f32 %v4014_v11, 0.0  ;;  %v4016_v44 = vadd.f32 %v8500_v30, %v8550_v51  ;;  %v8667_v52 = vld [vmem:[%s8619_s9 + $0x98] sm:$0xff]  ;;  %v8673_v11 = vld [vmem:[%s8619_s9 + $0xa8] sm:$0xff] }
 0x234   : > { %v6454_v21 = vadd.f32 %v9065_v27, %v5997_v62  ;;  %v3732_v14 = vpop.f32.mrb[33].mxu0  ;;  %v4033_v10 = vmax.f32 %v4001_v43, 0.0  ;;  %v4047_v19 = vmax.f32 %v4015_v42, 0.0  ;;  %v4017_v60 = vadd.f32 %v8498_v5, %v8550_v51  ;;  %v8679_v42 = vld [vmem:[%s8619_s9 + $0xb8] sm:$0xff] }
 0x235   : > { %v4032_v3 = vmax.f32 %v4000_v34, 0.0  ;;  %v6456_v28 = vadd.f32 %v9066_v53, %v3732_v14  ;;  %v4048_v2 = vmax.f32 %v4016_v44, 0.0  ;;  %v4018_v23 = vadd.f32 %v8506_v59, %v8550_v51  ;;  %v9067_v14 = vld [vmem:[#allocation9_spill] sm:$0xff]  ;;  %v9068_v53 = vld [vmem:[#allocation8_spill] sm:$0xff] }
 0x236   : > { %v4003_v58 = vadd.f32 %v6454_v21, %v8550_v51  ;;  %v4049_v35 = vmax.f32 %v4017_v60, 0.0  ;;  %v4019_v39 = vadd.f32 %v8504_v20, %v8550_v51  ;;  %v4020_v30 = vadd.f32 %v8512_v12, %v8550_v51  ;;  %v8685_v44 = vld [vmem:[%s8619_s9 + $0xc8] sm:$0xff] }
 0x237   : > { %v4002_v54 = vadd.f32 %v6456_v28, %v8550_v51  ;;  %6069 = vmatprep.mubr.f32.mxu1 %v4032_v3  ;;  %v4050_v29 = vmax.f32 %v4018_v23, 0.0  ;;  %v4021_v5 = vadd.f32 %v8510_v57, %v8550_v51  ;;  %v4022_v59 = vadd.f32 %v8520_v55, %v8550_v51  ;;  %v8694_v23 = vld [vmem:[%s8619_s9 + $0xd0] sm:$0xff] }
 0x238   : > { %6070 = vmatmul.mubr.f32.vlgmr.msra.gmra.mrb[58].mxu1 %v4033_v10  ;;  %v4035_v18 = vmax.f32 %v4003_v58, 0.0  ;;  %v4051_v6 = vmax.f32 %v4019_v39, 0.0  ;;  %v4052_v46 = vmax.f32 %v4020_v30, 0.0  ;;  %v4023_v20 = vadd.f32 %v8517_v13, %v8550_v51  ;;  %v4313_v58 = vld [vmem:[%s8619_s9 + $0x8] sm:$0xff]  ;;  %v8706_v30 = vld [vmem:[%s8619_s9 + $0xe0] sm:$0xff] }
 0x239   : > { %v4034_v33 = vmax.f32 %v4002_v54, 0.0  ;;  %v4053_v50 = vmax.f32 %v4021_v5, 0.0  ;;  %v4054_v41 = vmax.f32 %v4022_v59, 0.0  ;;  %v4024_v12 = vadd.f32 %v8528_v26, %v8550_v51  ;;  %v8712_v5 = vld [vmem:[%s8619_s9 + $0xf0] sm:$0xff] }
 0x23a   : > { %v4055_v43 = vmax.f32 %v4023_v20, 0.0  ;;  %v4025_v57 = vadd.f32 %v8525_v9, %v8550_v51  ;;  %v4026_v55 = vadd.f32 %v8536_v4, %v8550_v51  ;;  %v4027_v13 = vadd.f32 %v8533_v36, %v8550_v51 }
 0x23b   : > { %6072 = vmatprep.mubr.f32.mxu1 %v4034_v33  ;;  %v4056_v34 = vmax.f32 %v4024_v12, 0.0  ;;  %v4028_v26 = vadd.f32 %v8544_v7, %v8550_v51  ;;  %v4029_v9 = vadd.f32 %v8541_v32, %v8550_v51  ;;  %v4030_v4 = vadd.f32 %v9067_v14, %v8550_v51  ;;  %v8624_v32 = vld [vmem:[%s8808_s5] ss:$0 sm:$0xff] }
 0x23c   : > { %6073 = vmatmul.mubr.f32.gmra.mrb[60].mxu1 %v4035_v18  ;;  %v4057_v62 = vmax.f32 %v4025_v57, 0.0  ;;  %v4058_v27 = vmax.f32 %v4026_v55, 0.0  ;;  %v4059_v21 = vmax.f32 %v4027_v13, 0.0  ;;  %v4031_v36 = vadd.f32 %v9068_v53, %v8550_v51  ;;  %v4312_v33 = vld [vmem:[%s8619_s9] sm:$0xff]  ;;  %v4315_v18 = vld [vmem:[%s8619_s9 + $0x18] sm:$0xff] }
 0x23d   : > { %6075 = vmatprep.mubr.f32.mxu1 %v4036_v1  ;;  %v4060_v3 = vmax.f32 %v4028_v26, 0.0  ;;  %v4061_v28 = vmax.f32 %v4029_v9, 0.0  ;;  %v4062_v10 = vmax.f32 %v4030_v4, 0.0  ;;  %v4314_v1 = vld [vmem:[%s8619_s9 + $0x10] sm:$0xff] }
 0x23e   : > { %v4063_v7 = vmax.f32 %v4031_v36, 0.0 }
 0x240   : > { %6076 = vmatmul.mubr.f32.gmra.mrb[62].mxu1 %v4037_v47  ;;  %v4316_v47 = vld [vmem:[%s8619_s9 + $0x20] sm:$0xff] }
 0x241   : > { %6078 = vmatprep.mubr.f32.mxu1 %v4038_v63  ;;  %v4318_v63 = vld [vmem:[%s8619_s9 + $0x30] sm:$0xff] }
 0x244   : > { %6079 = vmatmul.mubr.f32.gmra.mrb[64].mxu1 %v4039_v8  ;;  %v8640_v8 = vld [vmem:[%s8619_s9 + $0x40] sm:$0xff] }
 0x245   : > { %6081 = vmatprep.mubr.f32.mxu1 %v4040_v16  ;;  %v8646_v16 = vld [vmem:[%s8619_s9 + $0x50] sm:$0xff] }
 0x248   : > { %6082 = vmatmul.mubr.f32.gmra.mrb[66].mxu1 %v4041_v31  ;;  %v8652_v31 = vld [vmem:[%s8619_s9 + $0x60] sm:$0xff] }
 0x249   : > { %6084 = vmatprep.mubr.f32.mxu1 %v4042_v37  ;;  %v8658_v37 = vld [vmem:[%s8619_s9 + $0x70] sm:$0xff] }
 0x24c   : > { %6085 = vmatmul.mubr.f32.gmra.mrb[68].mxu1 %v4043_v0  ;;  %v8664_v0 = vld [vmem:[%s8619_s9 + $0x80] sm:$0xff] }
 0x24d   : > { %6087 = vmatprep.mubr.f32.mxu1 %v4044_v49  ;;  %v8670_v49 = vld [vmem:[%s8619_s9 + $0x90] sm:$0xff] }
 0x250   : > { %6088 = vmatmul.mubr.f32.gmra.mrb[70].mxu1 %v4045_v15  ;;  %v8676_v15 = vld [vmem:[%s8619_s9 + $0xa0] sm:$0xff] }
 0x251   : > { %6090 = vmatprep.mubr.f32.mxu1 %v4046_v17  ;;  %v8682_v17 = vld [vmem:[%s8619_s9 + $0xb0] sm:$0xff] }
 0x254   : > { %6091 = vmatmul.mubr.f32.gmra.mrb[72].mxu1 %v4047_v19  ;;  %v8688_v19 = vld [vmem:[%s8619_s9 + $0xc0] sm:$0xff] }
 0x255   : > { %6093 = vmatprep.mubr.f32.mxu1 %v4048_v2  ;;  %v8691_v2 = vld [vmem:[%s8619_s9 + $0xd8] sm:$0xff] }
 0x258   : > { %6094 = vmatmul.mubr.f32.gmra.mrb[74].mxu1 %v4049_v35  ;;  %v8697_v35 = vld [vmem:[%s8619_s9 + $0xe8] sm:$0xff] }
 0x259   : > { %6096 = vmatprep.mubr.f32.mxu1 %v4050_v29 }
 0x25c   : > { %6097 = vmatmul.mubr.f32.gmra.mrb[76].mxu1 %v4051_v6  ;;  %v8709_v6 = vld [vmem:[%s8619_s9 + $0xf8] sm:$0xff] }
 0x25d   : > { %6099 = vmatprep.mubr.f32.mxu1 %v4052_v46 }
 0x260   : > { %6100 = vmatmul.mubr.f32.gmra.mrb[78].mxu1 %v4053_v50 }
 0x261   : > { %6102 = vmatprep.mubr.f32.mxu1 %v4054_v41 }
 0x264   : > { %6103 = vmatmul.mubr.f32.gmra.mrb[80].mxu1 %v4055_v43 }
 0x265   : > { %6105 = vmatprep.mubr.f32.mxu1 %v4056_v34 }
 0x268   : > { %6106 = vmatmul.mubr.f32.gmra.mrb[82].mxu1 %v4057_v62 }
 0x269   : > { %6108 = vmatprep.mubr.f32.mxu1 %v4058_v27 }
 0x26c   : > { %6109 = vmatmul.mubr.f32.gmra.mrb[84].mxu1 %v4059_v21 }
 0x26d   : > { %6111 = vmatprep.mubr.f32.mxu1 %v4060_v3 }
 0x270   : > { %6112 = vmatmul.mubr.f32.gmra.mrb[86].mxu1 %v4061_v28 }
 0x271   : > { %6114 = vmatprep.mubr.f32.mxu1 %v4062_v10 }
 0x274   : > { %6115 = vmatmul.mubr.f32.gmra.mrb[88].mxu1 %v4063_v7 }
 0x30b   : > { %v6071_v51 = vpop.f32.mrb[58].mxu1 }
 0x30c   : > { %v4159_v61 = vadd.f32 %v6071_v51, %v8624_v32  ;;  %v4153_v54 = vpop.f32.mrb[59].mxu1 }
 0x30d   : > { %v4154_v40 = vadd.f32 %v8624_v32, %v4153_v54 }
 0x30e   : > { %v4345_v60 = vadd.f32 %v4313_v58, %v4159_v61 }
 0x30f   : > { %v4344_v39 = vadd.f32 %v4312_v33, %v4154_v40  ;;  %v6074_v29 = vpop.f32.mrb[60].mxu1 }
 0x310   : > { %v4377_v46 = vmax.f32 %v4345_v60, 0.0  ;;  %v4169_v59 = vadd.f32 %v6074_v29, %v8624_v32  ;;  %v4163_v50 = vpop.f32.mrb[61].mxu1 }
 0x311   : > { %v4376_v20 = vmax.f32 %v4344_v39, 0.0  ;;  %v4164_v41 = vadd.f32 %v8624_v32, %v4163_v50 }
 0x312   : > { %v4347_v12 = vadd.f32 %v4315_v18, %v4169_v59  ;;  %4409 = vst [vmem:[%s8703_s14 + $0x8] sm:$0xff] %v4377_v46 }
 0x313   : > { %v4346_v43 = vadd.f32 %v4314_v1, %v4164_v41  ;;  %v6077_v57 = vpop.f32.mrb[62].mxu1  ;;  %4408 = vst [vmem:[%s8703_s14] sm:$0xff] %v4376_v20 }
 0x314   : > { %v4379_v34 = vmax.f32 %v4347_v12, 0.0  ;;  %v4179_v55 = vadd.f32 %v6077_v57, %v8624_v32  ;;  %v4173_v62 = vpop.f32.mrb[63].mxu1 }
 0x315   : > { %v4378_v13 = vmax.f32 %v4346_v43, 0.0  ;;  %v4174_v27 = vadd.f32 %v8624_v32, %v4173_v62 }
 0x316   : > { %v4349_v26 = vadd.f32 %v4317_v22, %v4179_v55  ;;  %4411 = vst [vmem:[%s8703_s14 + $0x18] sm:$0xff] %v4379_v34 }
 0x317   : > { %v4348_v21 = vadd.f32 %v4316_v47, %v4174_v27  ;;  %v6080_v9 = vpop.f32.mrb[64].mxu1  ;;  %4410 = vst [vmem:[%s8703_s14 + $0x10] sm:$0xff] %v4378_v13 }
 0x318   : > { %v4381_v14 = vmax.f32 %v4349_v26, 0.0  ;;  %v4189_v4 = vadd.f32 %v6080_v9, %v8624_v32  ;;  %v4183_v3 = vpop.f32.mrb[65].mxu1 }
 0x319   : > { %v4380_v53 = vmax.f32 %v4348_v21, 0.0  ;;  %v4184_v36 = vadd.f32 %v8624_v32, %v4183_v3 }
 0x31a   : > { %v4351_v28 = vadd.f32 %v4319_v45, %v4189_v4  ;;  %4413 = vst [vmem:[%s8703_s14 + $0x28] sm:$0xff] %v4381_v14 }
 0x31b   : > { %v4350_v10 = vadd.f32 %v4318_v63, %v4184_v36  ;;  %v6083_v7 = vpop.f32.mrb[66].mxu1  ;;  %4412 = vst [vmem:[%s8703_s14 + $0x20] sm:$0xff] %v4380_v53 }
 0x31c   : > { %v4383_v51 = vmax.f32 %v4351_v28, 0.0  ;;  %v4199_v58 = vadd.f32 %v6083_v7, %v8624_v32  ;;  %v4193_v61 = vpop.f32.mrb[67].mxu1 }
 0x31d   : > { %v4382_v54 = vmax.f32 %v4350_v10, 0.0  ;;  %v4194_v33 = vadd.f32 %v8624_v32, %v4193_v61 }
 0x31e   : > { %v4353_v40 = vadd.f32 %v8637_v48, %v4199_v58  ;;  %4415 = vst [vmem:[%s8703_s14 + $0x38] sm:$0xff] %v4383_v51 }
 0x31f   : > { %v4352_v18 = vadd.f32 %v8640_v8, %v4194_v33  ;;  %v6086_v1 = vpop.f32.mrb[68].mxu1  ;;  %4414 = vst [vmem:[%s8703_s14 + $0x30] sm:$0xff] %v4382_v54 }
 0x320   : > { %v4385_v22 = vmax.f32 %v4353_v40, 0.0  ;;  %v4209_v47 = vadd.f32 %v6086_v1, %v8624_v32  ;;  %v4203_v45 = vpop.f32.mrb[69].mxu1 }
 0x321   : > { %v4384_v63 = vmax.f32 %v4352_v18, 0.0  ;;  %v4204_v60 = vadd.f32 %v8624_v32, %v4203_v45 }
 0x322   : > { %v4355_v39 = vadd.f32 %v8643_v24, %v4209_v47  ;;  %4417 = vst [vmem:[%s8703_s14 + $0x48] sm:$0xff] %v4385_v22 }
 0x323   : > { %v4354_v29 = vadd.f32 %v8646_v16, %v4204_v60  ;;  %v6089_v48 = vpop.f32.mrb[70].mxu1  ;;  %4416 = vst [vmem:[%s8703_s14 + $0x40] sm:$0xff] %v4384_v63 }
 0x324   : > { %v4387_v46 = vmax.f32 %v4355_v39, 0.0  ;;  %v4219_v8 = vadd.f32 %v6089_v48, %v8624_v32  ;;  %v4213_v59 = vpop.f32.mrb[71].mxu1 }
 0x325   : > { %v4386_v50 = vmax.f32 %v4354_v29, 0.0  ;;  %v4214_v20 = vadd.f32 %v8624_v32, %v4213_v59 }
 0x326   : > { %v4357_v41 = vadd.f32 %v8649_v56, %v4219_v8  ;;  %4419 = vst [vmem:[%s8703_s14 + $0x58] sm:$0xff] %v4387_v46 }
 0x327   : > { %v4356_v12 = vadd.f32 %v8652_v31, %v4214_v20  ;;  %v6092_v24 = vpop.f32.mrb[72].mxu1  ;;  %4418 = vst [vmem:[%s8703_s14 + $0x50] sm:$0xff] %v4386_v50 }
 0x328   : > { %v4389_v43 = vmax.f32 %v4357_v41, 0.0  ;;  %v4229_v16 = vadd.f32 %v6092_v24, %v8624_v32  ;;  %v4223_v57 = vpop.f32.mrb[73].mxu1 }
 0x329   : > { %v4388_v34 = vmax.f32 %v4356_v12, 0.0  ;;  %v4224_v55 = vadd.f32 %v8624_v32, %v4223_v57 }
 0x32a   : > { %v4359_v62 = vadd.f32 %v8655_v25, %v4229_v16  ;;  %4421 = vst [vmem:[%s8703_s14 + $0x68] sm:$0xff] %v4389_v43 }
 0x32b   : > { %v4358_v13 = vadd.f32 %v8658_v37, %v4224_v55  ;;  %v6095_v56 = vpop.f32.mrb[74].mxu1  ;;  %4420 = vst [vmem:[%s8703_s14 + $0x60] sm:$0xff] %v4388_v34 }
 0x32c   : > { %v4391_v27 = vmax.f32 %v4359_v62, 0.0  ;;  %v4239_v31 = vadd.f32 %v6095_v56, %v8624_v32  ;;  %v4233_v26 = vpop.f32.mrb[75].mxu1 }
 0x32d   : > { %v4390_v21 = vmax.f32 %v4358_v13, 0.0  ;;  %v4234_v9 = vadd.f32 %v8624_v32, %v4233_v26 }
 0x32e   : > { %v4361_v14 = vadd.f32 %v8661_v38, %v4239_v31  ;;  %4423 = vst [vmem:[%s8703_s14 + $0x78] sm:$0xff] %v4391_v27 }
 0x32f   : > { %v4360_v4 = vadd.f32 %v8664_v0, %v4234_v9  ;;  %v6098_v25 = vpop.f32.mrb[76].mxu1  ;;  %4422 = vst [vmem:[%s8703_s14 + $0x70] sm:$0xff] %v4390_v21 }
 0x330   : > { %v4393_v3 = vmax.f32 %v4361_v14, 0.0  ;;  %v4249_v37 = vadd.f32 %v6098_v25, %v8624_v32  ;;  %v4243_v53 = vpop.f32.mrb[77].mxu1 }
 0x331   : > { %v4392_v36 = vmax.f32 %v4360_v4, 0.0  ;;  %v4244_v28 = vadd.f32 %v8624_v32, %v4243_v53 }
 0x332   : > { %v4363_v10 = vadd.f32 %v8667_v52, %v4249_v37  ;;  %4425 = vst [vmem:[%s8703_s14 + $0x88] sm:$0xff] %v4393_v3 }
 0x333   : > { %v4362_v7 = vadd.f32 %v8670_v49, %v4244_v28  ;;  %v6101_v38 = vpop.f32.mrb[78].mxu1  ;;  %4424 = vst [vmem:[%s8703_s14 + $0x80] sm:$0xff] %v4392_v36 }
 0x334   : > { %v4395_v51 = vmax.f32 %v4363_v10, 0.0  ;;  %v4259_v0 = vadd.f32 %v6101_v38, %v8624_v32  ;;  %v4253_v58 = vpop.f32.mrb[79].mxu1 }
 0x335   : > { %v4394_v61 = vmax.f32 %v4362_v7, 0.0  ;;  %v4254_v54 = vadd.f32 %v8624_v32, %v4253_v58 }
 0x336   : > { %v4365_v33 = vadd.f32 %v8673_v11, %v4259_v0  ;;  %4427 = vst [vmem:[%s8703_s14 + $0x98] sm:$0xff] %v4395_v51 }
 0x337   : > { %v4364_v40 = vadd.f32 %v8676_v15, %v4254_v54  ;;  %v6104_v52 = vpop.f32.mrb[80].mxu1  ;;  %4426 = vst [vmem:[%s8703_s14 + $0x90] sm:$0xff] %v4394_v61 }
 0x338   : > { %v4397_v18 = vmax.f32 %v4365_v33, 0.0  ;;  %v4269_v49 = vadd.f32 %v6104_v52, %v8624_v32  ;;  %v4263_v1 = vpop.f32.mrb[81].mxu1 }
 0x339   : > { %v4396_v22 = vmax.f32 %v4364_v40, 0.0  ;;  %v4264_v47 = vadd.f32 %v8624_v32, %v4263_v1 }
 0x33a   : > { %v4367_v45 = vadd.f32 %v8679_v42, %v4269_v49  ;;  %4429 = vst [vmem:[%s8703_s14 + $0xa8] sm:$0xff] %v4397_v18 }
 0x33b   : > { %v4366_v63 = vadd.f32 %v8682_v17, %v4264_v47  ;;  %v6107_v11 = vpop.f32.mrb[82].mxu1  ;;  %4428 = vst [vmem:[%s8703_s14 + $0xa0] sm:$0xff] %v4396_v22 }
 0x33c   : > { %v4399_v60 = vmax.f32 %v4367_v45, 0.0  ;;  %v4279_v15 = vadd.f32 %v6107_v11, %v8624_v32  ;;  %v4273_v39 = vpop.f32.mrb[83].mxu1 }
 0x33d   : > { %v4398_v29 = vmax.f32 %v4366_v63, 0.0  ;;  %v4274_v48 = vadd.f32 %v8624_v32, %v4273_v39 }
 0x33e   : > { %v4369_v46 = vadd.f32 %v8685_v44, %v4279_v15  ;;  %4431 = vst [vmem:[%s8703_s14 + $0xb8] sm:$0xff] %v4399_v60 }
 0x33f   : > { %v4368_v8 = vadd.f32 %v8688_v19, %v4274_v48  ;;  %v6110_v42 = vpop.f32.mrb[84].mxu1  ;;  %4430 = vst [vmem:[%s8703_s14 + $0xb0] sm:$0xff] %v4398_v29 }
 0x340   : > { %v4401_v59 = vmax.f32 %v4369_v46, 0.0  ;;  %v4289_v17 = vadd.f32 %v6110_v42, %v8624_v32  ;;  %v4283_v50 = vpop.f32.mrb[85].mxu1 }
 0x341   : > { %v4400_v20 = vmax.f32 %v4368_v8, 0.0  ;;  %v4284_v41 = vadd.f32 %v8624_v32, %v4283_v50 }
 0x342   : > { %v4371_v12 = vadd.f32 %v8691_v2, %v4289_v17  ;;  %4433 = vst [vmem:[%s8703_s14 + $0xc8] sm:$0xff] %v4401_v59 }
 0x343   : > { %v4370_v24 = vadd.f32 %v8694_v23, %v4284_v41  ;;  %v6113_v44 = vpop.f32.mrb[86].mxu1  ;;  %4432 = vst [vmem:[%s8703_s14 + $0xc0] sm:$0xff] %v4400_v20 }
 0x344   : > { %v4403_v43 = vmax.f32 %v4371_v12, 0.0  ;;  %v4299_v19 = vadd.f32 %v6113_v44, %v8624_v32  ;;  %v4293_v16 = vpop.f32.mrb[87].mxu1 }
 0x345   : > { %v4402_v57 = vmax.f32 %v4370_v24, 0.0  ;;  %v4294_v34 = vadd.f32 %v8624_v32, %v4293_v16 }
 0x346   : > { %v4373_v55 = vadd.f32 %v8697_v35, %v4299_v19  ;;  %4435 = vst [vmem:[%s8703_s14 + $0xd8] sm:$0xff] %v4403_v43 }
 0x347   : > { %v4372_v2 = vadd.f32 %v8706_v30, %v4294_v34  ;;  %v6116_v62 = vpop.f32.mrb[88].mxu1  ;;  %4434 = vst [vmem:[%s8703_s14 + $0xd0] sm:$0xff] %v4402_v57 }
 0x348   : > { %v4405_v23 = vmax.f32 %v4373_v55, 0.0  ;;  %v4309_v13 = vadd.f32 %v6116_v62, %v8624_v32  ;;  %v4303_v56 = vpop.f32.mrb[89].mxu1 }
 0x349   : > { %v4404_v27 = vmax.f32 %v4372_v2, 0.0  ;;  %v4304_v31 = vadd.f32 %v8624_v32, %v4303_v56 }
 0x34a   : > { %v4375_v26 = vadd.f32 %v8709_v6, %v4309_v13  ;;  %4437 = vst [vmem:[%s8703_s14 + $0xe8] sm:$0xff] %v4405_v23 }
 0x34b   : > { %v4374_v21 = vadd.f32 %v8712_v5, %v4304_v31  ;;  %4436 = vst [vmem:[%s8703_s14 + $0xe0] sm:$0xff] %v4404_v27 }
 0x34c   : > { %v4407_v35 = vmax.f32 %v4375_v26, 0.0 }
 0x34d   : > { %v4406_v9 = vmax.f32 %v4374_v21, 0.0 }
 0x34e   : > { %4439 = vst [vmem:[%s8703_s14 + $0xf8] sm:$0xff] %v4407_v35 }
 0x34f   : > { %4438 = vst [vmem:[%s8703_s14 + $0xf0] sm:$0xff] %v4406_v9 }
 0x350 PF: > { %s16_s21 = sadd.s32 1, %s6741_s21  }
 0x351   : > { %p13_p4 = scmp.ge.s32.totalorder %s16_s21, 4  }
 0x353   :  { %15 = sbr.rel (!%p13_p4) target bundleno = 1 (0x1), region = 85 }

</bundles_post_ra>
